<compile_context>
chip_gen: v5e
topology: v5e:2x2
jax: 0.10.0
libtpu: 0.0.40
codegen_flags: <defaults>
</compile_context>

<pallas_src>
import math

import jax
import jax.numpy as jnp
from jax.experimental import pallas as pl
from jax.experimental.pallas import tpu as pltpu

FC_DIM = 100   # fixed by the module: fc = nn.Linear(hidden_size, 100)
LANE = 128
SUBLANE = 8


def _round_up(x, m):
    return ((x + m - 1) // m) * m


def _make_nids_lstm_kernel(num_layers, seq_len, batch_p, hidden_p):
    """Kernel closed over static (L, T, BP, HP).

    Kernel ref order:
      x_slab_ref,                                  # (T*BP, F) time-major rows
      [w_ih_T_ref, w_hh_T_ref, bias_ref] * L,      # lane-padded to 4*HP gate width
      w_fc_T_ref, b_fc_ref, w_fc2_T_ref, b_fc2_ref,
      out_ref                                      # (BP, CP)
    """
    L, T, BP, HP = num_layers, seq_len, batch_p, hidden_p

    def kernel(*refs):
        x_ref = refs[0]
        out_ref = refs[-1]
        w_fc_T_ref, b_fc_ref, w_fc2_T_ref, b_fc2_ref = refs[1 + 3 * L: 1 + 3 * L + 4]

        def sig(v):
            # sigmoid(x) = 0.5 * (1 + tanh(x/2)); single EUP tanh, no VALU divide.
            return 0.5 * jnp.tanh(0.5 * v) + 0.5

        seq = x_ref[...].astype(jnp.float32)          # (T*BP, in_dim), time-major
        last_h = None

        for l in range(L):
            w_ih_T = refs[1 + 3 * l][...].astype(jnp.float32)   # (in_dim_p, 4*HP)
            w_hh_T = refs[2 + 3 * l][...].astype(jnp.float32)   # (HP, 4*HP)
            bias = refs[3 + 3 * l][...].astype(jnp.float32)     # (1, 4*HP)

            # Hoisted input projection + bias: one matmul per layer.
            ih_all = (
                jnp.dot(seq, w_ih_T, preferred_element_type=jnp.float32) + bias
            )                                                   # (T*BP, 4*HP)

            h = jnp.zeros((BP, HP), jnp.float32)
            c = jnp.zeros((BP, HP), jnp.float32)
            hs = []
            # Unrolled time loop: only h @ W_hh + activations on the serial path.
            for t in range(T):
                gates = ih_all[t * BP:(t + 1) * BP, :] + jnp.dot(
                    h, w_hh_T, preferred_element_type=jnp.float32
                )                                               # (BP, 4*HP)
                # Each gate slice is a full 128-lane-aligned block (HP = 128*k).
                i_g = sig(gates[:, 0 * HP:1 * HP])
                f_g = sig(gates[:, 1 * HP:2 * HP])
                g_g = jnp.tanh(gates[:, 2 * HP:3 * HP])
                o_g = sig(gates[:, 3 * HP:4 * HP])
                c = f_g * c + i_g * g_g                         # pad lanes stay 0
                h = o_g * jnp.tanh(c)                           # pad lanes stay 0
                hs.append(h)
            last_h = h
            if l + 1 < L:
                # Time-major slab feeding the next layer's hoisted projection.
                seq = jnp.concatenate(hs, axis=0)               # (T*BP, HP)

        # fc -> fc2 on lane-padded widths; padded rows/cols are exact zeros.
        w_fc_T = w_fc_T_ref[...].astype(jnp.float32)            # (HP, FCP)
        b_fc = b_fc_ref[...].astype(jnp.float32)                # (1, FCP)
        w_fc2_T = w_fc2_T_ref[...].astype(jnp.float32)          # (FCP, CP)
        b_fc2 = b_fc2_ref[...].astype(jnp.float32)              # (1, CP)

        hid = jnp.dot(last_h, w_fc_T, preferred_element_type=jnp.float32) + b_fc
        out = jnp.dot(hid, w_fc2_T, preferred_element_type=jnp.float32) + b_fc2
        out_ref[...] = out.astype(out_ref.dtype)

    return kernel


def _pad_gate_cols(w_T, H, HP):
    """(in_dim, 4H) -> (in_dim, 4HP): zero-pad each of the 4 gate blocks to HP lanes."""
    if HP == H:
        return w_T
    blocks = [w_T[:, g * H:(g + 1) * H] for g in range(4)]
    return jnp.concatenate(
        [jnp.pad(b, ((0, 0), (0, HP - H))) for b in blocks], axis=1
    )


def init_params(key, num_features, hidden_size, num_layers, num_classes):
    """Deterministic init mimicking PyTorch's default uniform(-1/sqrt(fan), 1/sqrt(fan))."""
    H = hidden_size
    keys = jax.random.split(key, 4 * num_layers + 4)
    idx = 0
    lstm = []
    k = 1.0 / math.sqrt(H)
    for l in range(num_layers):
        in_dim = num_features if l == 0 else H
        w_ih = jax.random.uniform(keys[idx], (4 * H, in_dim), jnp.float32, -k, k); idx += 1
        w_hh = jax.random.uniform(keys[idx], (4 * H, H), jnp.float32, -k, k); idx += 1
        b_ih = jax.random.uniform(keys[idx], (4 * H,), jnp.float32, -k, k); idx += 1
        b_hh = jax.random.uniform(keys[idx], (4 * H,), jnp.float32, -k, k); idx += 1
        lstm.append((w_ih, w_hh, b_ih, b_hh))
    k1 = 1.0 / math.sqrt(H)
    w_fc = jax.random.uniform(keys[idx], (FC_DIM, H), jnp.float32, -k1, k1); idx += 1
    b_fc = jax.random.uniform(keys[idx], (FC_DIM,), jnp.float32, -k1, k1); idx += 1
    k2 = 1.0 / math.sqrt(FC_DIM)
    w_fc2 = jax.random.uniform(keys[idx], (num_classes, FC_DIM), jnp.float32, -k2, k2); idx += 1
    b_fc2 = jax.random.uniform(keys[idx], (num_classes,), jnp.float32, -k2, k2); idx += 1
    return {"lstm": lstm, "w_fc": w_fc, "b_fc": b_fc, "w_fc2": w_fc2, "b_fc2": b_fc2}


def nids_lstm_forward(x, params, hidden_size, num_layers, num_classes):
    B, T, F = x.shape
    H = hidden_size
    HP = _round_up(H, LANE)                  # lane-padded hidden width
    BP = _round_up(B, SUBLANE)               # sublane-padded batch
    FCP = _round_up(FC_DIM, LANE)            # lane-padded fc width
    CP = _round_up(num_classes, LANE)        # lane-padded output width

    # Time-major slab: row r = t*BP + b  ->  x[b, t, :] (rows b >= B are zero and
    # discarded).  Reshape/transpose/pad happen in plain XLA (wrapper), so the
    # kernel only ever sees (8,128)-aligned lane/sublane-dense slabs.
    x_tb = jnp.transpose(x, (1, 0, 2)).astype(jnp.float32)        # (T, B, F)
    x_tb = jnp.pad(x_tb, ((0, 0), (0, BP - B), (0, 0)))           # (T, BP, F)
    x_slab = x_tb.reshape(T * BP, F)

    inputs = [x_slab]
    for l, (w_ih, w_hh, b_ih, b_hh) in enumerate(params["lstm"]):
        in_dim = F if l == 0 else H
        in_dim_p = F if l == 0 else HP
        w_ih_T = _pad_gate_cols(w_ih.T, H, HP)                      # (in_dim, 4HP)
        w_ih_T = jnp.pad(w_ih_T, ((0, in_dim_p - in_dim), (0, 0)))  # (in_dim_p, 4HP)
        w_hh_T = _pad_gate_cols(w_hh.T, H, HP)                      # (H, 4HP)
        w_hh_T = jnp.pad(w_hh_T, ((0, HP - H), (0, 0)))             # (HP, 4HP)
        bias = _pad_gate_cols((b_ih + b_hh)[None, :], H, HP)        # (1, 4HP)
        inputs += [w_ih_T, w_hh_T, bias]

    w_fc_T = jnp.pad(params["w_fc"].T, ((0, HP - H), (0, FCP - FC_DIM)))        # (HP, FCP)
    b_fc = jnp.pad(params["b_fc"][None, :], ((0, 0), (0, FCP - FC_DIM)))        # (1, FCP)
    w_fc2_T = jnp.pad(params["w_fc2"].T,
                      ((0, FCP - FC_DIM), (0, CP - num_classes)))               # (FCP, CP)
    b_fc2 = jnp.pad(params["b_fc2"][None, :], ((0, 0), (0, CP - num_classes)))  # (1, CP)
    inputs += [w_fc_T, b_fc, w_fc2_T, b_fc2]

    kernel = _make_nids_lstm_kernel(num_layers, T, BP, HP)

    # Actual footprint is ~1 MiB here; request 2x + headroom (never the whole VMEM).
    in_bytes = sum(int(a.size) * a.dtype.itemsize for a in inputs)
    out_bytes = BP * CP * 4
    vmem_limit = max(2 * (in_bytes + out_bytes) + (2 << 20), 4 << 20)

    vmem = pl.BlockSpec(memory_space=pltpu.MemorySpace.VMEM)
    out_p = pl.pallas_call(
        kernel,
        out_shape=jax.ShapeDtypeStruct((BP, CP), jnp.float32),
        in_specs=[vmem] * len(inputs),
        out_specs=vmem,
        compiler_params=pltpu.CompilerParams(vmem_limit_bytes=int(vmem_limit)),
    )(*inputs)

    # Full-vreg (BP, CP) slab inside the kernel; slice real batch/classes outside.
    return out_p[:B, :num_classes]


def reference_forward(x, params, hidden_size):
    """Pure-JAX reference mirroring PyTorch nn.LSTM + fc + fc2 (eval mode)."""
    H = hidden_size
    h_in = x.astype(jnp.float32)
    for (w_ih, w_hh, b_ih, b_hh) in params["lstm"]:
        B, T, _ = h_in.shape
        h = jnp.zeros((B, H), jnp.float32)
        c = jnp.zeros((B, H), jnp.float32)
        outs = []
        for t in range(T):
            gates = h_in[:, t] @ w_ih.T + h @ w_hh.T + b_ih + b_hh
            i_g = jax.nn.sigmoid(gates[:, 0 * H:1 * H])
            f_g = jax.nn.sigmoid(gates[:, 1 * H:2 * H])
            g_g = jnp.tanh(gates[:, 2 * H:3 * H])
            o_g = jax.nn.sigmoid(gates[:, 3 * H:4 * H])
            c = f_g * c + i_g * g_g
            h = o_g * jnp.tanh(c)
            outs.append(h)
        h_in = jnp.stack(outs, axis=1)
    out = h_in[:, -1, :]
    out = out @ params["w_fc"].T + params["b_fc"]
    out = out @ params["w_fc2"].T + params["b_fc2"]
    return out


if __name__ == "__main__":
    # Small, module-consistent shapes.
    batch = 2
    seq_len = 8
    num_features = 16
    hidden_size = 32
    num_layers = 2
    num_classes = 5

    key = jax.random.PRNGKey(0)
    kx, kp = jax.random.split(key)
    x = jax.random.normal(kx, (batch, seq_len, num_features), jnp.float32)
    params = init_params(kp, num_features, hidden_size, num_layers, num_classes)

    out = nids_lstm_forward(x, params, hidden_size, num_layers, num_classes)
    out = jax.block_until_ready(out)

    ref = jax.block_until_ready(reference_forward(x, params, hidden_size))
    assert out.shape == (batch, num_classes), out.shape
    assert jnp.allclose(out, ref, atol=1e-4, rtol=1e-4), (
        f"max abs err = {jnp.max(jnp.abs(out - ref))}"
    )

    print("KERNEL_OK")
</pallas_src>

<mosaic_0001>
module attributes {stable_mosaic.version = 11 : i64} {
  func.func @kernel(%arg0: memref<64x16xf32, #tpu.memory_space<vmem>>, %arg1: memref<16x512xf32, #tpu.memory_space<vmem>>, %arg2: memref<128x512xf32, #tpu.memory_space<vmem>>, %arg3: memref<1x512xf32, #tpu.memory_space<vmem>>, %arg4: memref<128x512xf32, #tpu.memory_space<vmem>>, %arg5: memref<128x512xf32, #tpu.memory_space<vmem>>, %arg6: memref<1x512xf32, #tpu.memory_space<vmem>>, %arg7: memref<128x128xf32, #tpu.memory_space<vmem>>, %arg8: memref<1x128xf32, #tpu.memory_space<vmem>>, %arg9: memref<128x128xf32, #tpu.memory_space<vmem>>, %arg10: memref<1x128xf32, #tpu.memory_space<vmem>>, %arg11: memref<8x128xf32, #tpu.memory_space<vmem>>) attributes {dimension_semantics = [], scalar_prefetch = 0 : i64, scratch_operands = 0 : i64, tpu.core_type = #tpu.core_type<tc>} {
    %c0 = arith.constant 0 : index
    %c0_0 = arith.constant 0 : index
    %0 = vector.load %arg0[%c0, %c0_0] : memref<64x16xf32, #tpu.memory_space<vmem>>, vector<64x16xf32>
    %c0_1 = arith.constant 0 : index
    %c0_2 = arith.constant 0 : index
    %1 = vector.load %arg1[%c0_1, %c0_2] : memref<16x512xf32, #tpu.memory_space<vmem>>, vector<16x512xf32>
    %c0_3 = arith.constant 0 : index
    %c0_4 = arith.constant 0 : index
    %2 = vector.load %arg2[%c0_3, %c0_4] : memref<128x512xf32, #tpu.memory_space<vmem>>, vector<128x512xf32>
    %c0_5 = arith.constant 0 : index
    %c0_6 = arith.constant 0 : index
    %3 = vector.load %arg3[%c0_5, %c0_6] : memref<1x512xf32, #tpu.memory_space<vmem>>, vector<1x512xf32>
    %cst = arith.constant dense<0.000000e+00> : vector<64x512xf32>
    %4 = tpu.matmul %0, %1, %cst {dimension_numbers = #tpu.dot_dimension_numbers<[1], [0], [0], [1], [0, 0, 1, 1], [], []>} : vector<64x16xf32>, vector<16x512xf32>, vector<64x512xf32> -> vector<64x512xf32>
    %5 = vector.broadcast %3 : vector<1x512xf32> to vector<64x512xf32>
    %6 = arith.addf %4, %5 : vector<64x512xf32>
    %cst_7 = arith.constant 0.000000e+00 : f32
    %7 = vector.broadcast %cst_7 : f32 to vector<8x128xf32>
    %cst_8 = arith.constant 0.000000e+00 : f32
    %8 = vector.broadcast %cst_8 : f32 to vector<8x128xf32>
    %9 = vector.extract_strided_slice %6 {offsets = [0, 0], sizes = [8, 512], strides = [1, 1]} : vector<64x512xf32> to vector<8x512xf32>
    %cst_9 = arith.constant dense<0.000000e+00> : vector<8x512xf32>
    %10 = tpu.matmul %7, %2, %cst_9 {dimension_numbers = #tpu.dot_dimension_numbers<[1], [0], [0], [1], [0, 0, 1, 1], [], []>} : vector<8x128xf32>, vector<128x512xf32>, vector<8x512xf32> -> vector<8x512xf32>
    %11 = arith.addf %9, %10 : vector<8x512xf32>
    %12 = vector.extract_strided_slice %11 {offsets = [0, 0], sizes = [8, 128], strides = [1, 1]} : vector<8x512xf32> to vector<8x128xf32>
    %cst_10 = arith.constant 5.000000e-01 : f32
    %13 = vector.broadcast %cst_10 : f32 to vector<8x128xf32>
    %14 = arith.mulf %13, %12 : vector<8x128xf32>
    %15 = math.tanh %14 : vector<8x128xf32>
    %cst_11 = arith.constant 5.000000e-01 : f32
    %16 = vector.broadcast %cst_11 : f32 to vector<8x128xf32>
    %17 = arith.mulf %16, %15 : vector<8x128xf32>
    %cst_12 = arith.constant 5.000000e-01 : f32
    %18 = vector.broadcast %cst_12 : f32 to vector<8x128xf32>
    %19 = arith.addf %17, %18 : vector<8x128xf32>
    %20 = vector.extract_strided_slice %11 {offsets = [0, 128], sizes = [8, 128], strides = [1, 1]} : vector<8x512xf32> to vector<8x128xf32>
    %cst_13 = arith.constant 5.000000e-01 : f32
    %21 = vector.broadcast %cst_13 : f32 to vector<8x128xf32>
    %22 = arith.mulf %21, %20 : vector<8x128xf32>
    %23 = math.tanh %22 : vector<8x128xf32>
    %cst_14 = arith.constant 5.000000e-01 : f32
    %24 = vector.broadcast %cst_14 : f32 to vector<8x128xf32>
    %25 = arith.mulf %24, %23 : vector<8x128xf32>
    %cst_15 = arith.constant 5.000000e-01 : f32
    %26 = vector.broadcast %cst_15 : f32 to vector<8x128xf32>
    %27 = arith.addf %25, %26 : vector<8x128xf32>
    %28 = vector.extract_strided_slice %11 {offsets = [0, 256], sizes = [8, 128], strides = [1, 1]} : vector<8x512xf32> to vector<8x128xf32>
    %29 = math.tanh %28 : vector<8x128xf32>
    %30 = vector.extract_strided_slice %11 {offsets = [0, 384], sizes = [8, 128], strides = [1, 1]} : vector<8x512xf32> to vector<8x128xf32>
    %cst_16 = arith.constant 5.000000e-01 : f32
    %31 = vector.broadcast %cst_16 : f32 to vector<8x128xf32>
    %32 = arith.mulf %31, %30 : vector<8x128xf32>
    %33 = math.tanh %32 : vector<8x128xf32>
    %cst_17 = arith.constant 5.000000e-01 : f32
    %34 = vector.broadcast %cst_17 : f32 to vector<8x128xf32>
    %35 = arith.mulf %34, %33 : vector<8x128xf32>
    %cst_18 = arith.constant 5.000000e-01 : f32
    %36 = vector.broadcast %cst_18 : f32 to vector<8x128xf32>
    %37 = arith.addf %35, %36 : vector<8x128xf32>
    %38 = arith.mulf %27, %8 : vector<8x128xf32>
    %39 = arith.mulf %19, %29 : vector<8x128xf32>
    %40 = arith.addf %38, %39 : vector<8x128xf32>
    %41 = math.tanh %40 : vector<8x128xf32>
    %42 = arith.mulf %37, %41 : vector<8x128xf32>
    %43 = vector.extract_strided_slice %6 {offsets = [8, 0], sizes = [8, 512], strides = [1, 1]} : vector<64x512xf32> to vector<8x512xf32>
    %cst_19 = arith.constant dense<0.000000e+00> : vector<8x512xf32>
    %44 = tpu.matmul %42, %2, %cst_19 {dimension_numbers = #tpu.dot_dimension_numbers<[1], [0], [0], [1], [0, 0, 1, 1], [], []>} : vector<8x128xf32>, vector<128x512xf32>, vector<8x512xf32> -> vector<8x512xf32>
    %45 = arith.addf %43, %44 : vector<8x512xf32>
    %46 = vector.extract_strided_slice %45 {offsets = [0, 0], sizes = [8, 128], strides = [1, 1]} : vector<8x512xf32> to vector<8x128xf32>
    %cst_20 = arith.constant 5.000000e-01 : f32
    %47 = vector.broadcast %cst_20 : f32 to vector<8x128xf32>
    %48 = arith.mulf %47, %46 : vector<8x128xf32>
    %49 = math.tanh %48 : vector<8x128xf32>
    %cst_21 = arith.constant 5.000000e-01 : f32
    %50 = vector.broadcast %cst_21 : f32 to vector<8x128xf32>
    %51 = arith.mulf %50, %49 : vector<8x128xf32>
    %cst_22 = arith.constant 5.000000e-01 : f32
    %52 = vector.broadcast %cst_22 : f32 to vector<8x128xf32>
    %53 = arith.addf %51, %52 : vector<8x128xf32>
    %54 = vector.extract_strided_slice %45 {offsets = [0, 128], sizes = [8, 128], strides = [1, 1]} : vector<8x512xf32> to vector<8x128xf32>
    %cst_23 = arith.constant 5.000000e-01 : f32
    %55 = vector.broadcast %cst_23 : f32 to vector<8x128xf32>
    %56 = arith.mulf %55, %54 : vector<8x128xf32>
    %57 = math.tanh %56 : vector<8x128xf32>
    %cst_24 = arith.constant 5.000000e-01 : f32
    %58 = vector.broadcast %cst_24 : f32 to vector<8x128xf32>
    %59 = arith.mulf %58, %57 : vector<8x128xf32>
    %cst_25 = arith.constant 5.000000e-01 : f32
    %60 = vector.broadcast %cst_25 : f32 to vector<8x128xf32>
    %61 = arith.addf %59, %60 : vector<8x128xf32>
    %62 = vector.extract_strided_slice %45 {offsets = [0, 256], sizes = [8, 128], strides = [1, 1]} : vector<8x512xf32> to vector<8x128xf32>
    %63 = math.tanh %62 : vector<8x128xf32>
    %64 = vector.extract_strided_slice %45 {offsets = [0, 384], sizes = [8, 128], strides = [1, 1]} : vector<8x512xf32> to vector<8x128xf32>
    %cst_26 = arith.constant 5.000000e-01 : f32
    %65 = vector.broadcast %cst_26 : f32 to vector<8x128xf32>
    %66 = arith.mulf %65, %64 : vector<8x128xf32>
    %67 = math.tanh %66 : vector<8x128xf32>
    %cst_27 = arith.constant 5.000000e-01 : f32
    %68 = vector.broadcast %cst_27 : f32 to vector<8x128xf32>
    %69 = arith.mulf %68, %67 : vector<8x128xf32>
    %cst_28 = arith.constant 5.000000e-01 : f32
    %70 = vector.broadcast %cst_28 : f32 to vector<8x128xf32>
    %71 = arith.addf %69, %70 : vector<8x128xf32>
    %72 = arith.mulf %61, %40 : vector<8x128xf32>
    %73 = arith.mulf %53, %63 : vector<8x128xf32>
    %74 = arith.addf %72, %73 : vector<8x128xf32>
    %75 = math.tanh %74 : vector<8x128xf32>
    %76 = arith.mulf %71, %75 : vector<8x128xf32>
    %77 = vector.extract_strided_slice %6 {offsets = [16, 0], sizes = [8, 512], strides = [1, 1]} : vector<64x512xf32> to vector<8x512xf32>
    %cst_29 = arith.constant dense<0.000000e+00> : vector<8x512xf32>
    %78 = tpu.matmul %76, %2, %cst_29 {dimension_numbers = #tpu.dot_dimension_numbers<[1], [0], [0], [1], [0, 0, 1, 1], [], []>} : vector<8x128xf32>, vector<128x512xf32>, vector<8x512xf32> -> vector<8x512xf32>
    %79 = arith.addf %77, %78 : vector<8x512xf32>
    %80 = vector.extract_strided_slice %79 {offsets = [0, 0], sizes = [8, 128], strides = [1, 1]} : vector<8x512xf32> to vector<8x128xf32>
    %cst_30 = arith.constant 5.000000e-01 : f32
    %81 = vector.broadcast %cst_30 : f32 to vector<8x128xf32>
    %82 = arith.mulf %81, %80 : vector<8x128xf32>
    %83 = math.tanh %82 : vector<8x128xf32>
    %cst_31 = arith.constant 5.000000e-01 : f32
    %84 = vector.broadcast %cst_31 : f32 to vector<8x128xf32>
    %85 = arith.mulf %84, %83 : vector<8x128xf32>
    %cst_32 = arith.constant 5.000000e-01 : f32
    %86 = vector.broadcast %cst_32 : f32 to vector<8x128xf32>
    %87 = arith.addf %85, %86 : vector<8x128xf32>
    %88 = vector.extract_strided_slice %79 {offsets = [0, 128], sizes = [8, 128], strides = [1, 1]} : vector<8x512xf32> to vector<8x128xf32>
    %cst_33 = arith.constant 5.000000e-01 : f32
    %89 = vector.broadcast %cst_33 : f32 to vector<8x128xf32>
    %90 = arith.mulf %89, %88 : vector<8x128xf32>
    %91 = math.tanh %90 : vector<8x128xf32>
    %cst_34 = arith.constant 5.000000e-01 : f32
    %92 = vector.broadcast %cst_34 : f32 to vector<8x128xf32>
    %93 = arith.mulf %92, %91 : vector<8x128xf32>
    %cst_35 = arith.constant 5.000000e-01 : f32
    %94 = vector.broadcast %cst_35 : f32 to vector<8x128xf32>
    %95 = arith.addf %93, %94 : vector<8x128xf32>
    %96 = vector.extract_strided_slice %79 {offsets = [0, 256], sizes = [8, 128], strides = [1, 1]} : vector<8x512xf32> to vector<8x128xf32>
    %97 = math.tanh %96 : vector<8x128xf32>
    %98 = vector.extract_strided_slice %79 {offsets = [0, 384], sizes = [8, 128], strides = [1, 1]} : vector<8x512xf32> to vector<8x128xf32>
    %cst_36 = arith.constant 5.000000e-01 : f32
    %99 = vector.broadcast %cst_36 : f32 to vector<8x128xf32>
    %100 = arith.mulf %99, %98 : vector<8x128xf32>
    %101 = math.tanh %100 : vector<8x128xf32>
    %cst_37 = arith.constant 5.000000e-01 : f32
    %102 = vector.broadcast %cst_37 : f32 to vector<8x128xf32>
    %103 = arith.mulf %102, %101 : vector<8x128xf32>
    %cst_38 = arith.constant 5.000000e-01 : f32
    %104 = vector.broadcast %cst_38 : f32 to vector<8x128xf32>
    %105 = arith.addf %103, %104 : vector<8x128xf32>
    %106 = arith.mulf %95, %74 : vector<8x128xf32>
    %107 = arith.mulf %87, %97 : vector<8x128xf32>
    %108 = arith.addf %106, %107 : vector<8x128xf32>
    %109 = math.tanh %108 : vector<8x128xf32>
    %110 = arith.mulf %105, %109 : vector<8x128xf32>
    %111 = vector.extract_strided_slice %6 {offsets = [24, 0], sizes = [8, 512], strides = [1, 1]} : vector<64x512xf32> to vector<8x512xf32>
    %cst_39 = arith.constant dense<0.000000e+00> : vector<8x512xf32>
    %112 = tpu.matmul %110, %2, %cst_39 {dimension_numbers = #tpu.dot_dimension_numbers<[1], [0], [0], [1], [0, 0, 1, 1], [], []>} : vector<8x128xf32>, vector<128x512xf32>, vector<8x512xf32> -> vector<8x512xf32>
    %113 = arith.addf %111, %112 : vector<8x512xf32>
    %114 = vector.extract_strided_slice %113 {offsets = [0, 0], sizes = [8, 128], strides = [1, 1]} : vector<8x512xf32> to vector<8x128xf32>
    %cst_40 = arith.constant 5.000000e-01 : f32
    %115 = vector.broadcast %cst_40 : f32 to vector<8x128xf32>
    %116 = arith.mulf %115, %114 : vector<8x128xf32>
    %117 = math.tanh %116 : vector<8x128xf32>
    %cst_41 = arith.constant 5.000000e-01 : f32
    %118 = vector.broadcast %cst_41 : f32 to vector<8x128xf32>
    %119 = arith.mulf %118, %117 : vector<8x128xf32>
    %cst_42 = arith.constant 5.000000e-01 : f32
    %120 = vector.broadcast %cst_42 : f32 to vector<8x128xf32>
    %121 = arith.addf %119, %120 : vector<8x128xf32>
    %122 = vector.extract_strided_slice %113 {offsets = [0, 128], sizes = [8, 128], strides = [1, 1]} : vector<8x512xf32> to vector<8x128xf32>
    %cst_43 = arith.constant 5.000000e-01 : f32
    %123 = vector.broadcast %cst_43 : f32 to vector<8x128xf32>
    %124 = arith.mulf %123, %122 : vector<8x128xf32>
    %125 = math.tanh %124 : vector<8x128xf32>
    %cst_44 = arith.constant 5.000000e-01 : f32
    %126 = vector.broadcast %cst_44 : f32 to vector<8x128xf32>
    %127 = arith.mulf %126, %125 : vector<8x128xf32>
    %cst_45 = arith.constant 5.000000e-01 : f32
    %128 = vector.broadcast %cst_45 : f32 to vector<8x128xf32>
    %129 = arith.addf %127, %128 : vector<8x128xf32>
    %130 = vector.extract_strided_slice %113 {offsets = [0, 256], sizes = [8, 128], strides = [1, 1]} : vector<8x512xf32> to vector<8x128xf32>
    %131 = math.tanh %130 : vector<8x128xf32>
    %132 = vector.extract_strided_slice %113 {offsets = [0, 384], sizes = [8, 128], strides = [1, 1]} : vector<8x512xf32> to vector<8x128xf32>
    %cst_46 = arith.constant 5.000000e-01 : f32
    %133 = vector.broadcast %cst_46 : f32 to vector<8x128xf32>
    %134 = arith.mulf %133, %132 : vector<8x128xf32>
    %135 = math.tanh %134 : vector<8x128xf32>
    %cst_47 = arith.constant 5.000000e-01 : f32
    %136 = vector.broadcast %cst_47 : f32 to vector<8x128xf32>
    %137 = arith.mulf %136, %135 : vector<8x128xf32>
    %cst_48 = arith.constant 5.000000e-01 : f32
    %138 = vector.broadcast %cst_48 : f32 to vector<8x128xf32>
    %139 = arith.addf %137, %138 : vector<8x128xf32>
    %140 = arith.mulf %129, %108 : vector<8x128xf32>
    %141 = arith.mulf %121, %131 : vector<8x128xf32>
    %142 = arith.addf %140, %141 : vector<8x128xf32>
    %143 = math.tanh %142 : vector<8x128xf32>
    %144 = arith.mulf %139, %143 : vector<8x128xf32>
    %145 = vector.extract_strided_slice %6 {offsets = [32, 0], sizes = [8, 512], strides = [1, 1]} : vector<64x512xf32> to vector<8x512xf32>
    %cst_49 = arith.constant dense<0.000000e+00> : vector<8x512xf32>
    %146 = tpu.matmul %144, %2, %cst_49 {dimension_numbers = #tpu.dot_dimension_numbers<[1], [0], [0], [1], [0, 0, 1, 1], [], []>} : vector<8x128xf32>, vector<128x512xf32>, vector<8x512xf32> -> vector<8x512xf32>
    %147 = arith.addf %145, %146 : vector<8x512xf32>
    %148 = vector.extract_strided_slice %147 {offsets = [0, 0], sizes = [8, 128], strides = [1, 1]} : vector<8x512xf32> to vector<8x128xf32>
    %cst_50 = arith.constant 5.000000e-01 : f32
    %149 = vector.broadcast %cst_50 : f32 to vector<8x128xf32>
    %150 = arith.mulf %149, %148 : vector<8x128xf32>
    %151 = math.tanh %150 : vector<8x128xf32>
    %cst_51 = arith.constant 5.000000e-01 : f32
    %152 = vector.broadcast %cst_51 : f32 to vector<8x128xf32>
    %153 = arith.mulf %152, %151 : vector<8x128xf32>
    %cst_52 = arith.constant 5.000000e-01 : f32
    %154 = vector.broadcast %cst_52 : f32 to vector<8x128xf32>
    %155 = arith.addf %153, %154 : vector<8x128xf32>
    %156 = vector.extract_strided_slice %147 {offsets = [0, 128], sizes = [8, 128], strides = [1, 1]} : vector<8x512xf32> to vector<8x128xf32>
    %cst_53 = arith.constant 5.000000e-01 : f32
    %157 = vector.broadcast %cst_53 : f32 to vector<8x128xf32>
    %158 = arith.mulf %157, %156 : vector<8x128xf32>
    %159 = math.tanh %158 : vector<8x128xf32>
    %cst_54 = arith.constant 5.000000e-01 : f32
    %160 = vector.broadcast %cst_54 : f32 to vector<8x128xf32>
    %161 = arith.mulf %160, %159 : vector<8x128xf32>
    %cst_55 = arith.constant 5.000000e-01 : f32
    %162 = vector.broadcast %cst_55 : f32 to vector<8x128xf32>
    %163 = arith.addf %161, %162 : vector<8x128xf32>
    %164 = vector.extract_strided_slice %147 {offsets = [0, 256], sizes = [8, 128], strides = [1, 1]} : vector<8x512xf32> to vector<8x128xf32>
    %165 = math.tanh %164 : vector<8x128xf32>
    %166 = vector.extract_strided_slice %147 {offsets = [0, 384], sizes = [8, 128], strides = [1, 1]} : vector<8x512xf32> to vector<8x128xf32>
    %cst_56 = arith.constant 5.000000e-01 : f32
    %167 = vector.broadcast %cst_56 : f32 to vector<8x128xf32>
    %168 = arith.mulf %167, %166 : vector<8x128xf32>
    %169 = math.tanh %168 : vector<8x128xf32>
    %cst_57 = arith.constant 5.000000e-01 : f32
    %170 = vector.broadcast %cst_57 : f32 to vector<8x128xf32>
    %171 = arith.mulf %170, %169 : vector<8x128xf32>
    %cst_58 = arith.constant 5.000000e-01 : f32
    %172 = vector.broadcast %cst_58 : f32 to vector<8x128xf32>
    %173 = arith.addf %171, %172 : vector<8x128xf32>
    %174 = arith.mulf %163, %142 : vector<8x128xf32>
    %175 = arith.mulf %155, %165 : vector<8x128xf32>
    %176 = arith.addf %174, %175 : vector<8x128xf32>
    %177 = math.tanh %176 : vector<8x128xf32>
    %178 = arith.mulf %173, %177 : vector<8x128xf32>
    %179 = vector.extract_strided_slice %6 {offsets = [40, 0], sizes = [8, 512], strides = [1, 1]} : vector<64x512xf32> to vector<8x512xf32>
    %cst_59 = arith.constant dense<0.000000e+00> : vector<8x512xf32>
    %180 = tpu.matmul %178, %2, %cst_59 {dimension_numbers = #tpu.dot_dimension_numbers<[1], [0], [0], [1], [0, 0, 1, 1], [], []>} : vector<8x128xf32>, vector<128x512xf32>, vector<8x512xf32> -> vector<8x512xf32>
    %181 = arith.addf %179, %180 : vector<8x512xf32>
    %182 = vector.extract_strided_slice %181 {offsets = [0, 0], sizes = [8, 128], strides = [1, 1]} : vector<8x512xf32> to vector<8x128xf32>
    %cst_60 = arith.constant 5.000000e-01 : f32
    %183 = vector.broadcast %cst_60 : f32 to vector<8x128xf32>
    %184 = arith.mulf %183, %182 : vector<8x128xf32>
    %185 = math.tanh %184 : vector<8x128xf32>
    %cst_61 = arith.constant 5.000000e-01 : f32
    %186 = vector.broadcast %cst_61 : f32 to vector<8x128xf32>
    %187 = arith.mulf %186, %185 : vector<8x128xf32>
    %cst_62 = arith.constant 5.000000e-01 : f32
    %188 = vector.broadcast %cst_62 : f32 to vector<8x128xf32>
    %189 = arith.addf %187, %188 : vector<8x128xf32>
    %190 = vector.extract_strided_slice %181 {offsets = [0, 128], sizes = [8, 128], strides = [1, 1]} : vector<8x512xf32> to vector<8x128xf32>
    %cst_63 = arith.constant 5.000000e-01 : f32
    %191 = vector.broadcast %cst_63 : f32 to vector<8x128xf32>
    %192 = arith.mulf %191, %190 : vector<8x128xf32>
    %193 = math.tanh %192 : vector<8x128xf32>
    %cst_64 = arith.constant 5.000000e-01 : f32
    %194 = vector.broadcast %cst_64 : f32 to vector<8x128xf32>
    %195 = arith.mulf %194, %193 : vector<8x128xf32>
    %cst_65 = arith.constant 5.000000e-01 : f32
    %196 = vector.broadcast %cst_65 : f32 to vector<8x128xf32>
    %197 = arith.addf %195, %196 : vector<8x128xf32>
    %198 = vector.extract_strided_slice %181 {offsets = [0, 256], sizes = [8, 128], strides = [1, 1]} : vector<8x512xf32> to vector<8x128xf32>
    %199 = math.tanh %198 : vector<8x128xf32>
    %200 = vector.extract_strided_slice %181 {offsets = [0, 384], sizes = [8, 128], strides = [1, 1]} : vector<8x512xf32> to vector<8x128xf32>
    %cst_66 = arith.constant 5.000000e-01 : f32
    %201 = vector.broadcast %cst_66 : f32 to vector<8x128xf32>
    %202 = arith.mulf %201, %200 : vector<8x128xf32>
    %203 = math.tanh %202 : vector<8x128xf32>
    %cst_67 = arith.constant 5.000000e-01 : f32
    %204 = vector.broadcast %cst_67 : f32 to vector<8x128xf32>
    %205 = arith.mulf %204, %203 : vector<8x128xf32>
    %cst_68 = arith.constant 5.000000e-01 : f32
    %206 = vector.broadcast %cst_68 : f32 to vector<8x128xf32>
    %207 = arith.addf %205, %206 : vector<8x128xf32>
    %208 = arith.mulf %197, %176 : vector<8x128xf32>
    %209 = arith.mulf %189, %199 : vector<8x128xf32>
    %210 = arith.addf %208, %209 : vector<8x128xf32>
    %211 = math.tanh %210 : vector<8x128xf32>
    %212 = arith.mulf %207, %211 : vector<8x128xf32>
    %213 = vector.extract_strided_slice %6 {offsets = [48, 0], sizes = [8, 512], strides = [1, 1]} : vector<64x512xf32> to vector<8x512xf32>
    %cst_69 = arith.constant dense<0.000000e+00> : vector<8x512xf32>
    %214 = tpu.matmul %212, %2, %cst_69 {dimension_numbers = #tpu.dot_dimension_numbers<[1], [0], [0], [1], [0, 0, 1, 1], [], []>} : vector<8x128xf32>, vector<128x512xf32>, vector<8x512xf32> -> vector<8x512xf32>
    %215 = arith.addf %213, %214 : vector<8x512xf32>
    %216 = vector.extract_strided_slice %215 {offsets = [0, 0], sizes = [8, 128], strides = [1, 1]} : vector<8x512xf32> to vector<8x128xf32>
    %cst_70 = arith.constant 5.000000e-01 : f32
    %217 = vector.broadcast %cst_70 : f32 to vector<8x128xf32>
    %218 = arith.mulf %217, %216 : vector<8x128xf32>
    %219 = math.tanh %218 : vector<8x128xf32>
    %cst_71 = arith.constant 5.000000e-01 : f32
    %220 = vector.broadcast %cst_71 : f32 to vector<8x128xf32>
    %221 = arith.mulf %220, %219 : vector<8x128xf32>
    %cst_72 = arith.constant 5.000000e-01 : f32
    %222 = vector.broadcast %cst_72 : f32 to vector<8x128xf32>
    %223 = arith.addf %221, %222 : vector<8x128xf32>
    %224 = vector.extract_strided_slice %215 {offsets = [0, 128], sizes = [8, 128], strides = [1, 1]} : vector<8x512xf32> to vector<8x128xf32>
    %cst_73 = arith.constant 5.000000e-01 : f32
    %225 = vector.broadcast %cst_73 : f32 to vector<8x128xf32>
    %226 = arith.mulf %225, %224 : vector<8x128xf32>
    %227 = math.tanh %226 : vector<8x128xf32>
    %cst_74 = arith.constant 5.000000e-01 : f32
    %228 = vector.broadcast %cst_74 : f32 to vector<8x128xf32>
    %229 = arith.mulf %228, %227 : vector<8x128xf32>
    %cst_75 = arith.constant 5.000000e-01 : f32
    %230 = vector.broadcast %cst_75 : f32 to vector<8x128xf32>
    %231 = arith.addf %229, %230 : vector<8x128xf32>
    %232 = vector.extract_strided_slice %215 {offsets = [0, 256], sizes = [8, 128], strides = [1, 1]} : vector<8x512xf32> to vector<8x128xf32>
    %233 = math.tanh %232 : vector<8x128xf32>
    %234 = vector.extract_strided_slice %215 {offsets = [0, 384], sizes = [8, 128], strides = [1, 1]} : vector<8x512xf32> to vector<8x128xf32>
    %cst_76 = arith.constant 5.000000e-01 : f32
    %235 = vector.broadcast %cst_76 : f32 to vector<8x128xf32>
    %236 = arith.mulf %235, %234 : vector<8x128xf32>
    %237 = math.tanh %236 : vector<8x128xf32>
    %cst_77 = arith.constant 5.000000e-01 : f32
    %238 = vector.broadcast %cst_77 : f32 to vector<8x128xf32>
    %239 = arith.mulf %238, %237 : vector<8x128xf32>
    %cst_78 = arith.constant 5.000000e-01 : f32
    %240 = vector.broadcast %cst_78 : f32 to vector<8x128xf32>
    %241 = arith.addf %239, %240 : vector<8x128xf32>
    %242 = arith.mulf %231, %210 : vector<8x128xf32>
    %243 = arith.mulf %223, %233 : vector<8x128xf32>
    %244 = arith.addf %242, %243 : vector<8x128xf32>
    %245 = math.tanh %244 : vector<8x128xf32>
    %246 = arith.mulf %241, %245 : vector<8x128xf32>
    %247 = vector.extract_strided_slice %6 {offsets = [56, 0], sizes = [8, 512], strides = [1, 1]} : vector<64x512xf32> to vector<8x512xf32>
    %cst_79 = arith.constant dense<0.000000e+00> : vector<8x512xf32>
    %248 = tpu.matmul %246, %2, %cst_79 {dimension_numbers = #tpu.dot_dimension_numbers<[1], [0], [0], [1], [0, 0, 1, 1], [], []>} : vector<8x128xf32>, vector<128x512xf32>, vector<8x512xf32> -> vector<8x512xf32>
    %249 = arith.addf %247, %248 : vector<8x512xf32>
    %250 = vector.extract_strided_slice %249 {offsets = [0, 0], sizes = [8, 128], strides = [1, 1]} : vector<8x512xf32> to vector<8x128xf32>
    %cst_80 = arith.constant 5.000000e-01 : f32
    %251 = vector.broadcast %cst_80 : f32 to vector<8x128xf32>
    %252 = arith.mulf %251, %250 : vector<8x128xf32>
    %253 = math.tanh %252 : vector<8x128xf32>
    %cst_81 = arith.constant 5.000000e-01 : f32
    %254 = vector.broadcast %cst_81 : f32 to vector<8x128xf32>
    %255 = arith.mulf %254, %253 : vector<8x128xf32>
    %cst_82 = arith.constant 5.000000e-01 : f32
    %256 = vector.broadcast %cst_82 : f32 to vector<8x128xf32>
    %257 = arith.addf %255, %256 : vector<8x128xf32>
    %258 = vector.extract_strided_slice %249 {offsets = [0, 128], sizes = [8, 128], strides = [1, 1]} : vector<8x512xf32> to vector<8x128xf32>
    %cst_83 = arith.constant 5.000000e-01 : f32
    %259 = vector.broadcast %cst_83 : f32 to vector<8x128xf32>
    %260 = arith.mulf %259, %258 : vector<8x128xf32>
    %261 = math.tanh %260 : vector<8x128xf32>
    %cst_84 = arith.constant 5.000000e-01 : f32
    %262 = vector.broadcast %cst_84 : f32 to vector<8x128xf32>
    %263 = arith.mulf %262, %261 : vector<8x128xf32>
    %cst_85 = arith.constant 5.000000e-01 : f32
    %264 = vector.broadcast %cst_85 : f32 to vector<8x128xf32>
    %265 = arith.addf %263, %264 : vector<8x128xf32>
    %266 = vector.extract_strided_slice %249 {offsets = [0, 256], sizes = [8, 128], strides = [1, 1]} : vector<8x512xf32> to vector<8x128xf32>
    %267 = math.tanh %266 : vector<8x128xf32>
    %268 = vector.extract_strided_slice %249 {offsets = [0, 384], sizes = [8, 128], strides = [1, 1]} : vector<8x512xf32> to vector<8x128xf32>
    %cst_86 = arith.constant 5.000000e-01 : f32
    %269 = vector.broadcast %cst_86 : f32 to vector<8x128xf32>
    %270 = arith.mulf %269, %268 : vector<8x128xf32>
    %271 = math.tanh %270 : vector<8x128xf32>
    %cst_87 = arith.constant 5.000000e-01 : f32
    %272 = vector.broadcast %cst_87 : f32 to vector<8x128xf32>
    %273 = arith.mulf %272, %271 : vector<8x128xf32>
    %cst_88 = arith.constant 5.000000e-01 : f32
    %274 = vector.broadcast %cst_88 : f32 to vector<8x128xf32>
    %275 = arith.addf %273, %274 : vector<8x128xf32>
    %276 = arith.mulf %265, %244 : vector<8x128xf32>
    %277 = arith.mulf %257, %267 : vector<8x128xf32>
    %278 = arith.addf %276, %277 : vector<8x128xf32>
    %279 = math.tanh %278 : vector<8x128xf32>
    %280 = arith.mulf %275, %279 : vector<8x128xf32>
    %281 = tpu.concatenate %42, %76, %110, %144, %178, %212, %246, %280 in 0 : vector<8x128xf32>, vector<8x128xf32>, vector<8x128xf32>, vector<8x128xf32>, vector<8x128xf32>, vector<8x128xf32>, vector<8x128xf32>, vector<8x128xf32> -> vector<64x128xf32>
    %c0_89 = arith.constant 0 : index
    %c0_90 = arith.constant 0 : index
    %282 = vector.load %arg4[%c0_89, %c0_90] : memref<128x512xf32, #tpu.memory_space<vmem>>, vector<128x512xf32>
    %c0_91 = arith.constant 0 : index
    %c0_92 = arith.constant 0 : index
    %283 = vector.load %arg5[%c0_91, %c0_92] : memref<128x512xf32, #tpu.memory_space<vmem>>, vector<128x512xf32>
    %c0_93 = arith.constant 0 : index
    %c0_94 = arith.constant 0 : index
    %284 = vector.load %arg6[%c0_93, %c0_94] : memref<1x512xf32, #tpu.memory_space<vmem>>, vector<1x512xf32>
    %cst_95 = arith.constant dense<0.000000e+00> : vector<64x512xf32>
    %285 = tpu.matmul %281, %282, %cst_95 {dimension_numbers = #tpu.dot_dimension_numbers<[1], [0], [0], [1], [0, 0, 1, 1], [], []>} : vector<64x128xf32>, vector<128x512xf32>, vector<64x512xf32> -> vector<64x512xf32>
    %286 = vector.broadcast %284 : vector<1x512xf32> to vector<64x512xf32>
    %287 = arith.addf %285, %286 : vector<64x512xf32>
    %cst_96 = arith.constant 0.000000e+00 : f32
    %288 = vector.broadcast %cst_96 : f32 to vector<8x128xf32>
    %cst_97 = arith.constant 0.000000e+00 : f32
    %289 = vector.broadcast %cst_97 : f32 to vector<8x128xf32>
    %290 = vector.extract_strided_slice %287 {offsets = [0, 0], sizes = [8, 512], strides = [1, 1]} : vector<64x512xf32> to vector<8x512xf32>
    %cst_98 = arith.constant dense<0.000000e+00> : vector<8x512xf32>
    %291 = tpu.matmul %288, %283, %cst_98 {dimension_numbers = #tpu.dot_dimension_numbers<[1], [0], [0], [1], [0, 0, 1, 1], [], []>} : vector<8x128xf32>, vector<128x512xf32>, vector<8x512xf32> -> vector<8x512xf32>
    %292 = arith.addf %290, %291 : vector<8x512xf32>
    %293 = vector.extract_strided_slice %292 {offsets = [0, 0], sizes = [8, 128], strides = [1, 1]} : vector<8x512xf32> to vector<8x128xf32>
    %cst_99 = arith.constant 5.000000e-01 : f32
    %294 = vector.broadcast %cst_99 : f32 to vector<8x128xf32>
    %295 = arith.mulf %294, %293 : vector<8x128xf32>
    %296 = math.tanh %295 : vector<8x128xf32>
    %cst_100 = arith.constant 5.000000e-01 : f32
    %297 = vector.broadcast %cst_100 : f32 to vector<8x128xf32>
    %298 = arith.mulf %297, %296 : vector<8x128xf32>
    %cst_101 = arith.constant 5.000000e-01 : f32
    %299 = vector.broadcast %cst_101 : f32 to vector<8x128xf32>
    %300 = arith.addf %298, %299 : vector<8x128xf32>
    %301 = vector.extract_strided_slice %292 {offsets = [0, 128], sizes = [8, 128], strides = [1, 1]} : vector<8x512xf32> to vector<8x128xf32>
    %cst_102 = arith.constant 5.000000e-01 : f32
    %302 = vector.broadcast %cst_102 : f32 to vector<8x128xf32>
    %303 = arith.mulf %302, %301 : vector<8x128xf32>
    %304 = math.tanh %303 : vector<8x128xf32>
    %cst_103 = arith.constant 5.000000e-01 : f32
    %305 = vector.broadcast %cst_103 : f32 to vector<8x128xf32>
    %306 = arith.mulf %305, %304 : vector<8x128xf32>
    %cst_104 = arith.constant 5.000000e-01 : f32
    %307 = vector.broadcast %cst_104 : f32 to vector<8x128xf32>
    %308 = arith.addf %306, %307 : vector<8x128xf32>
    %309 = vector.extract_strided_slice %292 {offsets = [0, 256], sizes = [8, 128], strides = [1, 1]} : vector<8x512xf32> to vector<8x128xf32>
    %310 = math.tanh %309 : vector<8x128xf32>
    %311 = vector.extract_strided_slice %292 {offsets = [0, 384], sizes = [8, 128], strides = [1, 1]} : vector<8x512xf32> to vector<8x128xf32>
    %cst_105 = arith.constant 5.000000e-01 : f32
    %312 = vector.broadcast %cst_105 : f32 to vector<8x128xf32>
    %313 = arith.mulf %312, %311 : vector<8x128xf32>
    %314 = math.tanh %313 : vector<8x128xf32>
    %cst_106 = arith.constant 5.000000e-01 : f32
    %315 = vector.broadcast %cst_106 : f32 to vector<8x128xf32>
    %316 = arith.mulf %315, %314 : vector<8x128xf32>
    %cst_107 = arith.constant 5.000000e-01 : f32
    %317 = vector.broadcast %cst_107 : f32 to vector<8x128xf32>
    %318 = arith.addf %316, %317 : vector<8x128xf32>
    %319 = arith.mulf %308, %289 : vector<8x128xf32>
    %320 = arith.mulf %300, %310 : vector<8x128xf32>
    %321 = arith.addf %319, %320 : vector<8x128xf32>
    %322 = math.tanh %321 : vector<8x128xf32>
    %323 = arith.mulf %318, %322 : vector<8x128xf32>
    %324 = vector.extract_strided_slice %287 {offsets = [8, 0], sizes = [8, 512], strides = [1, 1]} : vector<64x512xf32> to vector<8x512xf32>
    %cst_108 = arith.constant dense<0.000000e+00> : vector<8x512xf32>
    %325 = tpu.matmul %323, %283, %cst_108 {dimension_numbers = #tpu.dot_dimension_numbers<[1], [0], [0], [1], [0, 0, 1, 1], [], []>} : vector<8x128xf32>, vector<128x512xf32>, vector<8x512xf32> -> vector<8x512xf32>
    %326 = arith.addf %324, %325 : vector<8x512xf32>
    %327 = vector.extract_strided_slice %326 {offsets = [0, 0], sizes = [8, 128], strides = [1, 1]} : vector<8x512xf32> to vector<8x128xf32>
    %cst_109 = arith.constant 5.000000e-01 : f32
    %328 = vector.broadcast %cst_109 : f32 to vector<8x128xf32>
    %329 = arith.mulf %328, %327 : vector<8x128xf32>
    %330 = math.tanh %329 : vector<8x128xf32>
    %cst_110 = arith.constant 5.000000e-01 : f32
    %331 = vector.broadcast %cst_110 : f32 to vector<8x128xf32>
    %332 = arith.mulf %331, %330 : vector<8x128xf32>
    %cst_111 = arith.constant 5.000000e-01 : f32
    %333 = vector.broadcast %cst_111 : f32 to vector<8x128xf32>
    %334 = arith.addf %332, %333 : vector<8x128xf32>
    %335 = vector.extract_strided_slice %326 {offsets = [0, 128], sizes = [8, 128], strides = [1, 1]} : vector<8x512xf32> to vector<8x128xf32>
    %cst_112 = arith.constant 5.000000e-01 : f32
    %336 = vector.broadcast %cst_112 : f32 to vector<8x128xf32>
    %337 = arith.mulf %336, %335 : vector<8x128xf32>
    %338 = math.tanh %337 : vector<8x128xf32>
    %cst_113 = arith.constant 5.000000e-01 : f32
    %339 = vector.broadcast %cst_113 : f32 to vector<8x128xf32>
    %340 = arith.mulf %339, %338 : vector<8x128xf32>
    %cst_114 = arith.constant 5.000000e-01 : f32
    %341 = vector.broadcast %cst_114 : f32 to vector<8x128xf32>
    %342 = arith.addf %340, %341 : vector<8x128xf32>
    %343 = vector.extract_strided_slice %326 {offsets = [0, 256], sizes = [8, 128], strides = [1, 1]} : vector<8x512xf32> to vector<8x128xf32>
    %344 = math.tanh %343 : vector<8x128xf32>
    %345 = vector.extract_strided_slice %326 {offsets = [0, 384], sizes = [8, 128], strides = [1, 1]} : vector<8x512xf32> to vector<8x128xf32>
    %cst_115 = arith.constant 5.000000e-01 : f32
    %346 = vector.broadcast %cst_115 : f32 to vector<8x128xf32>
    %347 = arith.mulf %346, %345 : vector<8x128xf32>
    %348 = math.tanh %347 : vector<8x128xf32>
    %cst_116 = arith.constant 5.000000e-01 : f32
    %349 = vector.broadcast %cst_116 : f32 to vector<8x128xf32>
    %350 = arith.mulf %349, %348 : vector<8x128xf32>
    %cst_117 = arith.constant 5.000000e-01 : f32
    %351 = vector.broadcast %cst_117 : f32 to vector<8x128xf32>
    %352 = arith.addf %350, %351 : vector<8x128xf32>
    %353 = arith.mulf %342, %321 : vector<8x128xf32>
    %354 = arith.mulf %334, %344 : vector<8x128xf32>
    %355 = arith.addf %353, %354 : vector<8x128xf32>
    %356 = math.tanh %355 : vector<8x128xf32>
    %357 = arith.mulf %352, %356 : vector<8x128xf32>
    %358 = vector.extract_strided_slice %287 {offsets = [16, 0], sizes = [8, 512], strides = [1, 1]} : vector<64x512xf32> to vector<8x512xf32>
    %cst_118 = arith.constant dense<0.000000e+00> : vector<8x512xf32>
    %359 = tpu.matmul %357, %283, %cst_118 {dimension_numbers = #tpu.dot_dimension_numbers<[1], [0], [0], [1], [0, 0, 1, 1], [], []>} : vector<8x128xf32>, vector<128x512xf32>, vector<8x512xf32> -> vector<8x512xf32>
    %360 = arith.addf %358, %359 : vector<8x512xf32>
    %361 = vector.extract_strided_slice %360 {offsets = [0, 0], sizes = [8, 128], strides = [1, 1]} : vector<8x512xf32> to vector<8x128xf32>
    %cst_119 = arith.constant 5.000000e-01 : f32
    %362 = vector.broadcast %cst_119 : f32 to vector<8x128xf32>
    %363 = arith.mulf %362, %361 : vector<8x128xf32>
    %364 = math.tanh %363 : vector<8x128xf32>
    %cst_120 = arith.constant 5.000000e-01 : f32
    %365 = vector.broadcast %cst_120 : f32 to vector<8x128xf32>
    %366 = arith.mulf %365, %364 : vector<8x128xf32>
    %cst_121 = arith.constant 5.000000e-01 : f32
    %367 = vector.broadcast %cst_121 : f32 to vector<8x128xf32>
    %368 = arith.addf %366, %367 : vector<8x128xf32>
    %369 = vector.extract_strided_slice %360 {offsets = [0, 128], sizes = [8, 128], strides = [1, 1]} : vector<8x512xf32> to vector<8x128xf32>
    %cst_122 = arith.constant 5.000000e-01 : f32
    %370 = vector.broadcast %cst_122 : f32 to vector<8x128xf32>
    %371 = arith.mulf %370, %369 : vector<8x128xf32>
    %372 = math.tanh %371 : vector<8x128xf32>
    %cst_123 = arith.constant 5.000000e-01 : f32
    %373 = vector.broadcast %cst_123 : f32 to vector<8x128xf32>
    %374 = arith.mulf %373, %372 : vector<8x128xf32>
    %cst_124 = arith.constant 5.000000e-01 : f32
    %375 = vector.broadcast %cst_124 : f32 to vector<8x128xf32>
    %376 = arith.addf %374, %375 : vector<8x128xf32>
    %377 = vector.extract_strided_slice %360 {offsets = [0, 256], sizes = [8, 128], strides = [1, 1]} : vector<8x512xf32> to vector<8x128xf32>
    %378 = math.tanh %377 : vector<8x128xf32>
    %379 = vector.extract_strided_slice %360 {offsets = [0, 384], sizes = [8, 128], strides = [1, 1]} : vector<8x512xf32> to vector<8x128xf32>
    %cst_125 = arith.constant 5.000000e-01 : f32
    %380 = vector.broadcast %cst_125 : f32 to vector<8x128xf32>
    %381 = arith.mulf %380, %379 : vector<8x128xf32>
    %382 = math.tanh %381 : vector<8x128xf32>
    %cst_126 = arith.constant 5.000000e-01 : f32
    %383 = vector.broadcast %cst_126 : f32 to vector<8x128xf32>
    %384 = arith.mulf %383, %382 : vector<8x128xf32>
    %cst_127 = arith.constant 5.000000e-01 : f32
    %385 = vector.broadcast %cst_127 : f32 to vector<8x128xf32>
    %386 = arith.addf %384, %385 : vector<8x128xf32>
    %387 = arith.mulf %376, %355 : vector<8x128xf32>
    %388 = arith.mulf %368, %378 : vector<8x128xf32>
    %389 = arith.addf %387, %388 : vector<8x128xf32>
    %390 = math.tanh %389 : vector<8x128xf32>
    %391 = arith.mulf %386, %390 : vector<8x128xf32>
    %392 = vector.extract_strided_slice %287 {offsets = [24, 0], sizes = [8, 512], strides = [1, 1]} : vector<64x512xf32> to vector<8x512xf32>
    %cst_128 = arith.constant dense<0.000000e+00> : vector<8x512xf32>
    %393 = tpu.matmul %391, %283, %cst_128 {dimension_numbers = #tpu.dot_dimension_numbers<[1], [0], [0], [1], [0, 0, 1, 1], [], []>} : vector<8x128xf32>, vector<128x512xf32>, vector<8x512xf32> -> vector<8x512xf32>
    %394 = arith.addf %392, %393 : vector<8x512xf32>
    %395 = vector.extract_strided_slice %394 {offsets = [0, 0], sizes = [8, 128], strides = [1, 1]} : vector<8x512xf32> to vector<8x128xf32>
    %cst_129 = arith.constant 5.000000e-01 : f32
    %396 = vector.broadcast %cst_129 : f32 to vector<8x128xf32>
    %397 = arith.mulf %396, %395 : vector<8x128xf32>
    %398 = math.tanh %397 : vector<8x128xf32>
    %cst_130 = arith.constant 5.000000e-01 : f32
    %399 = vector.broadcast %cst_130 : f32 to vector<8x128xf32>
    %400 = arith.mulf %399, %398 : vector<8x128xf32>
    %cst_131 = arith.constant 5.000000e-01 : f32
    %401 = vector.broadcast %cst_131 : f32 to vector<8x128xf32>
    %402 = arith.addf %400, %401 : vector<8x128xf32>
    %403 = vector.extract_strided_slice %394 {offsets = [0, 128], sizes = [8, 128], strides = [1, 1]} : vector<8x512xf32> to vector<8x128xf32>
    %cst_132 = arith.constant 5.000000e-01 : f32
    %404 = vector.broadcast %cst_132 : f32 to vector<8x128xf32>
    %405 = arith.mulf %404, %403 : vector<8x128xf32>
    %406 = math.tanh %405 : vector<8x128xf32>
    %cst_133 = arith.constant 5.000000e-01 : f32
    %407 = vector.broadcast %cst_133 : f32 to vector<8x128xf32>
    %408 = arith.mulf %407, %406 : vector<8x128xf32>
    %cst_134 = arith.constant 5.000000e-01 : f32
    %409 = vector.broadcast %cst_134 : f32 to vector<8x128xf32>
    %410 = arith.addf %408, %409 : vector<8x128xf32>
    %411 = vector.extract_strided_slice %394 {offsets = [0, 256], sizes = [8, 128], strides = [1, 1]} : vector<8x512xf32> to vector<8x128xf32>
    %412 = math.tanh %411 : vector<8x128xf32>
    %413 = vector.extract_strided_slice %394 {offsets = [0, 384], sizes = [8, 128], strides = [1, 1]} : vector<8x512xf32> to vector<8x128xf32>
    %cst_135 = arith.constant 5.000000e-01 : f32
    %414 = vector.broadcast %cst_135 : f32 to vector<8x128xf32>
    %415 = arith.mulf %414, %413 : vector<8x128xf32>
    %416 = math.tanh %415 : vector<8x128xf32>
    %cst_136 = arith.constant 5.000000e-01 : f32
    %417 = vector.broadcast %cst_136 : f32 to vector<8x128xf32>
    %418 = arith.mulf %417, %416 : vector<8x128xf32>
    %cst_137 = arith.constant 5.000000e-01 : f32
    %419 = vector.broadcast %cst_137 : f32 to vector<8x128xf32>
    %420 = arith.addf %418, %419 : vector<8x128xf32>
    %421 = arith.mulf %410, %389 : vector<8x128xf32>
    %422 = arith.mulf %402, %412 : vector<8x128xf32>
    %423 = arith.addf %421, %422 : vector<8x128xf32>
    %424 = math.tanh %423 : vector<8x128xf32>
    %425 = arith.mulf %420, %424 : vector<8x128xf32>
    %426 = vector.extract_strided_slice %287 {offsets = [32, 0], sizes = [8, 512], strides = [1, 1]} : vector<64x512xf32> to vector<8x512xf32>
    %cst_138 = arith.constant dense<0.000000e+00> : vector<8x512xf32>
    %427 = tpu.matmul %425, %283, %cst_138 {dimension_numbers = #tpu.dot_dimension_numbers<[1], [0], [0], [1], [0, 0, 1, 1], [], []>} : vector<8x128xf32>, vector<128x512xf32>, vector<8x512xf32> -> vector<8x512xf32>
    %428 = arith.addf %426, %427 : vector<8x512xf32>
    %429 = vector.extract_strided_slice %428 {offsets = [0, 0], sizes = [8, 128], strides = [1, 1]} : vector<8x512xf32> to vector<8x128xf32>
    %cst_139 = arith.constant 5.000000e-01 : f32
    %430 = vector.broadcast %cst_139 : f32 to vector<8x128xf32>
    %431 = arith.mulf %430, %429 : vector<8x128xf32>
    %432 = math.tanh %431 : vector<8x128xf32>
    %cst_140 = arith.constant 5.000000e-01 : f32
    %433 = vector.broadcast %cst_140 : f32 to vector<8x128xf32>
    %434 = arith.mulf %433, %432 : vector<8x128xf32>
    %cst_141 = arith.constant 5.000000e-01 : f32
    %435 = vector.broadcast %cst_141 : f32 to vector<8x128xf32>
    %436 = arith.addf %434, %435 : vector<8x128xf32>
    %437 = vector.extract_strided_slice %428 {offsets = [0, 128], sizes = [8, 128], strides = [1, 1]} : vector<8x512xf32> to vector<8x128xf32>
    %cst_142 = arith.constant 5.000000e-01 : f32
    %438 = vector.broadcast %cst_142 : f32 to vector<8x128xf32>
    %439 = arith.mulf %438, %437 : vector<8x128xf32>
    %440 = math.tanh %439 : vector<8x128xf32>
    %cst_143 = arith.constant 5.000000e-01 : f32
    %441 = vector.broadcast %cst_143 : f32 to vector<8x128xf32>
    %442 = arith.mulf %441, %440 : vector<8x128xf32>
    %cst_144 = arith.constant 5.000000e-01 : f32
    %443 = vector.broadcast %cst_144 : f32 to vector<8x128xf32>
    %444 = arith.addf %442, %443 : vector<8x128xf32>
    %445 = vector.extract_strided_slice %428 {offsets = [0, 256], sizes = [8, 128], strides = [1, 1]} : vector<8x512xf32> to vector<8x128xf32>
    %446 = math.tanh %445 : vector<8x128xf32>
    %447 = vector.extract_strided_slice %428 {offsets = [0, 384], sizes = [8, 128], strides = [1, 1]} : vector<8x512xf32> to vector<8x128xf32>
    %cst_145 = arith.constant 5.000000e-01 : f32
    %448 = vector.broadcast %cst_145 : f32 to vector<8x128xf32>
    %449 = arith.mulf %448, %447 : vector<8x128xf32>
    %450 = math.tanh %449 : vector<8x128xf32>
    %cst_146 = arith.constant 5.000000e-01 : f32
    %451 = vector.broadcast %cst_146 : f32 to vector<8x128xf32>
    %452 = arith.mulf %451, %450 : vector<8x128xf32>
    %cst_147 = arith.constant 5.000000e-01 : f32
    %453 = vector.broadcast %cst_147 : f32 to vector<8x128xf32>
    %454 = arith.addf %452, %453 : vector<8x128xf32>
    %455 = arith.mulf %444, %423 : vector<8x128xf32>
    %456 = arith.mulf %436, %446 : vector<8x128xf32>
    %457 = arith.addf %455, %456 : vector<8x128xf32>
    %458 = math.tanh %457 : vector<8x128xf32>
    %459 = arith.mulf %454, %458 : vector<8x128xf32>
    %460 = vector.extract_strided_slice %287 {offsets = [40, 0], sizes = [8, 512], strides = [1, 1]} : vector<64x512xf32> to vector<8x512xf32>
    %cst_148 = arith.constant dense<0.000000e+00> : vector<8x512xf32>
    %461 = tpu.matmul %459, %283, %cst_148 {dimension_numbers = #tpu.dot_dimension_numbers<[1], [0], [0], [1], [0, 0, 1, 1], [], []>} : vector<8x128xf32>, vector<128x512xf32>, vector<8x512xf32> -> vector<8x512xf32>
    %462 = arith.addf %460, %461 : vector<8x512xf32>
    %463 = vector.extract_strided_slice %462 {offsets = [0, 0], sizes = [8, 128], strides = [1, 1]} : vector<8x512xf32> to vector<8x128xf32>
    %cst_149 = arith.constant 5.000000e-01 : f32
    %464 = vector.broadcast %cst_149 : f32 to vector<8x128xf32>
    %465 = arith.mulf %464, %463 : vector<8x128xf32>
    %466 = math.tanh %465 : vector<8x128xf32>
    %cst_150 = arith.constant 5.000000e-01 : f32
    %467 = vector.broadcast %cst_150 : f32 to vector<8x128xf32>
    %468 = arith.mulf %467, %466 : vector<8x128xf32>
    %cst_151 = arith.constant 5.000000e-01 : f32
    %469 = vector.broadcast %cst_151 : f32 to vector<8x128xf32>
    %470 = arith.addf %468, %469 : vector<8x128xf32>
    %471 = vector.extract_strided_slice %462 {offsets = [0, 128], sizes = [8, 128], strides = [1, 1]} : vector<8x512xf32> to vector<8x128xf32>
    %cst_152 = arith.constant 5.000000e-01 : f32
    %472 = vector.broadcast %cst_152 : f32 to vector<8x128xf32>
    %473 = arith.mulf %472, %471 : vector<8x128xf32>
    %474 = math.tanh %473 : vector<8x128xf32>
    %cst_153 = arith.constant 5.000000e-01 : f32
    %475 = vector.broadcast %cst_153 : f32 to vector<8x128xf32>
    %476 = arith.mulf %475, %474 : vector<8x128xf32>
    %cst_154 = arith.constant 5.000000e-01 : f32
    %477 = vector.broadcast %cst_154 : f32 to vector<8x128xf32>
    %478 = arith.addf %476, %477 : vector<8x128xf32>
    %479 = vector.extract_strided_slice %462 {offsets = [0, 256], sizes = [8, 128], strides = [1, 1]} : vector<8x512xf32> to vector<8x128xf32>
    %480 = math.tanh %479 : vector<8x128xf32>
    %481 = vector.extract_strided_slice %462 {offsets = [0, 384], sizes = [8, 128], strides = [1, 1]} : vector<8x512xf32> to vector<8x128xf32>
    %cst_155 = arith.constant 5.000000e-01 : f32
    %482 = vector.broadcast %cst_155 : f32 to vector<8x128xf32>
    %483 = arith.mulf %482, %481 : vector<8x128xf32>
    %484 = math.tanh %483 : vector<8x128xf32>
    %cst_156 = arith.constant 5.000000e-01 : f32
    %485 = vector.broadcast %cst_156 : f32 to vector<8x128xf32>
    %486 = arith.mulf %485, %484 : vector<8x128xf32>
    %cst_157 = arith.constant 5.000000e-01 : f32
    %487 = vector.broadcast %cst_157 : f32 to vector<8x128xf32>
    %488 = arith.addf %486, %487 : vector<8x128xf32>
    %489 = arith.mulf %478, %457 : vector<8x128xf32>
    %490 = arith.mulf %470, %480 : vector<8x128xf32>
    %491 = arith.addf %489, %490 : vector<8x128xf32>
    %492 = math.tanh %491 : vector<8x128xf32>
    %493 = arith.mulf %488, %492 : vector<8x128xf32>
    %494 = vector.extract_strided_slice %287 {offsets = [48, 0], sizes = [8, 512], strides = [1, 1]} : vector<64x512xf32> to vector<8x512xf32>
    %cst_158 = arith.constant dense<0.000000e+00> : vector<8x512xf32>
    %495 = tpu.matmul %493, %283, %cst_158 {dimension_numbers = #tpu.dot_dimension_numbers<[1], [0], [0], [1], [0, 0, 1, 1], [], []>} : vector<8x128xf32>, vector<128x512xf32>, vector<8x512xf32> -> vector<8x512xf32>
    %496 = arith.addf %494, %495 : vector<8x512xf32>
    %497 = vector.extract_strided_slice %496 {offsets = [0, 0], sizes = [8, 128], strides = [1, 1]} : vector<8x512xf32> to vector<8x128xf32>
    %cst_159 = arith.constant 5.000000e-01 : f32
    %498 = vector.broadcast %cst_159 : f32 to vector<8x128xf32>
    %499 = arith.mulf %498, %497 : vector<8x128xf32>
    %500 = math.tanh %499 : vector<8x128xf32>
    %cst_160 = arith.constant 5.000000e-01 : f32
    %501 = vector.broadcast %cst_160 : f32 to vector<8x128xf32>
    %502 = arith.mulf %501, %500 : vector<8x128xf32>
    %cst_161 = arith.constant 5.000000e-01 : f32
    %503 = vector.broadcast %cst_161 : f32 to vector<8x128xf32>
    %504 = arith.addf %502, %503 : vector<8x128xf32>
    %505 = vector.extract_strided_slice %496 {offsets = [0, 128], sizes = [8, 128], strides = [1, 1]} : vector<8x512xf32> to vector<8x128xf32>
    %cst_162 = arith.constant 5.000000e-01 : f32
    %506 = vector.broadcast %cst_162 : f32 to vector<8x128xf32>
    %507 = arith.mulf %506, %505 : vector<8x128xf32>
    %508 = math.tanh %507 : vector<8x128xf32>
    %cst_163 = arith.constant 5.000000e-01 : f32
    %509 = vector.broadcast %cst_163 : f32 to vector<8x128xf32>
    %510 = arith.mulf %509, %508 : vector<8x128xf32>
    %cst_164 = arith.constant 5.000000e-01 : f32
    %511 = vector.broadcast %cst_164 : f32 to vector<8x128xf32>
    %512 = arith.addf %510, %511 : vector<8x128xf32>
    %513 = vector.extract_strided_slice %496 {offsets = [0, 256], sizes = [8, 128], strides = [1, 1]} : vector<8x512xf32> to vector<8x128xf32>
    %514 = math.tanh %513 : vector<8x128xf32>
    %515 = vector.extract_strided_slice %496 {offsets = [0, 384], sizes = [8, 128], strides = [1, 1]} : vector<8x512xf32> to vector<8x128xf32>
    %cst_165 = arith.constant 5.000000e-01 : f32
    %516 = vector.broadcast %cst_165 : f32 to vector<8x128xf32>
    %517 = arith.mulf %516, %515 : vector<8x128xf32>
    %518 = math.tanh %517 : vector<8x128xf32>
    %cst_166 = arith.constant 5.000000e-01 : f32
    %519 = vector.broadcast %cst_166 : f32 to vector<8x128xf32>
    %520 = arith.mulf %519, %518 : vector<8x128xf32>
    %cst_167 = arith.constant 5.000000e-01 : f32
    %521 = vector.broadcast %cst_167 : f32 to vector<8x128xf32>
    %522 = arith.addf %520, %521 : vector<8x128xf32>
    %523 = arith.mulf %512, %491 : vector<8x128xf32>
    %524 = arith.mulf %504, %514 : vector<8x128xf32>
    %525 = arith.addf %523, %524 : vector<8x128xf32>
    %526 = math.tanh %525 : vector<8x128xf32>
    %527 = arith.mulf %522, %526 : vector<8x128xf32>
    %528 = vector.extract_strided_slice %287 {offsets = [56, 0], sizes = [8, 512], strides = [1, 1]} : vector<64x512xf32> to vector<8x512xf32>
    %cst_168 = arith.constant dense<0.000000e+00> : vector<8x512xf32>
    %529 = tpu.matmul %527, %283, %cst_168 {dimension_numbers = #tpu.dot_dimension_numbers<[1], [0], [0], [1], [0, 0, 1, 1], [], []>} : vector<8x128xf32>, vector<128x512xf32>, vector<8x512xf32> -> vector<8x512xf32>
    %530 = arith.addf %528, %529 : vector<8x512xf32>
    %531 = vector.extract_strided_slice %530 {offsets = [0, 0], sizes = [8, 128], strides = [1, 1]} : vector<8x512xf32> to vector<8x128xf32>
    %cst_169 = arith.constant 5.000000e-01 : f32
    %532 = vector.broadcast %cst_169 : f32 to vector<8x128xf32>
    %533 = arith.mulf %532, %531 : vector<8x128xf32>
    %534 = math.tanh %533 : vector<8x128xf32>
    %cst_170 = arith.constant 5.000000e-01 : f32
    %535 = vector.broadcast %cst_170 : f32 to vector<8x128xf32>
    %536 = arith.mulf %535, %534 : vector<8x128xf32>
    %cst_171 = arith.constant 5.000000e-01 : f32
    %537 = vector.broadcast %cst_171 : f32 to vector<8x128xf32>
    %538 = arith.addf %536, %537 : vector<8x128xf32>
    %539 = vector.extract_strided_slice %530 {offsets = [0, 128], sizes = [8, 128], strides = [1, 1]} : vector<8x512xf32> to vector<8x128xf32>
    %cst_172 = arith.constant 5.000000e-01 : f32
    %540 = vector.broadcast %cst_172 : f32 to vector<8x128xf32>
    %541 = arith.mulf %540, %539 : vector<8x128xf32>
    %542 = math.tanh %541 : vector<8x128xf32>
    %cst_173 = arith.constant 5.000000e-01 : f32
    %543 = vector.broadcast %cst_173 : f32 to vector<8x128xf32>
    %544 = arith.mulf %543, %542 : vector<8x128xf32>
    %cst_174 = arith.constant 5.000000e-01 : f32
    %545 = vector.broadcast %cst_174 : f32 to vector<8x128xf32>
    %546 = arith.addf %544, %545 : vector<8x128xf32>
    %547 = vector.extract_strided_slice %530 {offsets = [0, 256], sizes = [8, 128], strides = [1, 1]} : vector<8x512xf32> to vector<8x128xf32>
    %548 = math.tanh %547 : vector<8x128xf32>
    %549 = vector.extract_strided_slice %530 {offsets = [0, 384], sizes = [8, 128], strides = [1, 1]} : vector<8x512xf32> to vector<8x128xf32>
    %cst_175 = arith.constant 5.000000e-01 : f32
    %550 = vector.broadcast %cst_175 : f32 to vector<8x128xf32>
    %551 = arith.mulf %550, %549 : vector<8x128xf32>
    %552 = math.tanh %551 : vector<8x128xf32>
    %cst_176 = arith.constant 5.000000e-01 : f32
    %553 = vector.broadcast %cst_176 : f32 to vector<8x128xf32>
    %554 = arith.mulf %553, %552 : vector<8x128xf32>
    %cst_177 = arith.constant 5.000000e-01 : f32
    %555 = vector.broadcast %cst_177 : f32 to vector<8x128xf32>
    %556 = arith.addf %554, %555 : vector<8x128xf32>
    %557 = arith.mulf %546, %525 : vector<8x128xf32>
    %558 = arith.mulf %538, %548 : vector<8x128xf32>
    %559 = arith.addf %557, %558 : vector<8x128xf32>
    %560 = math.tanh %559 : vector<8x128xf32>
    %561 = arith.mulf %556, %560 : vector<8x128xf32>
    %c0_178 = arith.constant 0 : index
    %c0_179 = arith.constant 0 : index
    %562 = vector.load %arg7[%c0_178, %c0_179] : memref<128x128xf32, #tpu.memory_space<vmem>>, vector<128x128xf32>
    %c0_180 = arith.constant 0 : index
    %c0_181 = arith.constant 0 : index
    %563 = vector.load %arg8[%c0_180, %c0_181] : memref<1x128xf32, #tpu.memory_space<vmem>>, vector<1x128xf32>
    %c0_182 = arith.constant 0 : index
    %c0_183 = arith.constant 0 : index
    %564 = vector.load %arg9[%c0_182, %c0_183] : memref<128x128xf32, #tpu.memory_space<vmem>>, vector<128x128xf32>
    %c0_184 = arith.constant 0 : index
    %c0_185 = arith.constant 0 : index
    %565 = vector.load %arg10[%c0_184, %c0_185] : memref<1x128xf32, #tpu.memory_space<vmem>>, vector<1x128xf32>
    %cst_186 = arith.constant dense<0.000000e+00> : vector<8x128xf32>
    %566 = tpu.matmul %561, %562, %cst_186 {dimension_numbers = #tpu.dot_dimension_numbers<[1], [0], [0], [1], [0, 0, 1, 1], [], []>} : vector<8x128xf32>, vector<128x128xf32>, vector<8x128xf32> -> vector<8x128xf32>
    %567 = vector.broadcast %563 : vector<1x128xf32> to vector<8x128xf32>
    %568 = arith.addf %566, %567 : vector<8x128xf32>
    %cst_187 = arith.constant dense<0.000000e+00> : vector<8x128xf32>
    %569 = tpu.matmul %568, %564, %cst_187 {dimension_numbers = #tpu.dot_dimension_numbers<[1], [0], [0], [1], [0, 0, 1, 1], [], []>} : vector<8x128xf32>, vector<128x128xf32>, vector<8x128xf32> -> vector<8x128xf32>
    %570 = vector.broadcast %565 : vector<1x128xf32> to vector<8x128xf32>
    %571 = arith.addf %569, %570 : vector<8x128xf32>
    %c0_188 = arith.constant 0 : index
    %c0_189 = arith.constant 0 : index
    %572 = vector.load %arg11[%c0_188, %c0_189] : memref<8x128xf32, #tpu.memory_space<vmem>>, vector<8x128xf32>
    tpu.vector_store %arg11[%c0_188, %c0_189], %571 {strides = array<i32>} : memref<8x128xf32, #tpu.memory_space<vmem>>, vector<8x128xf32>,
    return
  }
}

</mosaic_0001>

<bundles_post_ra>
// kernel: tpu_custom_call.1
= control target key start
LH: loop header
LB: loop body
LE: loop exit
PB: predicated region body
PF: predicated region fallthrough
CT: control target
= control target key end

     0   :  { %16 = vsyncpa [#allocation3], 0  ;;  %s5056_s0 = inlined_call_operand.vmem [shape: f32[64,16], index: 0, kind: input, shape index: {}]   ;;  %s5057_s1 = inlined_call_operand.vmem [shape: f32[16,512], index: 1, kind: input, shape index: {}]   ;;  %s5058_s2 = inlined_call_operand.hbm [shape: f32[128,512], index: 2, kind: input, shape index: {}]   ;;  %s5059_s3 = inlined_call_operand.vmem [shape: f32[1,512], index: 3, kind: input, shape index: {}]   ;;  %s5060_s4 = inlined_call_operand.hbm [shape: f32[128,512], index: 4, kind: input, shape index: {}]   ;;  %s5061_s5 = inlined_call_operand.hbm [shape: f32[128,512], index: 5, kind: input, shape index: {}]   ;;  %s5062_s6 = inlined_call_operand.vmem [shape: f32[1,512], index: 6, kind: input, shape index: {}]   ;;  %s5063_s7 = inlined_call_operand.hbm [shape: f32[128,128], index: 7, kind: input, shape index: {}]   ;;  %s5064_s8 = inlined_call_operand.vmem [shape: f32[1,128], index: 8, kind: input, shape index: {}]   ;;  %s5065_s9 = inlined_call_operand.hbm [shape: f32[128,128], index: 9, kind: input, shape index: {}]   ;;  %s5066_s10 = inlined_call_operand.vmem [shape: f32[1,128], index: 10, kind: input, shape index: {}]   ;;  %s5067_s11 = inlined_call_operand.hbm [shape: f32[8,128], index: 11, kind: output, shape index: {}]  }
   0x1   :  { %17 = vsyncpa [#allocation6], 0 }
   0x2   :  { %18 = vsyncpa [#allocation9], 0 }
   0x3   :  { %19 = vsyncpa [#allocation4], 0  ;;  %s43_s19 = sshll.u32 %s5060_s4, 4  ;;  %s2919_s20 = smov [#allocation5]   ;;  %s44_s19 = int_to_ptr.hbm [resolvable:$true] %s43_s19 }
   0x4   :  { %s45_s21 = sshll.u32 %s2919_s20, 4  ;;  %s71_s24 = sshll.u32 %s5063_s7, 4  ;;  %s46_s21 = int_to_ptr.vmem [resolvable:$true] %s45_s21  ;;  %s72_s24 = int_to_ptr.hbm [resolvable:$true] %s71_s24 }
   0x5   :  { %s2920_s25 = smov 512   ;;  %s2921_s26 = smov 32  }
   0x6   :  { %51 = dma.hbm_to_vmem [thread:$0]  %s44_s19, 8192, %s46_s21, [#allocation6], %s2920_s25, %s2920_s25, %s2921_s26  }
   0x7   :  { %s2922_s27 = smov [#allocation8]   ;;  %s2923_s29 = smov 128  }
   0x8   :  { %s73_s28 = sshll.u32 %s2922_s27, 4  ;;  %s2924_s30 = smov 8   ;;  %s74_s28 = int_to_ptr.vmem [resolvable:$true] %s73_s28 }
   0x9   :  { %79 = dma.hbm_to_vmem [thread:$0]  %s72_s24, 2048, %s74_s28, [#allocation9], %s2923_s29, %s2923_s29, %s2924_s30  }
   0xa   :  { %s28_s13 = sshll.u32 %s5058_s2, 4  ;;  %s2925_s14 = smov [#allocation2]   ;;  %s29_s13 = int_to_ptr.hbm [resolvable:$true] %s28_s13 }
   0xb   :  { %s30_s15 = sshll.u32 %s2925_s14, 4  ;;  %s56_s17 = sshll.u32 %s5061_s5, 4  ;;  %s31_s15 = int_to_ptr.vmem [resolvable:$true] %s30_s15  ;;  %s57_s17 = int_to_ptr.hbm [resolvable:$true] %s56_s17 }
   0xc   :  { %36 = dma.hbm_to_vmem [thread:$0]  %s29_s13, 8192, %s31_s15, [#allocation3], %s2920_s25, %s2920_s25, %s2921_s26  }
   0xd   :  { %s2926_s18 = smov [#allocation7]   ;;  %s86_s22 = sshll.u32 %s5065_s9, 4  ;;  %s87_s22 = int_to_ptr.hbm [resolvable:$true] %s86_s22 }
   0xe   :  { %s58_s19 = sshll.u32 %s2926_s18, 4  ;;  %s2927_s2 = smov [#allocation10]   ;;  %s59_s19 = int_to_ptr.vmem [resolvable:$true] %s58_s19 }
   0xf   :  { %64 = dma.hbm_to_vmem [thread:$0]  %s57_s17, 8192, %s59_s19, [#allocation6], %s2920_s25, %s2920_s25, %s2921_s26  }
  0x10   :  { %s88_s23 = sshll.u32 %s2927_s2, 4  ;;  %s89_s23 = int_to_ptr.vmem [resolvable:$true] %s88_s23 }
  0x11   :  { %94 = dma.hbm_to_vmem [thread:$0]  %s87_s22, 2048, %s89_s23, [#allocation9], %s2923_s29, %s2923_s29, %s2924_s30  }
  0x12   :  { %2911 = dma.done.wait [#allocation3], 8192  }
  0x13   :  { %2912 = vsyncadd [#allocation3], 4294959104 }
  0x14   :  { %2913 = dma.done.wait [#allocation6], 16384  }
  0x15   :  { %2914 = vsyncadd [#allocation6], 4294950912 }
  0x16   :  { %2915 = dma.done.wait [#allocation9], 4096  }
  0x17   :  { %2916 = vsyncadd [#allocation9], 4294963200  ;;  %v129_v0 = vld [vmem:[%s5057_s1 + $0x20] sm:$0xff]  ;;  %v130_v1 = vld [vmem:[%s5057_s1 + $0x28] sm:$0xff]  ;;  %vm207_vm0 = vcmask 130048   ;;  %s2929_s14 = smov [#allocation11]  }
  0x18   :  { %v125_v2 = vld [vmem:[%s5057_s1] sm:$0xff]  ;;  %246 = vmatpush.msra.mxu0 %v129_v0  ;;  %2462 = vmatpush.msra.mxu2 %v129_v0  ;;  %v126_v3 = vld [vmem:[%s5057_s1 + $0x8] sm:$0xff]  ;;  %v3025_v5 = vld [vmem:[%s5056_s0 + $0x30] sm:$0xff]  ;;  %s2416_s15 = sshll.u32 %s2929_s14, 4  ;;  %s2418_s17 = sshll.u32 %s5067_s11, 4  ;;  %s2417_s15 = int_to_ptr.vmem [resolvable:$true] %s2416_s15  ;;  %s2419_s17 = int_to_ptr.hbm [resolvable:$true] %s2418_s17 }
  0x19   :  { %287 = vmatpush.msra.mxu1 %v130_v1  ;;  %2464 = vmatpush.msra.mxu3 %v130_v1  ;;  %v3020_v4 = vld [vmem:[%s5056_s0] sm:$0xff]  ;;  %v131_v6 = vld [vmem:[%s5057_s1 + $0x30] sm:$0xff]  ;;  %v132_v7 = vld [vmem:[%s5057_s1 + $0x38] sm:$0xff] }
  0x1a   :  { %247 = vmatpush.msra.mxu0 %v125_v2  ;;  %2463 = vmatpush.msra.mxu2 %v125_v2  ;;  %v3037_v8 = vld [vmem:[#allocation2 + $0x1e0] sm:$0xff]  ;;  %v3039_v9 = vld [vmem:[#allocation2 + $0x1e8] sm:$0xff]  ;;  %v127_v10 = vld [vmem:[%s5057_s1 + $0x10] sm:$0xff] }
  0x1b   :  { %288 = vmatpush.msra.mxu1 %v126_v3  ;;  %2465 = vmatpush.msra.mxu3 %v126_v3  ;;  %v128_v11 = vld [vmem:[%s5057_s1 + $0x18] sm:$0xff]  ;;  %v3051_v12 = vld [vmem:[#allocation2 + $0x1f0] sm:$0xff]  ;;  %v3053_v13 = vld [vmem:[#allocation2 + $0x1c0] sm:$0xff] }
  0x1c   :  { %2430 = vmatmul.msk.f32.vlgmr.msra.gmra.mxu0 %vm207_vm0, %v3020_v4  ;;  %2436 = vmatmul.msk.f32.vlgmr.msra.gmra.mxu2 %vm207_vm0, %v3025_v5  ;;  %v3057_v14 = vld [vmem:[#allocation2 + $0x1c8] sm:$0xff]  ;;  %v3059_v15 = vld [vmem:[#allocation2 + $0x1f8] sm:$0xff]  ;;  %v3061_v16 = vld [vmem:[#allocation2 + $0x1d0] sm:$0xff] }
  0x1d   :  { %2438 = vmatmul.msk.f32.vlgmr.msra.gmra.mxu1 %vm207_vm0, %v3020_v4  ;;  %2444 = vmatmul.msk.f32.vlgmr.msra.gmra.mxu3 %vm207_vm0, %v3025_v5  ;;  %v3063_v17 = vld [vmem:[#allocation2 + $0x1a0] sm:$0xff]  ;;  %v3068_v18 = vld [vmem:[%s5056_s0 + $0x8] sm:$0xff]  ;;  %v3073_v19 = vld [vmem:[%s5056_s0 + $0x38] sm:$0xff] }
  0x1e   :  { %328 = vmatpush.msrb.mxu2 %v131_v6  ;;  %369 = vmatpush.msrb.mxu3 %v132_v7  ;;  %v3081_v20 = vld [vmem:[#allocation2 + $0x1a8] sm:$0xff]  ;;  %v3083_v21 = vld [vmem:[#allocation2 + $0x180] sm:$0xff]  ;;  %v3089_v22 = vld [vmem:[#allocation2 + $0x1b0] sm:$0xff] }
  0x1f   :  { %396 = vmatpush.msrb.mxu0 %v3037_v8  ;;  %416 = vmatpush.msrb.mxu1 %v3039_v9  ;;  %v3091_v23 = vld [vmem:[#allocation2 + $0x1d8] sm:$0xff]  ;;  %v3097_v24 = vld [vmem:[#allocation2 + $0x188] sm:$0xff]  ;;  %v3099_v25 = vld [vmem:[#allocation2 + $0x160] sm:$0xff] }
  0x20   :  { %329 = vmatpush.msrb.mxu2 %v127_v10  ;;  %370 = vmatpush.msrb.mxu3 %v128_v11  ;;  %v3103_v26 = vld [vmem:[#allocation2 + $0x190] sm:$0xff]  ;;  %v3105_v27 = vld [vmem:[#allocation2 + $0x1b8] sm:$0xff]  ;;  %v3108_v28 = vld [vmem:[#allocation2 + $0x168] sm:$0xff] }
  0x21   :  { %397 = vmatpush.msrb.mxu0 %v3053_v13  ;;  %417 = vmatpush.msrb.mxu1 %v3057_v14  ;;  %v3111_v29 = vld [vmem:[#allocation2 + $0x140] sm:$0xff]  ;;  %v3115_v30 = vld [vmem:[#allocation2 + $0x170] sm:$0xff]  ;;  %v3117_v31 = vld [vmem:[#allocation2 + $0x198] sm:$0xff] }
  0x22   :  { %436 = vmatpush.msra.mxu2 %v3051_v12  ;;  %456 = vmatpush.msra.mxu3 %v3059_v15  ;;  %v3122_v32 = vld [vmem:[%s5056_s0 + $0x10] sm:$0xff]  ;;  %v3128_v33 = vld [vmem:[#allocation2 + $0x148] sm:$0xff]  ;;  %v3130_v34 = vld [vmem:[#allocation2 + $0x120] sm:$0xff] }
  0x23   :  { %398 = vmatpush.msrb.mxu0 %v3063_v17  ;;  %418 = vmatpush.msrb.mxu1 %v3081_v20  ;;  %v3134_v35 = vld [vmem:[#allocation2 + $0x150] sm:$0xff]  ;;  %v3140_v36 = vld [vmem:[#allocation2 + $0x178] sm:$0xff]  ;;  %v3146_v37 = vld [vmem:[#allocation2 + $0x128] sm:$0xff] }
  0x24   :  { %437 = vmatpush.msra.mxu2 %v3061_v16  ;;  %2431 = vmatmul.msk.f32.gmra.mxu0 %vm207_vm0, %v3068_v18  ;;  %v3148_v38 = vld [vmem:[#allocation2 + $0x100] sm:$0xff]  ;;  %v3152_v39 = vld [vmem:[#allocation2 + $0x130] sm:$0xff]  ;;  %v3154_v40 = vld [vmem:[#allocation2 + $0x158] sm:$0xff] }
  0x25   :  { %2437 = vmatmul.msk.f32.gmra.mxu2 %vm207_vm0, %v3073_v19  ;;  %2439 = vmatmul.msk.f32.gmra.mxu1 %vm207_vm0, %v3068_v18  ;;  %v3156_v41 = vld [vmem:[#allocation2 + $0x108] sm:$0xff]  ;;  %v3158_v42 = vld [vmem:[#allocation2 + $0xe0] sm:$0xff]  ;;  %v3164_v43 = vld [vmem:[#allocation2 + $0x110] sm:$0xff] }
  0x26   :  { %2445 = vmatmul.msk.f32.gmra.mxu3 %vm207_vm0, %v3073_v19  ;;  %399 = vmatpush.msrb.mxu0 %v3083_v21  ;;  %v3166_v44 = vld [vmem:[#allocation2 + $0x138] sm:$0xff]  ;;  %v3177_v46 = vld [vmem:[#allocation2 + $0xe8] sm:$0xff]  ;;  %v3179_v47 = vld [vmem:[#allocation2 + $0xc0] sm:$0xff] }
  0x27   :  { %438 = vmatpush.msra.mxu2 %v3089_v22  ;;  %457 = vmatpush.msra.mxu3 %v3091_v23  ;;  %v3171_v45 = vld [vmem:[%s5056_s0 + $0x18] sm:$0xff]  ;;  %v3187_v48 = vld [vmem:[#allocation2 + $0xf0] sm:$0xff]  ;;  %v3195_v50 = vld [vmem:[#allocation2 + $0xc8] sm:$0xff] }
  0x28   :  { %419 = vmatpush.msrb.mxu1 %v3097_v24  ;;  %400 = vmatpush.msrb.mxu0 %v3099_v25  ;;  %v3189_v49 = vld [vmem:[#allocation2 + $0x118] sm:$0xff]  ;;  %v3197_v51 = vld [vmem:[#allocation2 + $0xa0] sm:$0xff]  ;;  %v3201_v52 = vld [vmem:[#allocation2 + $0xd0] sm:$0xff] }
  0x29   :  { %439 = vmatpush.msra.mxu2 %v3103_v26  ;;  %458 = vmatpush.msra.mxu3 %v3105_v27  ;;  %v3203_v53 = vld [vmem:[#allocation2 + $0xf8] sm:$0xff]  ;;  %v3205_v54 = vld [vmem:[#allocation2 + $0xa8] sm:$0xff]  ;;  %v3207_v55 = vld [vmem:[#allocation2 + $0x80] sm:$0xff] }
  0x2a   :  { %420 = vmatpush.msrb.mxu1 %v3108_v28  ;;  %401 = vmatpush.msrb.mxu0 %v3111_v29  ;;  %5270 = vst [vmem:[#allocation16_spill] sm:$0xff] %v3207_v55  ;;  %v3213_v56 = vld [vmem:[#allocation2 + $0xb0] sm:$0xff]  ;;  %v3215_v57 = vld [vmem:[#allocation2 + $0xd8] sm:$0xff]  ;;  %v3220_v58 = vld [vmem:[%s5056_s0 + $0x20] sm:$0xff] }
  0x2b   :  { %440 = vmatpush.msra.mxu2 %v3115_v30  ;;  %459 = vmatpush.msra.mxu3 %v3117_v31  ;;  %5271 = vst [vmem:[#allocation17_spill] sm:$0xff] %v3213_v56  ;;  %v3226_v59 = vld [vmem:[#allocation2 + $0x88] sm:$0xff]  ;;  %v3228_v60 = vld [vmem:[#allocation2 + $0x60] sm:$0xff]  ;;  %v3236_v61 = vld [vmem:[#allocation2 + $0x90] sm:$0xff] }
  0x2c   :  { %2432 = vmatmul.msk.f32.gmra.mxu0 %vm207_vm0, %v3122_v32  ;;  %421 = vmatpush.msrb.mxu1 %v3128_v33  ;;  %5272 = vst [vmem:[#allocation18_spill] sm:$0xff] %v3226_v59  ;;  %v3238_v62 = vld [vmem:[#allocation2 + $0xb8] sm:$0xff]  ;;  %v3244_v63 = vld [vmem:[#allocation2 + $0x68] sm:$0xff]  ;;  %v3246_v0 = vld [vmem:[#allocation2 + $0x40] sm:$0xff] }
  0x2d   :  { %2446 = vmatmul.msk.f32.vlgmr.msrb.gmra.mxu2 %vm207_vm0, %v3020_v4  ;;  %2440 = vmatmul.msk.f32.gmra.mxu1 %vm207_vm0, %v3122_v32  ;;  %5273 = vst [vmem:[#allocation19_spill] sm:$0xff] %v3228_v60  ;;  %v3250_v1 = vld [vmem:[#allocation2 + $0x70] sm:$0xff]  ;;  %v3252_v2 = vld [vmem:[#allocation2 + $0x98] sm:$0xff]  ;;  %v3254_v3 = vld [vmem:[#allocation2 + $0x48] sm:$0xff] }
  0x2e   :  { %2454 = vmatmul.msk.f32.vlgmr.msrb.gmra.mxu3 %vm207_vm0, %v3020_v4  ;;  %402 = vmatpush.msrb.mxu0 %v3130_v34  ;;  %5274 = vst [vmem:[#allocation20_spill] sm:$0xff] %v3236_v61  ;;  %v3256_v4 = vld [vmem:[#allocation2 + $0x20] sm:$0xff]  ;;  %v3262_v6 = vld [vmem:[#allocation2 + $0x50] sm:$0xff]  ;;  %v3264_v7 = vld [vmem:[#allocation2 + $0x78] sm:$0xff] }
  0x2f   :  { %441 = vmatpush.msra.mxu2 %v3134_v35  ;;  %460 = vmatpush.msra.mxu3 %v3140_v36  ;;  %5275 = vst [vmem:[#allocation21_spill] sm:$0xff] %v3238_v62  ;;  %v122_v10 = vld [vmem:[%s5056_s0 + $0x28] sm:$0xff] }
  0x30   :  { %422 = vmatpush.msrb.mxu1 %v3146_v37  ;;  %403 = vmatpush.msrb.mxu0 %v3148_v38  ;;  %5276 = vst [vmem:[#allocation22_spill] sm:$0xff] %v3244_v63  ;;  %v3273_v11 = vld [vmem:[#allocation2 + $0x28] sm:$0xff] }
  0x31   :  { %442 = vmatpush.msra.mxu2 %v3152_v39  ;;  %461 = vmatpush.msra.mxu3 %v3154_v40  ;;  %5277 = vst [vmem:[#allocation23_spill] sm:$0xff] %v3246_v0 }
  0x32   :  { %423 = vmatpush.msrb.mxu1 %v3156_v41  ;;  %404 = vmatpush.msrb.mxu0 %v3158_v42  ;;  %5278 = vst [vmem:[#allocation24_spill] sm:$0xff] %v3250_v1 }
  0x33   :  { %443 = vmatpush.msra.mxu2 %v3164_v43  ;;  %462 = vmatpush.msra.mxu3 %v3166_v44  ;;  %5279 = vst [vmem:[#allocation25_spill] sm:$0xff] %v3252_v2 }
  0x34   :  { %2433 = vmatmul.msk.f32.gmra.mxu0 %vm207_vm0, %v3171_v45  ;;  %424 = vmatpush.msrb.mxu1 %v3177_v46  ;;  %5280 = vst [vmem:[#allocation26_spill] sm:$0xff] %v3254_v3 }
  0x35   :  { %2447 = vmatmul.msk.f32.gmra.mxu2 %vm207_vm0, %v3068_v18  ;;  %2441 = vmatmul.msk.f32.gmra.mxu1 %vm207_vm0, %v3171_v45  ;;  %5281 = vst [vmem:[#allocation27_spill] sm:$0xff] %v3256_v4 }
  0x36   :  { %2455 = vmatmul.msk.f32.gmra.mxu3 %vm207_vm0, %v3068_v18  ;;  %405 = vmatpush.msrb.mxu0 %v3179_v47  ;;  %5282 = vst [vmem:[#allocation28_spill] sm:$0xff] %v3262_v6  ;;  %v3275_v18 = vld [vmem:[#allocation2] sm:$0xff] }
  0x37   :  { %444 = vmatpush.msra.mxu2 %v3187_v48  ;;  %463 = vmatpush.msra.mxu3 %v3189_v49  ;;  %5283 = vst [vmem:[#allocation29_spill] sm:$0xff] %v3264_v7 }
  0x38   :  { %425 = vmatpush.msrb.mxu1 %v3195_v50  ;;  %406 = vmatpush.msrb.mxu0 %v3197_v51  ;;  %5284 = vst [vmem:[#allocation30_spill] sm:$0xff] %v3273_v11 }
  0x39   :  { %445 = vmatpush.msra.mxu2 %v3201_v52  ;;  %464 = vmatpush.msra.mxu3 %v3203_v53  ;;  %5285 = vst [vmem:[#allocation31_spill] sm:$0xff] %v3275_v18 }
  0x3a   :  { %426 = vmatpush.msrb.mxu1 %v3205_v54  ;;  %407 = vmatpush.msrb.mxu0 %v3207_v55 }
  0x3b   :  { %446 = vmatpush.msra.mxu2 %v3213_v56  ;;  %465 = vmatpush.msra.mxu3 %v3215_v57 }
  0x3c   :  { %2434 = vmatmul.msk.f32.gmra.mxu0 %vm207_vm0, %v3220_v58  ;;  %427 = vmatpush.msrb.mxu1 %v3226_v59 }
  0x3d   :  { %2448 = vmatmul.msk.f32.gmra.mxu2 %vm207_vm0, %v3122_v32  ;;  %2442 = vmatmul.msk.f32.gmra.mxu1 %vm207_vm0, %v3220_v58 }
  0x3e   :  { %2456 = vmatmul.msk.f32.gmra.mxu3 %vm207_vm0, %v3122_v32  ;;  %408 = vmatpush.msrb.mxu0 %v3228_v60  ;;  %v3285_v32 = vld [vmem:[#allocation2 + $0x8] sm:$0xff] }
  0x3f   :  { %447 = vmatpush.msra.mxu2 %v3236_v61  ;;  %466 = vmatpush.msra.mxu3 %v3238_v62  ;;  %5286 = vst [vmem:[#allocation32_spill] sm:$0xff] %v3285_v32 }
  0x40   :  { %428 = vmatpush.msrb.mxu1 %v3244_v63  ;;  %409 = vmatpush.msrb.mxu0 %v3246_v0  ;;  %v3295_v0 = vld [vmem:[#allocation2 + $0x38] sm:$0xff] }
  0x41   :  { %448 = vmatpush.msra.mxu2 %v3250_v1  ;;  %467 = vmatpush.msra.mxu3 %v3252_v2  ;;  %5290 = vst [vmem:[#allocation36_spill] sm:$0xff] %v3295_v0 }
  0x42   :  { %429 = vmatpush.msrb.mxu1 %v3254_v3  ;;  %410 = vmatpush.msrb.mxu0 %v3256_v4  ;;  %v3287_v4 = vld [vmem:[#allocation2 + $0x30] sm:$0xff]  ;;  %v3289_v3 = vld [vmem:[#allocation2 + $0x58] sm:$0xff] }
  0x43   :  { %449 = vmatpush.msra.mxu2 %v3262_v6  ;;  %468 = vmatpush.msra.mxu3 %v3264_v7  ;;  %5287 = vst [vmem:[#allocation33_spill] sm:$0xff] %v3287_v4  ;;  %v3293_v6 = vld [vmem:[#allocation2 + $0x10] sm:$0xff] }
  0x44   :  { %2435 = vmatmul.msk.f32.gmra.mxu0 %vm207_vm0, %v122_v10  ;;  %5288 = vst [vmem:[#allocation34_spill] sm:$0xff] %v3289_v3  ;;  %430 = vmatpush.msrb.mxu1 %v3273_v11 }
  0x45   :  { %2449 = vmatmul.msk.f32.gmra.mxu2 %vm207_vm0, %v3171_v45  ;;  %2443 = vmatmul.msk.f32.gmra.mxu1 %vm207_vm0, %v122_v10  ;;  %5289 = vst [vmem:[#allocation35_spill] sm:$0xff] %v3293_v6 }
  0x46   :  { %2457 = vmatmul.msk.f32.gmra.mxu3 %vm207_vm0, %v3171_v45  ;;  %411 = vmatpush.msrb.mxu0 %v3275_v18  ;;  %v3300_v45 = vld [vmem:[#allocation2 + $0x18] sm:$0xff] }
  0x47   :  { %450 = vmatpush.msra.mxu2 %v3287_v4  ;;  %469 = vmatpush.msra.mxu3 %v3289_v3  ;;  %5291 = vst [vmem:[#allocation37_spill] sm:$0xff] %v3300_v45 }
  0x48   :  { %431 = vmatpush.msrb.mxu1 %v3285_v32  ;;  %498 = vmatpush.msra.mxu0 %v3037_v8  ;;  %v5078_v32 = vmov 0.0  }
  0x49   :  { %451 = vmatpush.msra.mxu2 %v3293_v6  ;;  %470 = vmatpush.msra.mxu3 %v3295_v0 }
  0x4a   :  { %518 = vmatpush.msra.mxu1 %v3039_v9  ;;  %499 = vmatpush.msra.mxu0 %v3053_v13 }
  0x4b   :  { %538 = vmatpush.msrb.mxu2 %v3051_v12  ;;  %471 = vmatpush.msra.mxu3 %v3300_v45 }
  0x4c   :  { %412 = vmatmul.f32.vlgmr.msrb.gmra.mxu0 %v5078_v32  ;;  %519 = vmatpush.msra.mxu1 %v3057_v14 }
  0x4d   :  { %2450 = vmatmul.msk.f32.gmra.mxu2 %vm207_vm0, %v3220_v58  ;;  %432 = vmatmul.f32.vlgmr.msrb.gmra.mxu1 %v5078_v32 }
  0x4e   :  { %2458 = vmatmul.msk.f32.gmra.mxu3 %vm207_vm0, %v3220_v58  ;;  %539 = vmatpush.msrb.mxu2 %v3061_v16  ;;  %v5293_v58 = vld [vmem:[#allocation26_spill] sm:$0xff] }
  0x4f   :  { %558 = vmatpush.msrb.mxu3 %v3059_v15  ;;  %500 = vmatpush.msra.mxu0 %v3063_v17 }
  0x50   :  { %520 = vmatpush.msra.mxu1 %v3081_v20  ;;  %540 = vmatpush.msrb.mxu2 %v3089_v22 }
  0x51   :  { %559 = vmatpush.msrb.mxu3 %v3091_v23  ;;  %501 = vmatpush.msra.mxu0 %v3083_v21 }
  0x52   :  { %521 = vmatpush.msra.mxu1 %v3097_v24  ;;  %541 = vmatpush.msrb.mxu2 %v3103_v26 }
  0x53   :  { %560 = vmatpush.msrb.mxu3 %v3105_v27  ;;  %502 = vmatpush.msra.mxu0 %v3099_v25 }
  0x54   :  { %522 = vmatpush.msra.mxu1 %v3108_v28  ;;  %542 = vmatpush.msrb.mxu2 %v3115_v30 }
  0x55   :  { %2451 = vmatmul.msk.f32.gmra.mxu2 %vm207_vm0, %v122_v10  ;;  %561 = vmatpush.msrb.mxu3 %v3117_v31 }
  0x56   :  { %2459 = vmatmul.msk.f32.gmra.mxu3 %vm207_vm0, %v122_v10  ;;  %503 = vmatpush.msra.mxu0 %v3111_v29  ;;  %v5294_v10 = vld [vmem:[#allocation28_spill] sm:$0xff] }
  0x57   :  { %562 = vmatpush.msrb.mxu3 %v3140_v36  ;;  %523 = vmatpush.msra.mxu1 %v3128_v33 }
  0x58   :  { %543 = vmatpush.msrb.mxu2 %v3134_v35  ;;  %504 = vmatpush.msra.mxu0 %v3130_v34 }
  0x59   :  { %563 = vmatpush.msrb.mxu3 %v3154_v40  ;;  %524 = vmatpush.msra.mxu1 %v3146_v37 }
  0x5a   :  { %544 = vmatpush.msrb.mxu2 %v3152_v39  ;;  %505 = vmatpush.msra.mxu0 %v3148_v38 }
  0x5b   :  { %564 = vmatpush.msrb.mxu3 %v3166_v44  ;;  %525 = vmatpush.msra.mxu1 %v3156_v41 }
  0x5c   :  { %545 = vmatpush.msrb.mxu2 %v3164_v43  ;;  %506 = vmatpush.msra.mxu0 %v3158_v42 }
  0x5d   :  { %2452 = vmatmul.msk.f32.gmra.mxu2 %vm207_vm0, %v3025_v5  ;;  %565 = vmatpush.msrb.mxu3 %v3189_v49 }
  0x5e   :  { %2460 = vmatmul.msk.f32.gmra.mxu3 %vm207_vm0, %v3025_v5  ;;  %526 = vmatpush.msra.mxu1 %v3177_v46  ;;  %v5292_v5 = vld [vmem:[#allocation23_spill] sm:$0xff] }
  0x5f   :  { %546 = vmatpush.msrb.mxu2 %v3187_v48  ;;  %566 = vmatpush.msrb.mxu3 %v3203_v53 }
  0x60   :  { %507 = vmatpush.msra.mxu0 %v3179_v47  ;;  %527 = vmatpush.msra.mxu1 %v3195_v50 }
  0x61   :  { %547 = vmatpush.msrb.mxu2 %v3201_v52  ;;  %567 = vmatpush.msrb.mxu3 %v3215_v57 }
  0x62   :  { %508 = vmatpush.msra.mxu0 %v3197_v51  ;;  %528 = vmatpush.msra.mxu1 %v3205_v54 }
  0x63   :  { %548 = vmatpush.msrb.mxu2 %v3213_v56  ;;  %568 = vmatpush.msrb.mxu3 %v3238_v62 }
  0x64   :  { %509 = vmatpush.msra.mxu0 %v3207_v55  ;;  %529 = vmatpush.msra.mxu1 %v3226_v59 }
  0x65   :  { %2453 = vmatmul.msk.f32.gmra.mxu2 %vm207_vm0, %v3073_v19  ;;  %569 = vmatpush.msrb.mxu3 %v3252_v2 }
  0x66   :  { %2461 = vmatmul.msk.f32.gmra.mxu3 %vm207_vm0, %v3073_v19  ;;  %549 = vmatpush.msrb.mxu2 %v3236_v61  ;;  %v5295_v19 = vld [vmem:[#allocation27_spill] sm:$0xff] }
  0x67   :  { %510 = vmatpush.msra.mxu0 %v3228_v60  ;;  %530 = vmatpush.msra.mxu1 %v3244_v63 }
  0x68   :  { %550 = vmatpush.msrb.mxu2 %v3250_v1  ;;  %570 = vmatpush.msrb.mxu3 %v3264_v7 }
  0x69   :  { %511 = vmatpush.msra.mxu0 %v5292_v5  ;;  %531 = vmatpush.msra.mxu1 %v5293_v58  ;;  %v5296_v5 = vld [vmem:[#allocation32_spill] sm:$0xff] }
  0x6a   :  { %551 = vmatpush.msrb.mxu2 %v5294_v10  ;;  %571 = vmatpush.msrb.mxu3 %v3289_v3 }
  0x6b   :  { %512 = vmatpush.msra.mxu0 %v5295_v19  ;;  %532 = vmatpush.msra.mxu1 %v3273_v11 }
  0x6c   :  { %572 = vmatpush.msrb.mxu3 %v3295_v0  ;;  %552 = vmatpush.msrb.mxu2 %v3287_v4 }
  0x6d   :  { %452 = vmatmul.f32.vlgmr.msra.gmra.mxu2 %v5078_v32  ;;  %513 = vmatpush.msra.mxu0 %v3275_v18 }
  0x6e   :  { %472 = vmatmul.f32.vlgmr.msra.gmra.mxu3 %v5078_v32  ;;  %533 = vmatpush.msra.mxu1 %v5296_v5  ;;  %v5297_v32 = vld [vmem:[#allocation23_spill] sm:$0xff] }
  0x6f   :  { %553 = vmatpush.msrb.mxu2 %v3293_v6  ;;  %573 = vmatpush.msrb.mxu3 %v3300_v45 }
  0x70   :  { %600 = vmatpush.msrb.mxu0 %v3037_v8  ;;  %620 = vmatpush.msrb.mxu1 %v3039_v9 }
  0x71   :  { %640 = vmatpush.msra.mxu2 %v3051_v12  ;;  %660 = vmatpush.msra.mxu3 %v3059_v15 }
  0x72   :  { %601 = vmatpush.msrb.mxu0 %v3053_v13  ;;  %621 = vmatpush.msrb.mxu1 %v3057_v14 }
  0x73   :  { %641 = vmatpush.msra.mxu2 %v3061_v16  ;;  %661 = vmatpush.msra.mxu3 %v3091_v23 }
  0x74   :  { %602 = vmatpush.msrb.mxu0 %v3063_v17  ;;  %622 = vmatpush.msrb.mxu1 %v3081_v20 }
  0x75   :  { %642 = vmatpush.msra.mxu2 %v3089_v22  ;;  %662 = vmatpush.msra.mxu3 %v3105_v27 }
  0x76   :  { %603 = vmatpush.msrb.mxu0 %v3083_v21  ;;  %623 = vmatpush.msrb.mxu1 %v3097_v24 }
  0x77   :  { %643 = vmatpush.msra.mxu2 %v3103_v26  ;;  %663 = vmatpush.msra.mxu3 %v3117_v31 }
  0x78   :  { %604 = vmatpush.msrb.mxu0 %v3099_v25  ;;  %624 = vmatpush.msrb.mxu1 %v3108_v28 }
  0x79   :  { %644 = vmatpush.msra.mxu2 %v3115_v30  ;;  %664 = vmatpush.msra.mxu3 %v3140_v36 }
  0x7a   :  { %605 = vmatpush.msrb.mxu0 %v3111_v29  ;;  %625 = vmatpush.msrb.mxu1 %v3128_v33 }
  0x7b   :  { %645 = vmatpush.msra.mxu2 %v3134_v35  ;;  %665 = vmatpush.msra.mxu3 %v3154_v40 }
  0x7c   :  { %606 = vmatpush.msrb.mxu0 %v3130_v34  ;;  %626 = vmatpush.msrb.mxu1 %v3146_v37 }
  0x7d   :  { %646 = vmatpush.msra.mxu2 %v3152_v39  ;;  %666 = vmatpush.msra.mxu3 %v3166_v44 }
  0x7e   :  { %607 = vmatpush.msrb.mxu0 %v3148_v38  ;;  %627 = vmatpush.msrb.mxu1 %v3156_v41 }
  0x7f   :  { %647 = vmatpush.msra.mxu2 %v3164_v43  ;;  %667 = vmatpush.msra.mxu3 %v3189_v49 }
  0x80   :  { %608 = vmatpush.msrb.mxu0 %v3158_v42  ;;  %628 = vmatpush.msrb.mxu1 %v3177_v46 }
  0x81   :  { %648 = vmatpush.msra.mxu2 %v3187_v48  ;;  %668 = vmatpush.msra.mxu3 %v3203_v53 }
  0x82   :  { %609 = vmatpush.msrb.mxu0 %v3179_v47  ;;  %629 = vmatpush.msrb.mxu1 %v3195_v50 }
  0x83   :  { %649 = vmatpush.msra.mxu2 %v3201_v52  ;;  %669 = vmatpush.msra.mxu3 %v3215_v57 }
  0x84   :  { %610 = vmatpush.msrb.mxu0 %v3197_v51  ;;  %630 = vmatpush.msrb.mxu1 %v3205_v54 }
  0x85   :  { %650 = vmatpush.msra.mxu2 %v3213_v56  ;;  %670 = vmatpush.msra.mxu3 %v3238_v62 }
  0x86   :  { %611 = vmatpush.msrb.mxu0 %v3207_v55  ;;  %631 = vmatpush.msrb.mxu1 %v3226_v59 }
  0x87   :  { %651 = vmatpush.msra.mxu2 %v3236_v61  ;;  %671 = vmatpush.msra.mxu3 %v3252_v2 }
  0x88   :  { %612 = vmatpush.msrb.mxu0 %v3228_v60  ;;  %632 = vmatpush.msrb.mxu1 %v3244_v63 }
  0x89   :  { %652 = vmatpush.msra.mxu2 %v3250_v1  ;;  %672 = vmatpush.msra.mxu3 %v3264_v7 }
  0x8a   :  { %613 = vmatpush.msrb.mxu0 %v5297_v32  ;;  %633 = vmatpush.msrb.mxu1 %v5293_v58 }
  0x8b   :  { %653 = vmatpush.msra.mxu2 %v5294_v10  ;;  %673 = vmatpush.msra.mxu3 %v3289_v3 }
  0x8c   :  { %614 = vmatpush.msrb.mxu0 %v5295_v19  ;;  %634 = vmatpush.msrb.mxu1 %v3273_v11 }
  0x8d   :  { %654 = vmatpush.msra.mxu2 %v3287_v4  ;;  %674 = vmatpush.msra.mxu3 %v3295_v0 }
  0x8e   :  { %615 = vmatpush.msrb.mxu0 %v3275_v18  ;;  %635 = vmatpush.msrb.mxu1 %v5296_v5 }
  0x8f   :  { %655 = vmatpush.msra.mxu2 %v3293_v6  ;;  %675 = vmatpush.msra.mxu3 %v3300_v45 }
  0x99   :  { %v249_v19 = vpop.f32.mrf.mxu0 }
  0x9a   :  { %v290_v3 = vpop.f32.mrf.mxu1 }
  0x9f   :  { %v3451_v58 = vpop.f32.mrf.mxu2 }
  0xa0   :  { %5298 = vst [vmem:[#allocation38_spill] sm:$0xff] %v3451_v58  ;;  %v3453_v10 = vpop.f32.mrf.mxu3 }
  0xa1   :  { %5299 = vst [vmem:[#allocation39_spill] sm:$0xff] %v3453_v10  ;;  %v3461_v0 = vpop.f32.mrf.mxu0 }
  0xa2   :  { %v3459_v4 = vpop.f32.mrf.mxu1  ;;  %5303 = vst [vmem:[#allocation43_spill] sm:$0xff] %v3461_v0 }
  0xa3   :  { %5302 = vst [vmem:[#allocation42_spill] sm:$0xff] %v3459_v4 }
  0xa8   :  { %v3455_v32 = vpop.f32.mrf.mxu2 }
  0xa9   :  { %5300 = vst [vmem:[#allocation40_spill] sm:$0xff] %v3455_v32  ;;  %v3457_v11 = vpop.f32.mrf.mxu3  ;;  %v3465_v6 = vpop.f32.mrf.mxu0 }
  0xaa   :  { %5301 = vst [vmem:[#allocation41_spill] sm:$0xff] %v3457_v11  ;;  %v3463_v7 = vpop.f32.mrf.mxu1 }
  0xab   :  { %5304 = vst [vmem:[#allocation44_spill] sm:$0xff] %v3463_v7 }
  0xac   :  { %5305 = vst [vmem:[#allocation45_spill] sm:$0xff] %v3465_v6 }
  0xb0   :  { %v331_v18 = vpop.f32.mrf.mxu2 }
  0xb1   :  { %v372_v5 = vpop.f32.mrf.mxu3  ;;  %v3477_v11 = vpop.f32.mrf.mxu0 }
  0xb2   :  { %v3471_v10 = vpop.f32.mrf.mxu1  ;;  %5311 = vst [vmem:[#allocation51_spill] sm:$0xff] %v3477_v11 }
  0xb3   :  { %5308 = vst [vmem:[#allocation48_spill] sm:$0xff] %v3471_v10 }
  0xb8   :  { %v3467_v45 = vpop.f32.mrf.mxu2 }
  0xb9   :  { %5306 = vst [vmem:[#allocation46_spill] sm:$0xff] %v3467_v45  ;;  %v3469_v58 = vpop.f32.mrf.mxu3  ;;  %v3485_v7 = vpop.f32.mrf.mxu0 }
  0xba   :  { %5307 = vst [vmem:[#allocation47_spill] sm:$0xff] %v3469_v58  ;;  %v3483_v63 = vpop.f32.mrf.mxu1 }
  0xbb   :  { %5314 = vst [vmem:[#allocation54_spill] sm:$0xff] %v3483_v63 }
  0xbc   :  { %5315 = vst [vmem:[#allocation55_spill] sm:$0xff] %v3485_v7 }
  0xc0   :  { %v3473_v1 = vpop.f32.mrf.mxu2 }
  0xc1   :  { %5309 = vst [vmem:[#allocation49_spill] sm:$0xff] %v3473_v1  ;;  %v3475_v32 = vpop.f32.mrf.mxu3  ;;  %v3493_v10 = vpop.f32.mrf.mxu0 }
  0xc2   :  { %5310 = vst [vmem:[#allocation50_spill] sm:$0xff] %v3475_v32  ;;  %v3491_v58 = vpop.f32.mrf.mxu1 }
  0xc3   :  { %5318 = vst [vmem:[#allocation58_spill] sm:$0xff] %v3491_v58 }
  0xc4   :  { %5319 = vst [vmem:[#allocation59_spill] sm:$0xff] %v3493_v10 }
  0xc8   :  { %v3479_v4 = vpop.f32.mrf.mxu2 }
  0xc9   :  { %5312 = vst [vmem:[#allocation52_spill] sm:$0xff] %v3479_v4  ;;  %v3481_v0 = vpop.f32.mrf.mxu3 }
  0xca   :  { %5313 = vst [vmem:[#allocation53_spill] sm:$0xff] %v3481_v0  ;;  %v197_v0 = vld [vmem:[%s5059_s3] sm:$0xf]  ;;  %v433_v63 = vpop.f32.mrf.mxu1 }
  0xcb   :  { %v3502_v4 = vperm.slane %v197_v0, 1  ;;  %v3504_v7 = vperm.slane %v197_v0, 0  ;;  %v3516_v55 = vperm.slane %v197_v0, 2 }
  0xcd   :  { %5322 = vst [vmem:[#allocation62_spill] sm:$0xff] %v3502_v4  ;;  %v250_v58 = vadd.f32 %v249_v19, %v3504_v7 }
  0xce   :  { %5323 = vst [vmem:[#allocation63_spill] sm:$0xff] %v3504_v7 }
  0xd0   :  { %v3487_v6 = vpop.f32.mrf.mxu2 }
  0xd1   :  { %5316 = vst [vmem:[#allocation56_spill] sm:$0xff] %v3487_v6  ;;  %v3489_v45 = vpop.f32.mrf.mxu3  ;;  %v291_v6 = vadd.f32 %v290_v3, %v3502_v4  ;;  %v3518_v3 = vperm.slane %v197_v0, 3 }
  0xd2   :  { %5317 = vst [vmem:[#allocation57_spill] sm:$0xff] %v3489_v45  ;;  %v413_v45 = vpop.f32.mrf.mxu0 }
  0xd3   :  { %v477_v10 = vadd.f32 %v433_v63, %v291_v6  ;;  %v373_v63 = vadd.f32 %v372_v5, %v3518_v3 }
  0xd5   :  { %v484_v60 = vmul.f32 0.5, %v477_v10 }
  0xd7   :  { %2479 = vtanh.f32 %v484_v60 }
  0xd8   :  { %v3495_v1 = vpop.f32.mrf.mxu2 }
  0xd9   :  { %5320 = vst [vmem:[#allocation60_spill] sm:$0xff] %v3495_v1  ;;  %v3497_v32 = vpop.f32.mrf.mxu3 }
  0xda   :  { %5321 = vst [vmem:[#allocation61_spill] sm:$0xff] %v3497_v32  ;;  %v476_v32 = vadd.f32 %v413_v45, %v250_v58 }
  0xdc   :  { %v480_v2 = vmul.f32 0.5, %v476_v32 }
  0xdd   :  { %v2480_v4 = vpop.eup %2479 }
  0xde   :  { %2481 = vtanh.f32 %v480_v2  ;;  %v486_v32 = vmul.f32 0.5, %v2480_v4  ;;  %v5333_v4 = vld [vmem:[#allocation20_spill] sm:$0xff] }
  0xe0   :  { %v3507_v11 = vpop.f32.mrf.mxu2 }
  0xe1   :  { %5324 = vst [vmem:[#allocation64_spill] sm:$0xff] %v3507_v11  ;;  %v3510_v1 = vpop.f32.mrf.mxu3  ;;  %v332_v11 = vadd.f32 %v331_v18, %v3516_v55 }
  0xe2   :  { %5325 = vst [vmem:[#allocation65_spill] sm:$0xff] %v3510_v1 }
  0xe4   :  { %v2482_v19 = vpop.eup %2481 }
  0xe5   :  { %v482_v60 = vmul.f32 0.5, %v2482_v19  ;;  %v5336_v19 = vld [vmem:[#allocation22_spill] sm:$0xff] }
  0xe7   :  { %v483_v1 = vadd.f32 0.5, %v482_v60  ;;  %v5341_v60 = vld [vmem:[#allocation28_spill] sm:$0xff] }
  0xe8   :  { %v3512_v61 = vpop.f32.mrf.mxu2 }
  0xe9   :  { %5326 = vst [vmem:[#allocation66_spill] sm:$0xff] %v3512_v61  ;;  %v3514_v59 = vpop.f32.mrf.mxu3 }
  0xea   :  { %5327 = vst [vmem:[#allocation67_spill] sm:$0xff] %v3514_v59  ;;  %v487_v59 = vadd.f32 0.5, %v486_v32  ;;  %v5339_v32 = vld [vmem:[#allocation23_spill] sm:$0xff] }
  0xec   :  { %v493_v0 = vmul.f32 0.0, %v487_v59  ;;  %v5329_v59 = vld [vmem:[#allocation17_spill] sm:$0xff] }
  0xf0   :  { %v453_v6 = vpop.f32.mrf.mxu2 }
  0xf1   :  { %v478_v45 = vadd.f32 %v453_v6, %v332_v11  ;;  %v473_v58 = vpop.f32.mrf.mxu3 }
  0xf2   :  { %v479_v10 = vadd.f32 %v473_v58, %v373_v63  ;;  %v5335_v63 = vld [vmem:[#allocation19_spill] sm:$0xff]  ;;  %v5338_v58 = vld [vmem:[#allocation29_spill] sm:$0xff] }
  0xf3   :  { %2483 = vtanh.f32 %v478_v45  ;;  %v5337_v45 = vld [vmem:[#allocation24_spill] sm:$0xff] }
  0xf4   :  { %v489_v61 = vmul.f32 0.5, %v479_v10  ;;  %v5340_v10 = vld [vmem:[#allocation26_spill] sm:$0xff] }
  0xf6   :  { %2485 = vtanh.f32 %v489_v61  ;;  %v5330_v61 = vld [vmem:[#allocation21_spill] sm:$0xff] }
  0xf9   :  { %v2484_v2 = vpop.eup %2483 }
  0xfa   :  { %v494_v7 = vmul.f32 %v2484_v2, %v483_v1  ;;  %v5332_v1 = vld [vmem:[#allocation18_spill] sm:$0xff] }
  0xfb   :  { %v5342_v2 = vld [vmem:[#allocation34_spill] sm:$0xff] }
  0xfc   :  { %v2486_v62 = vpop.eup %2485  ;;  %v3522_v56 = vadd.f32 %v494_v7, %v493_v0  ;;  %v5334_v7 = vld [vmem:[#allocation25_spill] sm:$0xff]  ;;  %v5343_v0 = vld [vmem:[#allocation27_spill] sm:$0xff] }
  0xfd   :  { %v491_v18 = vmul.f32 0.5, %v2486_v62  ;;  %v5331_v62 = vld [vmem:[#allocation16_spill] sm:$0xff] }
  0xfe   :  { %2487 = vtanh.f32 %v3522_v56 }
  0xff   :  { %v492_v5 = vadd.f32 0.5, %v491_v18  ;;  %v5344_v18 = vld [vmem:[#allocation30_spill] sm:$0xff] }
 0x104   :  { %v2488_v11 = vpop.eup %2487 }
 0x105   :  { %v3525_v6 = vmul.f32 %v2488_v11, %v492_v5  ;;  %v5345_v5 = vld [vmem:[#allocation33_spill] sm:$0xff]  ;;  %v5346_v11 = vld [vmem:[#allocation36_spill] sm:$0xff] }
 0x107   :  { %5328 = vst [vmem:[#allocation68_spill] sm:$0xff] %v3525_v6  ;;  %514 = vmatmul.f32.vlgmr.msra.gmra.mxu0 %v3525_v6  ;;  %534 = vmatmul.f32.vlgmr.msra.gmra.mxu1 %v3525_v6 }
 0x108   :  { %554 = vmatmul.f32.vlgmr.msrb.gmra.mxu2 %v3525_v6  ;;  %574 = vmatmul.f32.vlgmr.msrb.gmra.mxu3 %v3525_v6  ;;  %v5347_v6 = vld [vmem:[#allocation31_spill] sm:$0xff] }
 0x109   :  { %702 = vmatpush.msra.mxu0 %v3037_v8  ;;  %722 = vmatpush.msra.mxu1 %v3039_v9 }
 0x10a   :  { %742 = vmatpush.msrb.mxu2 %v3051_v12  ;;  %762 = vmatpush.msrb.mxu3 %v3059_v15 }
 0x10b   :  { %703 = vmatpush.msra.mxu0 %v3053_v13  ;;  %723 = vmatpush.msra.mxu1 %v3057_v14 }
 0x10c   :  { %743 = vmatpush.msrb.mxu2 %v3061_v16  ;;  %763 = vmatpush.msrb.mxu3 %v3091_v23 }
 0x10d   :  { %704 = vmatpush.msra.mxu0 %v3063_v17  ;;  %724 = vmatpush.msra.mxu1 %v3081_v20 }
 0x10e   :  { %744 = vmatpush.msrb.mxu2 %v3089_v22  ;;  %764 = vmatpush.msrb.mxu3 %v3105_v27 }
 0x10f   :  { %705 = vmatpush.msra.mxu0 %v3083_v21  ;;  %725 = vmatpush.msra.mxu1 %v3097_v24 }
 0x110   :  { %745 = vmatpush.msrb.mxu2 %v3103_v26  ;;  %765 = vmatpush.msrb.mxu3 %v3117_v31 }
 0x111   :  { %706 = vmatpush.msra.mxu0 %v3099_v25  ;;  %726 = vmatpush.msra.mxu1 %v3108_v28 }
 0x112   :  { %746 = vmatpush.msrb.mxu2 %v3115_v30  ;;  %766 = vmatpush.msrb.mxu3 %v3140_v36 }
 0x113   :  { %707 = vmatpush.msra.mxu0 %v3111_v29  ;;  %727 = vmatpush.msra.mxu1 %v3128_v33 }
 0x114   :  { %747 = vmatpush.msrb.mxu2 %v3134_v35  ;;  %767 = vmatpush.msrb.mxu3 %v3154_v40 }
 0x115   :  { %708 = vmatpush.msra.mxu0 %v3130_v34  ;;  %728 = vmatpush.msra.mxu1 %v3146_v37 }
 0x116   :  { %748 = vmatpush.msrb.mxu2 %v3152_v39  ;;  %768 = vmatpush.msrb.mxu3 %v3166_v44 }
 0x117   :  { %709 = vmatpush.msra.mxu0 %v3148_v38  ;;  %729 = vmatpush.msra.mxu1 %v3156_v41 }
 0x118   :  { %749 = vmatpush.msrb.mxu2 %v3164_v43  ;;  %769 = vmatpush.msrb.mxu3 %v3189_v49 }
 0x119   :  { %710 = vmatpush.msra.mxu0 %v3158_v42  ;;  %730 = vmatpush.msra.mxu1 %v3177_v46 }
 0x11a   :  { %750 = vmatpush.msrb.mxu2 %v3187_v48  ;;  %770 = vmatpush.msrb.mxu3 %v3203_v53 }
 0x11b   :  { %711 = vmatpush.msra.mxu0 %v3179_v47  ;;  %731 = vmatpush.msra.mxu1 %v3195_v50 }
 0x11c   :  { %751 = vmatpush.msrb.mxu2 %v3201_v52  ;;  %771 = vmatpush.msrb.mxu3 %v3215_v57 }
 0x11d   :  { %712 = vmatpush.msra.mxu0 %v3197_v51  ;;  %732 = vmatpush.msra.mxu1 %v3205_v54 }
 0x11e   :  { %752 = vmatpush.msrb.mxu2 %v5329_v59  ;;  %772 = vmatpush.msrb.mxu3 %v5330_v61 }
 0x11f   :  { %713 = vmatpush.msra.mxu0 %v5331_v62  ;;  %733 = vmatpush.msra.mxu1 %v5332_v1 }
 0x120   :  { %753 = vmatpush.msrb.mxu2 %v5333_v4  ;;  %773 = vmatpush.msrb.mxu3 %v5334_v7 }
 0x121   :  { %714 = vmatpush.msra.mxu0 %v5335_v63  ;;  %734 = vmatpush.msra.mxu1 %v5336_v19  ;;  %v5354_v63 = vld [vmem:[#allocation42_spill] sm:$0xff] }
 0x122   :  { %754 = vmatpush.msrb.mxu2 %v5337_v45  ;;  %774 = vmatpush.msrb.mxu3 %v5338_v58  ;;  %v5348_v45 = vld [vmem:[#allocation32_spill] sm:$0xff]  ;;  %v5349_v58 = vld [vmem:[#allocation35_spill] sm:$0xff] }
 0x123   :  { %715 = vmatpush.msra.mxu0 %v5339_v32  ;;  %735 = vmatpush.msra.mxu1 %v5340_v10  ;;  %v5350_v32 = vld [vmem:[#allocation37_spill] sm:$0xff]  ;;  %v5351_v10 = vld [vmem:[#allocation63_spill] sm:$0xff] }
 0x124   :  { %755 = vmatpush.msrb.mxu2 %v5341_v60  ;;  %775 = vmatpush.msrb.mxu3 %v5342_v2  ;;  %v5352_v60 = vld [vmem:[#allocation43_spill] sm:$0xff]  ;;  %v5353_v2 = vld [vmem:[#allocation62_spill] sm:$0xff] }
 0x125   :  { %716 = vmatpush.msra.mxu0 %v5343_v0  ;;  %736 = vmatpush.msra.mxu1 %v5344_v18  ;;  %v253_v19 = vadd.f32 %v5352_v60, %v5351_v10  ;;  %v294_v0 = vadd.f32 %v5354_v63, %v5353_v2 }
 0x126   :  { %756 = vmatpush.msrb.mxu2 %v5345_v5  ;;  %776 = vmatpush.msrb.mxu3 %v5346_v11 }
 0x127   :  { %717 = vmatpush.msra.mxu0 %v5347_v6  ;;  %737 = vmatpush.msra.mxu1 %v5348_v45  ;;  %v5355_v6 = vld [vmem:[#allocation46_spill] sm:$0xff] }
 0x128   :  { %757 = vmatpush.msrb.mxu2 %v5349_v58  ;;  %777 = vmatpush.msrb.mxu3 %v5350_v32  ;;  %v335_v45 = vadd.f32 %v5355_v6, %v3516_v55  ;;  %v5356_v58 = vld [vmem:[#allocation47_spill] sm:$0xff] }
 0x129   :  { %v376_v62 = vadd.f32 %v5356_v58, %v3518_v3 }
 0x184   :  { %v515_v7 = vpop.f32.mrf.mxu0  ;;  %v535_v18 = vpop.f32.mrf.mxu1 }
 0x185   :  { %v578_v4 = vadd.f32 %v515_v7, %v253_v19  ;;  %v579_v5 = vadd.f32 %v535_v18, %v294_v0 }
 0x187   :  { %v582_v1 = vmul.f32 0.5, %v578_v4  ;;  %v586_v11 = vmul.f32 0.5, %v579_v5 }
 0x189   :  { %2489 = vtanh.f32 %v582_v1 }
 0x18a   :  { %2491 = vtanh.f32 %v586_v11 }
 0x18b   :  { %v555_v32 = vpop.f32.mrf.mxu2  ;;  %v575_v61 = vpop.f32.mrf.mxu3 }
 0x18c   :  { %v580_v60 = vadd.f32 %v555_v32, %v335_v45  ;;  %v581_v10 = vadd.f32 %v575_v61, %v376_v62 }
 0x18e   :  { %2493 = vtanh.f32 %v580_v60  ;;  %v591_v63 = vmul.f32 0.5, %v581_v10 }
 0x18f   :  { %v2490_v2 = vpop.eup %2489 }
 0x190   :  { %v2492_v59 = vpop.eup %2491  ;;  %v584_v7 = vmul.f32 0.5, %v2490_v2  ;;  %2495 = vtanh.f32 %v591_v63 }
 0x191   :  { %v588_v19 = vmul.f32 0.5, %v2492_v59 }
 0x192   :  { %v585_v4 = vadd.f32 0.5, %v584_v7 }
 0x193   :  { %v589_v1 = vadd.f32 0.5, %v588_v19 }
 0x194   :  { %v2494_v0 = vpop.eup %2493 }
 0x195   :  { %v595_v6 = vmul.f32 %v589_v1, %v3522_v56  ;;  %v596_v18 = vmul.f32 %v2494_v0, %v585_v4 }
 0x196   :  { %v2496_v5 = vpop.eup %2495 }
 0x197   :  { %v3604_v58 = vadd.f32 %v596_v18, %v595_v6  ;;  %v593_v45 = vmul.f32 0.5, %v2496_v5 }
 0x199   :  { %2497 = vtanh.f32 %v3604_v58  ;;  %v594_v61 = vadd.f32 0.5, %v593_v45 }
 0x19f   :  { %v2498_v62 = vpop.eup %2497 }
 0x1a0   :  { %v3607_v32 = vmul.f32 %v2498_v62, %v594_v61  ;;  %v3698_v61 = vld [vmem:[#allocation2 + $0x1e8] sm:$0xff]  ;;  %v3701_v62 = vld [vmem:[#allocation2 + $0x1f0] sm:$0xff] }
 0x1a2   :  { %5357 = vst [vmem:[#allocation43_spill] sm:$0xff] %v3607_v32  ;;  %616 = vmatmul.f32.vlgmr.msrb.gmra.mxu0 %v3607_v32  ;;  %636 = vmatmul.f32.vlgmr.msrb.gmra.mxu1 %v3607_v32 }
 0x1a3   :  { %656 = vmatmul.f32.vlgmr.msra.gmra.mxu2 %v3607_v32  ;;  %676 = vmatmul.f32.vlgmr.msra.gmra.mxu3 %v3607_v32  ;;  %v3828_v32 = vld [vmem:[#allocation2 + $0x88] sm:$0xff] }
 0x1a4   :  { %804 = vmatpush.msrb.mxu0 %v3037_v8  ;;  %824 = vmatpush.msrb.mxu1 %v3039_v9  ;;  %v5358_v8 = vld [vmem:[#allocation17_spill] sm:$0xff] }
 0x1a5   :  { %844 = vmatpush.msra.mxu2 %v3051_v12  ;;  %864 = vmatpush.msra.mxu3 %v3059_v15  ;;  %v5359_v9 = vld [vmem:[#allocation21_spill] sm:$0xff]  ;;  %v5360_v12 = vld [vmem:[#allocation16_spill] sm:$0xff] }
 0x1a6   :  { %805 = vmatpush.msrb.mxu0 %v3053_v13  ;;  %825 = vmatpush.msrb.mxu1 %v3057_v14  ;;  %v5361_v13 = vld [vmem:[#allocation18_spill] sm:$0xff]  ;;  %v5362_v14 = vld [vmem:[#allocation20_spill] sm:$0xff]  ;;  %v5363_v15 = vld [vmem:[#allocation25_spill] sm:$0xff]  ;;  %5391 = vst [vmem:[#allocation16_spill] sm:$0xff] %v3828_v32 }
 0x1a7   :  { %845 = vmatpush.msra.mxu2 %v3061_v16  ;;  %865 = vmatpush.msra.mxu3 %v3091_v23  ;;  %v5364_v16 = vld [vmem:[#allocation19_spill] sm:$0xff]  ;;  %v5369_v23 = vld [vmem:[#allocation26_spill] sm:$0xff] }
 0x1a8   :  { %806 = vmatpush.msrb.mxu0 %v3063_v17  ;;  %826 = vmatpush.msrb.mxu1 %v3081_v20  ;;  %v5365_v17 = vld [vmem:[#allocation22_spill] sm:$0xff]  ;;  %v5366_v20 = vld [vmem:[#allocation24_spill] sm:$0xff] }
 0x1a9   :  { %846 = vmatpush.msra.mxu2 %v3089_v22  ;;  %866 = vmatpush.msra.mxu3 %v3105_v27  ;;  %v5368_v22 = vld [vmem:[#allocation23_spill] sm:$0xff]  ;;  %v5373_v27 = vld [vmem:[#allocation30_spill] sm:$0xff] }
 0x1aa   :  { %807 = vmatpush.msrb.mxu0 %v3083_v21  ;;  %827 = vmatpush.msrb.mxu1 %v3097_v24  ;;  %v5367_v21 = vld [vmem:[#allocation29_spill] sm:$0xff]  ;;  %v5370_v24 = vld [vmem:[#allocation28_spill] sm:$0xff] }
 0x1ab   :  { %847 = vmatpush.msra.mxu2 %v3103_v26  ;;  %867 = vmatpush.msra.mxu3 %v3117_v31  ;;  %v5372_v26 = vld [vmem:[#allocation27_spill] sm:$0xff]  ;;  %v5377_v31 = vld [vmem:[#allocation32_spill] sm:$0xff] }
 0x1ac   :  { %808 = vmatpush.msrb.mxu0 %v3099_v25  ;;  %828 = vmatpush.msrb.mxu1 %v3108_v28  ;;  %v5371_v25 = vld [vmem:[#allocation34_spill] sm:$0xff]  ;;  %v5374_v28 = vld [vmem:[#allocation33_spill] sm:$0xff] }
 0x1ad   :  { %848 = vmatpush.msra.mxu2 %v3115_v30  ;;  %868 = vmatpush.msra.mxu3 %v3140_v36  ;;  %v5376_v30 = vld [vmem:[#allocation31_spill] sm:$0xff]  ;;  %v5381_v36 = vld [vmem:[#allocation45_spill] sm:$0xff] }
 0x1ae   :  { %809 = vmatpush.msrb.mxu0 %v3111_v29  ;;  %829 = vmatpush.msrb.mxu1 %v3128_v33  ;;  %v5375_v29 = vld [vmem:[#allocation36_spill] sm:$0xff]  ;;  %v5378_v33 = vld [vmem:[#allocation35_spill] sm:$0xff] }
 0x1af   :  { %849 = vmatpush.msra.mxu2 %v3134_v35  ;;  %869 = vmatpush.msra.mxu3 %v3154_v40  ;;  %v5380_v35 = vld [vmem:[#allocation63_spill] sm:$0xff] }
 0x1b0   :  { %810 = vmatpush.msrb.mxu0 %v3130_v34  ;;  %830 = vmatpush.msrb.mxu1 %v3146_v37  ;;  %v5379_v34 = vld [vmem:[#allocation37_spill] sm:$0xff]  ;;  %v256_v37 = vadd.f32 %v5381_v36, %v5380_v35  ;;  %v3728_v36 = vld [vmem:[#allocation2 + $0x1b8] sm:$0xff] }
 0x1b1   :  { %850 = vmatpush.msra.mxu2 %v3152_v39  ;;  %870 = vmatpush.msra.mxu3 %v3166_v44  ;;  %v5383_v39 = vld [vmem:[#allocation44_spill] sm:$0xff] }
 0x1b2   :  { %811 = vmatpush.msrb.mxu0 %v3148_v38  ;;  %831 = vmatpush.msrb.mxu1 %v3156_v41  ;;  %v5382_v38 = vld [vmem:[#allocation62_spill] sm:$0xff] }
 0x1b3   :  { %851 = vmatpush.msra.mxu2 %v3164_v43  ;;  %871 = vmatpush.msra.mxu3 %v3189_v49  ;;  %v297_v40 = vadd.f32 %v5383_v39, %v5382_v38  ;;  %v3734_v39 = vld [vmem:[#allocation2 + $0x188] sm:$0xff] }
 0x1b4   :  { %812 = vmatpush.msrb.mxu0 %v3158_v42  ;;  %832 = vmatpush.msrb.mxu1 %v3177_v46 }
 0x1b5   :  { %852 = vmatpush.msra.mxu2 %v3187_v48  ;;  %872 = vmatpush.msra.mxu3 %v3203_v53  ;;  %v5384_v48 = vld [vmem:[#allocation49_spill] sm:$0xff] }
 0x1b6   :  { %813 = vmatpush.msrb.mxu0 %v3179_v47  ;;  %833 = vmatpush.msrb.mxu1 %v3195_v50  ;;  %v338_v49 = vadd.f32 %v5384_v48, %v3516_v55  ;;  %v5385_v50 = vld [vmem:[#allocation50_spill] sm:$0xff]  ;;  %v3758_v48 = vld [vmem:[#allocation2 + $0x148] sm:$0xff] }
 0x1b7   :  { %853 = vmatpush.msra.mxu2 %v3201_v52  ;;  %873 = vmatpush.msra.mxu3 %v3215_v57 }
 0x1b8   :  { %814 = vmatpush.msrb.mxu0 %v3197_v51  ;;  %834 = vmatpush.msrb.mxu1 %v3205_v54  ;;  %v379_v51 = vadd.f32 %v5385_v50, %v3518_v3  ;;  %v3764_v50 = vld [vmem:[#allocation2 + $0x158] sm:$0xff] }
 0x1b9   :  { %854 = vmatpush.msra.mxu2 %v5358_v8  ;;  %874 = vmatpush.msra.mxu3 %v5359_v9  ;;  %v3704_v8 = vld [vmem:[#allocation2 + $0x1f8] sm:$0xff] }
 0x1ba   :  { %815 = vmatpush.msrb.mxu0 %v5360_v12  ;;  %835 = vmatpush.msrb.mxu1 %v5361_v13  ;;  %v3707_v12 = vld [vmem:[#allocation2 + $0x1c0] sm:$0xff]  ;;  %v3710_v13 = vld [vmem:[#allocation2 + $0x1c8] sm:$0xff] }
 0x1bb   :  { %855 = vmatpush.msra.mxu2 %v5362_v14  ;;  %875 = vmatpush.msra.mxu3 %v5363_v15  ;;  %v3713_v14 = vld [vmem:[#allocation2 + $0x1d0] sm:$0xff] }
 0x1bc   :  { %816 = vmatpush.msrb.mxu0 %v5364_v16  ;;  %836 = vmatpush.msrb.mxu1 %v5365_v17  ;;  %v3716_v16 = vld [vmem:[#allocation2 + $0x1d8] sm:$0xff]  ;;  %v3719_v17 = vld [vmem:[#allocation2 + $0x1a0] sm:$0xff] }
 0x1bd   :  { %856 = vmatpush.msra.mxu2 %v5366_v20  ;;  %876 = vmatpush.msra.mxu3 %v5367_v21 }
 0x1be   :  { %817 = vmatpush.msrb.mxu0 %v5368_v22  ;;  %837 = vmatpush.msrb.mxu1 %v5369_v23  ;;  %v3722_v22 = vld [vmem:[#allocation2 + $0x1a8] sm:$0xff] }
 0x1bf   :  { %857 = vmatpush.msra.mxu2 %v5370_v24  ;;  %877 = vmatpush.msra.mxu3 %v5371_v25 }
 0x1c0   :  { %818 = vmatpush.msrb.mxu0 %v5372_v26  ;;  %838 = vmatpush.msrb.mxu1 %v5373_v27  ;;  %v3725_v26 = vld [vmem:[#allocation2 + $0x1b0] sm:$0xff] }
 0x1c1   :  { %858 = vmatpush.msra.mxu2 %v5374_v28  ;;  %878 = vmatpush.msra.mxu3 %v5375_v29 }
 0x1c2   :  { %819 = vmatpush.msrb.mxu0 %v5376_v30  ;;  %839 = vmatpush.msrb.mxu1 %v5377_v31 }
 0x1c3   :  { %859 = vmatpush.msra.mxu2 %v5378_v33  ;;  %879 = vmatpush.msra.mxu3 %v5379_v34 }
 0x21f   :  { %v617_v41 = vpop.f32.mrf.mxu0  ;;  %v637_v42 = vpop.f32.mrf.mxu1 }
 0x220   :  { %v680_v43 = vadd.f32 %v617_v41, %v256_v37  ;;  %v681_v44 = vadd.f32 %v637_v42, %v297_v40  ;;  %v3731_v37 = vld [vmem:[#allocation2 + $0x180] sm:$0xff]  ;;  %v3737_v40 = vld [vmem:[#allocation2 + $0x190] sm:$0xff]  ;;  %v3740_v41 = vld [vmem:[#allocation2 + $0x198] sm:$0xff] }
 0x221   :  { %v3743_v42 = vld [vmem:[#allocation2 + $0x160] sm:$0xff] }
 0x222   :  { %v684_v46 = vmul.f32 0.5, %v680_v43  ;;  %v688_v47 = vmul.f32 0.5, %v681_v44  ;;  %v3746_v43 = vld [vmem:[#allocation2 + $0x168] sm:$0xff]  ;;  %v3749_v44 = vld [vmem:[#allocation2 + $0x170] sm:$0xff] }
 0x224   :  { %2499 = vtanh.f32 %v684_v46  ;;  %v3752_v46 = vld [vmem:[#allocation2 + $0x178] sm:$0xff] }
 0x225   :  { %2501 = vtanh.f32 %v688_v47  ;;  %v3755_v47 = vld [vmem:[#allocation2 + $0x140] sm:$0xff] }
 0x226   :  { %v657_v52 = vpop.f32.mrf.mxu2  ;;  %v677_v53 = vpop.f32.mrf.mxu3 }
 0x227   :  { %v682_v54 = vadd.f32 %v657_v52, %v338_v49  ;;  %v683_v56 = vadd.f32 %v677_v53, %v379_v51  ;;  %v3761_v49 = vld [vmem:[#allocation2 + $0x150] sm:$0xff]  ;;  %v3767_v51 = vld [vmem:[#allocation2 + $0x120] sm:$0xff]  ;;  %v3770_v52 = vld [vmem:[#allocation2 + $0x128] sm:$0xff] }
 0x228   :  { %v3773_v53 = vld [vmem:[#allocation2 + $0x130] sm:$0xff] }
 0x229   :  { %2503 = vtanh.f32 %v682_v54  ;;  %v693_v57 = vmul.f32 0.5, %v683_v56  ;;  %v3776_v54 = vld [vmem:[#allocation2 + $0x138] sm:$0xff]  ;;  %v3779_v56 = vld [vmem:[#allocation2 + $0x100] sm:$0xff] }
 0x22a   :  { %v2500_v59 = vpop.eup %2499 }
 0x22b   :  { %v2502_v10 = vpop.eup %2501  ;;  %v686_v2 = vmul.f32 0.5, %v2500_v59  ;;  %2505 = vtanh.f32 %v693_v57  ;;  %v3782_v57 = vld [vmem:[#allocation2 + $0x108] sm:$0xff]  ;;  %v3785_v59 = vld [vmem:[#allocation2 + $0x110] sm:$0xff] }
 0x22c   :  { %v690_v11 = vmul.f32 0.5, %v2502_v10  ;;  %v3788_v10 = vld [vmem:[#allocation2 + $0x118] sm:$0xff] }
 0x22d   :  { %v687_v60 = vadd.f32 0.5, %v686_v2  ;;  %v3791_v2 = vld [vmem:[#allocation2 + $0xe0] sm:$0xff] }
 0x22e   :  { %v691_v63 = vadd.f32 0.5, %v690_v11  ;;  %v3794_v11 = vld [vmem:[#allocation2 + $0xe8] sm:$0xff] }
 0x22f   :  { %v2504_v7 = vpop.eup %2503 }
 0x230   :  { %v697_v19 = vmul.f32 %v691_v63, %v3604_v58  ;;  %v698_v4 = vmul.f32 %v2504_v7, %v687_v60  ;;  %v3695_v58 = vld [vmem:[#allocation2 + $0x1e0] sm:$0xff]  ;;  %v3797_v60 = vld [vmem:[#allocation2 + $0xf0] sm:$0xff]  ;;  %v3800_v63 = vld [vmem:[#allocation2 + $0xf8] sm:$0xff] }
 0x231   :  { %v2506_v1 = vpop.eup %2505  ;;  %v3803_v7 = vld [vmem:[#allocation2 + $0xc0] sm:$0xff] }
 0x232   :  { %v3686_v0 = vadd.f32 %v698_v4, %v697_v19  ;;  %v695_v6 = vmul.f32 0.5, %v2506_v1  ;;  %v3806_v19 = vld [vmem:[#allocation2 + $0xc8] sm:$0xff]  ;;  %v3809_v4 = vld [vmem:[#allocation2 + $0xd0] sm:$0xff]  ;;  %v3812_v1 = vld [vmem:[#allocation2 + $0xd8] sm:$0xff] }
 0x233   :  { %5387 = vst [vmem:[#allocation46_spill] sm:$0xff] %v3812_v1 }
 0x234   :  { %2507 = vtanh.f32 %v3686_v0  ;;  %v696_v18 = vadd.f32 0.5, %v695_v6  ;;  %v3815_v6 = vld [vmem:[#allocation2 + $0xa0] sm:$0xff] }
 0x23a   :  { %v2508_v5 = vpop.eup %2507 }
 0x23b   :  { %v3689_v45 = vmul.f32 %v2508_v5, %v696_v18  ;;  %v3818_v18 = vld [vmem:[#allocation2 + $0xa8] sm:$0xff]  ;;  %v3821_v5 = vld [vmem:[#allocation2 + $0xb0] sm:$0xff] }
 0x23c   :  { %5388 = vst [vmem:[#allocation47_spill] sm:$0xff] %v3818_v18 }
 0x23d   :  { %5386 = vst [vmem:[#allocation42_spill] sm:$0xff] %v3689_v45  ;;  %718 = vmatmul.f32.vlgmr.msra.gmra.mxu0 %v3689_v45  ;;  %738 = vmatmul.f32.vlgmr.msra.gmra.mxu1 %v3689_v45 }
 0x23e   :  { %758 = vmatmul.f32.vlgmr.msrb.gmra.mxu2 %v3689_v45  ;;  %778 = vmatmul.f32.vlgmr.msrb.gmra.mxu3 %v3689_v45  ;;  %5389 = vst [vmem:[#allocation17_spill] sm:$0xff] %v3821_v5  ;;  %v3825_v45 = vld [vmem:[#allocation2 + $0x80] sm:$0xff] }
 0x23f   :  { %906 = vmatpush.msra.mxu0 %v3695_v58  ;;  %926 = vmatpush.msra.mxu1 %v3698_v61  ;;  %5390 = vst [vmem:[#allocation21_spill] sm:$0xff] %v3825_v45 }
 0x240   :  { %946 = vmatpush.msrb.mxu2 %v3701_v62  ;;  %966 = vmatpush.msrb.mxu3 %v3704_v8 }
 0x241   :  { %907 = vmatpush.msra.mxu0 %v3707_v12  ;;  %927 = vmatpush.msra.mxu1 %v3710_v13 }
 0x242   :  { %947 = vmatpush.msrb.mxu2 %v3713_v14  ;;  %967 = vmatpush.msrb.mxu3 %v3716_v16 }
 0x243   :  { %908 = vmatpush.msra.mxu0 %v3719_v17  ;;  %928 = vmatpush.msra.mxu1 %v3722_v22 }
 0x244   :  { %948 = vmatpush.msrb.mxu2 %v3725_v26  ;;  %968 = vmatpush.msrb.mxu3 %v3728_v36 }
 0x245   :  { %909 = vmatpush.msra.mxu0 %v3731_v37  ;;  %929 = vmatpush.msra.mxu1 %v3734_v39 }
 0x246   :  { %949 = vmatpush.msrb.mxu2 %v3737_v40  ;;  %969 = vmatpush.msrb.mxu3 %v3740_v41 }
 0x247   :  { %910 = vmatpush.msra.mxu0 %v3743_v42  ;;  %930 = vmatpush.msra.mxu1 %v3746_v43 }
 0x248   :  { %950 = vmatpush.msrb.mxu2 %v3749_v44  ;;  %970 = vmatpush.msrb.mxu3 %v3752_v46 }
 0x249   :  { %911 = vmatpush.msra.mxu0 %v3755_v47  ;;  %931 = vmatpush.msra.mxu1 %v3758_v48 }
 0x24a   :  { %951 = vmatpush.msrb.mxu2 %v3761_v49  ;;  %971 = vmatpush.msrb.mxu3 %v3764_v50 }
 0x24b   :  { %912 = vmatpush.msra.mxu0 %v3767_v51  ;;  %932 = vmatpush.msra.mxu1 %v3770_v52 }
 0x24c   :  { %952 = vmatpush.msrb.mxu2 %v3773_v53  ;;  %972 = vmatpush.msrb.mxu3 %v3776_v54 }
 0x24d   :  { %913 = vmatpush.msra.mxu0 %v3779_v56  ;;  %933 = vmatpush.msra.mxu1 %v3782_v57 }
 0x24e   :  { %953 = vmatpush.msrb.mxu2 %v3785_v59  ;;  %973 = vmatpush.msrb.mxu3 %v3788_v10 }
 0x24f   :  { %914 = vmatpush.msra.mxu0 %v3791_v2  ;;  %934 = vmatpush.msra.mxu1 %v3794_v11 }
 0x250   :  { %954 = vmatpush.msrb.mxu2 %v3797_v60  ;;  %974 = vmatpush.msrb.mxu3 %v3800_v63 }
 0x251   :  { %915 = vmatpush.msra.mxu0 %v3803_v7  ;;  %935 = vmatpush.msra.mxu1 %v3806_v19 }
 0x252   :  { %955 = vmatpush.msrb.mxu2 %v3809_v4  ;;  %975 = vmatpush.msrb.mxu3 %v3812_v1  ;;  %v3831_v1 = vld [vmem:[#allocation2 + $0x90] sm:$0xff] }
 0x253   :  { %916 = vmatpush.msra.mxu0 %v3815_v6  ;;  %936 = vmatpush.msra.mxu1 %v3818_v18  ;;  %5392 = vst [vmem:[#allocation18_spill] sm:$0xff] %v3831_v1  ;;  %v3835_v18 = vld [vmem:[#allocation2 + $0x60] sm:$0xff] }
 0x254   :  { %956 = vmatpush.msrb.mxu2 %v3821_v5  ;;  %976 = vmatpush.msrb.mxu3 %v5359_v9  ;;  %5393 = vst [vmem:[#allocation20_spill] sm:$0xff] %v3835_v18  ;;  %v3838_v5 = vld [vmem:[#allocation2 + $0x68] sm:$0xff]  ;;  %v3843_v9 = vld [vmem:[#allocation2 + $0x40] sm:$0xff] }
 0x255   :  { %917 = vmatpush.msra.mxu0 %v3825_v45  ;;  %937 = vmatpush.msra.mxu1 %v3828_v32  ;;  %5394 = vst [vmem:[#allocation25_spill] sm:$0xff] %v3838_v5 }
 0x256   :  { %957 = vmatpush.msrb.mxu2 %v3831_v1  ;;  %977 = vmatpush.msrb.mxu3 %v5363_v15  ;;  %5395 = vst [vmem:[#allocation19_spill] sm:$0xff] %v3843_v9  ;;  %v3849_v15 = vld [vmem:[#allocation2 + $0x20] sm:$0xff] }
 0x257   :  { %918 = vmatpush.msra.mxu0 %v3835_v18  ;;  %938 = vmatpush.msra.mxu1 %v3838_v5  ;;  %5396 = vst [vmem:[#allocation22_spill] sm:$0xff] %v3849_v15 }
 0x258   :  { %958 = vmatpush.msrb.mxu2 %v5366_v20  ;;  %978 = vmatpush.msrb.mxu3 %v5367_v21  ;;  %v5397_v20 = vld [vmem:[#allocation51_spill] sm:$0xff] }
 0x259   :  { %919 = vmatpush.msra.mxu0 %v3843_v9  ;;  %939 = vmatpush.msra.mxu1 %v5369_v23  ;;  %v259_v21 = vadd.f32 %v5397_v20, %v5380_v35  ;;  %v5398_v23 = vld [vmem:[#allocation48_spill] sm:$0xff] }
 0x25a   :  { %959 = vmatpush.msrb.mxu2 %v5370_v24  ;;  %979 = vmatpush.msrb.mxu3 %v5371_v25  ;;  %v300_v24 = vadd.f32 %v5398_v23, %v5382_v38 }
 0x25b   :  { %920 = vmatpush.msra.mxu0 %v3849_v15  ;;  %940 = vmatpush.msra.mxu1 %v5373_v27 }
 0x25c   :  { %960 = vmatpush.msrb.mxu2 %v5374_v28  ;;  %980 = vmatpush.msrb.mxu3 %v5375_v29 }
 0x25d   :  { %921 = vmatpush.msra.mxu0 %v5376_v30  ;;  %941 = vmatpush.msra.mxu1 %v5377_v31  ;;  %v5399_v30 = vld [vmem:[#allocation52_spill] sm:$0xff] }
 0x25e   :  { %961 = vmatpush.msrb.mxu2 %v5378_v33  ;;  %981 = vmatpush.msrb.mxu3 %v5379_v34  ;;  %v341_v31 = vadd.f32 %v5399_v30, %v3516_v55  ;;  %v5400_v33 = vld [vmem:[#allocation53_spill] sm:$0xff] }
 0x25f   :  { %v382_v5 = vadd.f32 %v5400_v33, %v3518_v3 }
 0x2ba   :  { %v719_v25 = vpop.f32.mrf.mxu0  ;;  %v739_v27 = vpop.f32.mrf.mxu1 }
 0x2bb   :  { %v782_v15 = vadd.f32 %v719_v25, %v259_v21  ;;  %v783_v28 = vadd.f32 %v739_v27, %v300_v24 }
 0x2bd   :  { %v786_v9 = vmul.f32 0.5, %v782_v15  ;;  %v790_v29 = vmul.f32 0.5, %v783_v28 }
 0x2bf   :  { %2509 = vtanh.f32 %v786_v9 }
 0x2c0   :  { %2511 = vtanh.f32 %v790_v29 }
 0x2c1   :  { %v759_v34 = vpop.f32.mrf.mxu2  ;;  %v779_v18 = vpop.f32.mrf.mxu3 }
 0x2c2   :  { %v784_v20 = vadd.f32 %v759_v34, %v341_v31  ;;  %v785_v35 = vadd.f32 %v779_v18, %v382_v5  ;;  %v3920_v31 = vld [vmem:[#allocation2 + $0xb8] sm:$0xff] }
 0x2c3   :  { %5405 = vst [vmem:[#allocation29_spill] sm:$0xff] %v3920_v31  ;;  %v5406_v34 = vld [vmem:[#allocation18_spill] sm:$0xff] }
 0x2c4   :  { %2513 = vtanh.f32 %v784_v20  ;;  %v795_v23 = vmul.f32 0.5, %v785_v35  ;;  %v3926_v20 = vld [vmem:[#allocation2 + $0x98] sm:$0xff] }
 0x2c5   :  { %v2510_v38 = vpop.eup %2509  ;;  %5407 = vst [vmem:[#allocation23_spill] sm:$0xff] %v3926_v20 }
 0x2c6   :  { %v2512_v1 = vpop.eup %2511  ;;  %v788_v21 = vmul.f32 0.5, %v2510_v38  ;;  %2515 = vtanh.f32 %v795_v23  ;;  %v5402_v38 = vld [vmem:[#allocation46_spill] sm:$0xff]  ;;  %v5408_v23 = vld [vmem:[#allocation20_spill] sm:$0xff] }
 0x2c7   :  { %v792_v24 = vmul.f32 0.5, %v2512_v1  ;;  %v5404_v1 = vld [vmem:[#allocation17_spill] sm:$0xff] }
 0x2c8   :  { %v789_v15 = vadd.f32 0.5, %v788_v21  ;;  %v5409_v21 = vld [vmem:[#allocation25_spill] sm:$0xff] }
 0x2c9   :  { %v793_v9 = vadd.f32 0.5, %v792_v24  ;;  %v3931_v24 = vld [vmem:[#allocation2 + $0x70] sm:$0xff] }
 0x2ca   :  { %v2514_v25 = vpop.eup %2513  ;;  %5410 = vst [vmem:[#allocation26_spill] sm:$0xff] %v3931_v24 }
 0x2cb   :  { %v799_v27 = vmul.f32 %v793_v9, %v3686_v0  ;;  %v800_v28 = vmul.f32 %v2514_v25, %v789_v15  ;;  %v5403_v0 = vld [vmem:[#allocation47_spill] sm:$0xff]  ;;  %v3934_v15 = vld [vmem:[#allocation2 + $0x78] sm:$0xff]  ;;  %v3938_v25 = vld [vmem:[#allocation2 + $0x48] sm:$0xff] }
 0x2cc   :  { %v2516_v30 = vpop.eup %2515  ;;  %5411 = vst [vmem:[#allocation28_spill] sm:$0xff] %v3934_v15  ;;  %v5412_v9 = vld [vmem:[#allocation19_spill] sm:$0xff] }
 0x2cd   :  { %v3868_v33 = vadd.f32 %v800_v28, %v799_v27  ;;  %v797_v29 = vmul.f32 0.5, %v2516_v30  ;;  %5413 = vst [vmem:[#allocation34_spill] sm:$0xff] %v3938_v25  ;;  %v3941_v27 = vld [vmem:[#allocation2 + $0x50] sm:$0xff]  ;;  %v3944_v28 = vld [vmem:[#allocation2 + $0x58] sm:$0xff] }
 0x2ce   :  { %5414 = vst [vmem:[#allocation27_spill] sm:$0xff] %v3941_v27  ;;  %v5416_v30 = vld [vmem:[#allocation22_spill] sm:$0xff] }
 0x2cf   :  { %2517 = vtanh.f32 %v3868_v33  ;;  %v798_v18 = vadd.f32 0.5, %v797_v29  ;;  %5415 = vst [vmem:[#allocation30_spill] sm:$0xff] %v3944_v28  ;;  %v3948_v29 = vld [vmem:[#allocation2 + $0x28] sm:$0xff] }
 0x2d0   :  { %5417 = vst [vmem:[#allocation33_spill] sm:$0xff] %v3948_v29 }
 0x2d5   :  { %v2518_v5 = vpop.eup %2517 }
 0x2d6   :  { %v3871_v35 = vmul.f32 %v2518_v5, %v798_v18  ;;  %v3951_v18 = vld [vmem:[#allocation2 + $0x30] sm:$0xff]  ;;  %v3954_v5 = vld [vmem:[#allocation2 + $0x38] sm:$0xff] }
 0x2d7   :  { %5418 = vst [vmem:[#allocation36_spill] sm:$0xff] %v3951_v18 }
 0x2d8   :  { %5401 = vst [vmem:[#allocation24_spill] sm:$0xff] %v3871_v35  ;;  %820 = vmatmul.f32.vlgmr.msrb.gmra.mxu0 %v3871_v35  ;;  %840 = vmatmul.f32.vlgmr.msrb.gmra.mxu1 %v3871_v35 }
 0x2d9   :  { %860 = vmatmul.f32.vlgmr.msra.gmra.mxu2 %v3871_v35  ;;  %880 = vmatmul.f32.vlgmr.msra.gmra.mxu3 %v3871_v35  ;;  %5419 = vst [vmem:[#allocation31_spill] sm:$0xff] %v3954_v5  ;;  %v3957_v35 = vld [vmem:[#allocation2] sm:$0xff] }
 0x2da   :  { %1008 = vmatpush.msrb.mxu0 %v3695_v58  ;;  %1028 = vmatpush.msrb.mxu1 %v3698_v61  ;;  %5420 = vst [vmem:[#allocation32_spill] sm:$0xff] %v3957_v35 }
 0x2db   :  { %1048 = vmatpush.msra.mxu2 %v3701_v62  ;;  %1068 = vmatpush.msra.mxu3 %v3704_v8 }
 0x2dc   :  { %1009 = vmatpush.msrb.mxu0 %v3707_v12  ;;  %1029 = vmatpush.msrb.mxu1 %v3710_v13 }
 0x2dd   :  { %1049 = vmatpush.msra.mxu2 %v3713_v14  ;;  %1069 = vmatpush.msra.mxu3 %v3716_v16 }
 0x2de   :  { %1010 = vmatpush.msrb.mxu0 %v3719_v17  ;;  %1030 = vmatpush.msrb.mxu1 %v3722_v22 }
 0x2df   :  { %1050 = vmatpush.msra.mxu2 %v3725_v26  ;;  %1070 = vmatpush.msra.mxu3 %v3728_v36 }
 0x2e0   :  { %1011 = vmatpush.msrb.mxu0 %v3731_v37  ;;  %1031 = vmatpush.msrb.mxu1 %v3734_v39 }
 0x2e1   :  { %1051 = vmatpush.msra.mxu2 %v3737_v40  ;;  %1071 = vmatpush.msra.mxu3 %v3740_v41 }
 0x2e2   :  { %1012 = vmatpush.msrb.mxu0 %v3743_v42  ;;  %1032 = vmatpush.msrb.mxu1 %v3746_v43 }
 0x2e3   :  { %1052 = vmatpush.msra.mxu2 %v3749_v44  ;;  %1072 = vmatpush.msra.mxu3 %v3752_v46 }
 0x2e4   :  { %1013 = vmatpush.msrb.mxu0 %v3755_v47  ;;  %1033 = vmatpush.msrb.mxu1 %v3758_v48 }
 0x2e5   :  { %1053 = vmatpush.msra.mxu2 %v3761_v49  ;;  %1073 = vmatpush.msra.mxu3 %v3764_v50 }
 0x2e6   :  { %1014 = vmatpush.msrb.mxu0 %v3767_v51  ;;  %1034 = vmatpush.msrb.mxu1 %v3770_v52 }
 0x2e7   :  { %1054 = vmatpush.msra.mxu2 %v3773_v53  ;;  %1074 = vmatpush.msra.mxu3 %v3776_v54 }
 0x2e8   :  { %1015 = vmatpush.msrb.mxu0 %v3779_v56  ;;  %1035 = vmatpush.msrb.mxu1 %v3782_v57 }
 0x2e9   :  { %1055 = vmatpush.msra.mxu2 %v3785_v59  ;;  %1075 = vmatpush.msra.mxu3 %v3788_v10 }
 0x2ea   :  { %1016 = vmatpush.msrb.mxu0 %v3791_v2  ;;  %1036 = vmatpush.msrb.mxu1 %v3794_v11 }
 0x2eb   :  { %1056 = vmatpush.msra.mxu2 %v3797_v60  ;;  %1076 = vmatpush.msra.mxu3 %v3800_v63 }
 0x2ec   :  { %1017 = vmatpush.msrb.mxu0 %v3803_v7  ;;  %1037 = vmatpush.msrb.mxu1 %v3806_v19 }
 0x2ed   :  { %1057 = vmatpush.msra.mxu2 %v3809_v4  ;;  %1077 = vmatpush.msra.mxu3 %v5402_v38 }
 0x2ee   :  { %1018 = vmatpush.msrb.mxu0 %v3815_v6  ;;  %1038 = vmatpush.msrb.mxu1 %v5403_v0 }
 0x2ef   :  { %1058 = vmatpush.msra.mxu2 %v5404_v1  ;;  %1078 = vmatpush.msra.mxu3 %v3920_v31 }
 0x2f0   :  { %1019 = vmatpush.msrb.mxu0 %v3825_v45  ;;  %1039 = vmatpush.msrb.mxu1 %v3828_v32  ;;  %v5429_v32 = vld [vmem:[#allocation57_spill] sm:$0xff] }
 0x2f1   :  { %1059 = vmatpush.msra.mxu2 %v5406_v34  ;;  %1079 = vmatpush.msra.mxu3 %v3926_v20  ;;  %v5428_v34 = vld [vmem:[#allocation56_spill] sm:$0xff]  ;;  %v385_v45 = vadd.f32 %v5429_v32, %v3518_v3 }
 0x2f2   :  { %1020 = vmatpush.msrb.mxu0 %v5408_v23  ;;  %1040 = vmatpush.msrb.mxu1 %v5409_v21 }
 0x2f3   :  { %1060 = vmatpush.msra.mxu2 %v3931_v24  ;;  %1080 = vmatpush.msra.mxu3 %v3934_v15 }
 0x2f4   :  { %1021 = vmatpush.msrb.mxu0 %v5412_v9  ;;  %1041 = vmatpush.msrb.mxu1 %v3938_v25  ;;  %v5427_v9 = vld [vmem:[#allocation54_spill] sm:$0xff] }
 0x2f5   :  { %1061 = vmatpush.msra.mxu2 %v3941_v27  ;;  %1081 = vmatpush.msra.mxu3 %v3944_v28  ;;  %v3960_v27 = vld [vmem:[#allocation2 + $0x8] sm:$0xff]  ;;  %v5425_v28 = vld [vmem:[#allocation55_spill] sm:$0xff] }
 0x2f6   :  { %1022 = vmatpush.msrb.mxu0 %v5416_v30  ;;  %1042 = vmatpush.msrb.mxu1 %v3948_v29  ;;  %5421 = vst [vmem:[#allocation35_spill] sm:$0xff] %v3960_v27  ;;  %v3963_v30 = vld [vmem:[#allocation2 + $0x10] sm:$0xff]  ;;  %v3966_v29 = vld [vmem:[#allocation2 + $0x18] sm:$0xff] }
 0x2f7   :  { %1062 = vmatpush.msra.mxu2 %v3951_v18  ;;  %1082 = vmatpush.msra.mxu3 %v3954_v5  ;;  %5422 = vst [vmem:[#allocation37_spill] sm:$0xff] %v3963_v30  ;;  %v5424_v18 = vld [vmem:[#allocation63_spill] sm:$0xff]  ;;  %v5426_v5 = vld [vmem:[#allocation62_spill] sm:$0xff] }
 0x2f8   :  { %1023 = vmatpush.msrb.mxu0 %v3957_v35  ;;  %1043 = vmatpush.msrb.mxu1 %v3960_v27  ;;  %5423 = vst [vmem:[#allocation45_spill] sm:$0xff] %v3966_v29  ;;  %v262_v25 = vadd.f32 %v5425_v28, %v5424_v18  ;;  %v303_v15 = vadd.f32 %v5427_v9, %v5426_v5 }
 0x2f9   :  { %1063 = vmatpush.msra.mxu2 %v3963_v30  ;;  %1083 = vmatpush.msra.mxu3 %v3966_v29  ;;  %v344_v30 = vadd.f32 %v5428_v34, %v3516_v55 }
 0x355   :  { %v821_v24 = vpop.f32.mrf.mxu0  ;;  %v841_v35 = vpop.f32.mrf.mxu1 }
 0x356   :  { %v884_v21 = vadd.f32 %v821_v24, %v262_v25  ;;  %v885_v23 = vadd.f32 %v841_v35, %v303_v15 }
 0x358   :  { %v888_v20 = vmul.f32 0.5, %v884_v21  ;;  %v892_v27 = vmul.f32 0.5, %v885_v23 }
 0x35a   :  { %2519 = vtanh.f32 %v888_v20 }
 0x35b   :  { %2521 = vtanh.f32 %v892_v27 }
 0x35c   :  { %v861_v29 = vpop.f32.mrf.mxu2  ;;  %v881_v31 = vpop.f32.mrf.mxu3 }
 0x35d   :  { %v886_v28 = vadd.f32 %v861_v29, %v344_v30  ;;  %v887_v18 = vadd.f32 %v881_v31, %v385_v45 }
 0x35f   :  { %2523 = vtanh.f32 %v886_v28  ;;  %v897_v9 = vmul.f32 0.5, %v887_v18 }
 0x360   :  { %v2520_v5 = vpop.eup %2519 }
 0x361   :  { %v2522_v1 = vpop.eup %2521  ;;  %v890_v24 = vmul.f32 0.5, %v2520_v5  ;;  %2525 = vtanh.f32 %v897_v9 }
 0x362   :  { %v894_v35 = vmul.f32 0.5, %v2522_v1 }
 0x363   :  { %v891_v23 = vadd.f32 0.5, %v890_v24 }
 0x364   :  { %v895_v20 = vadd.f32 0.5, %v894_v35 }
 0x365   :  { %v2524_v21 = vpop.eup %2523 }
 0x366   :  { %v901_v34 = vmul.f32 %v895_v20, %v3868_v33  ;;  %v902_v15 = vmul.f32 %v2524_v21, %v891_v23 }
 0x367   :  { %v2526_v25 = vpop.eup %2525 }
 0x368   :  { %v3978_v32 = vadd.f32 %v902_v15, %v901_v34  ;;  %v899_v27 = vmul.f32 0.5, %v2526_v25 }
 0x36a   :  { %2527 = vtanh.f32 %v3978_v32  ;;  %v900_v45 = vadd.f32 0.5, %v899_v27 }
 0x370   :  { %v2528_v31 = vpop.eup %2527 }
 0x371   :  { %v3981_v30 = vmul.f32 %v2528_v31, %v900_v45  ;;  %v1273_v45 = vld [vmem:[#allocation5 + $0x1e8] sm:$0xff]  ;;  %v1274_v31 = vld [vmem:[#allocation5 + $0x1f0] sm:$0xff] }
 0x373   :  { %922 = vmatmul.f32.vlgmr.msra.gmra.mxu0 %v3981_v30  ;;  %942 = vmatmul.f32.vlgmr.msra.gmra.mxu1 %v3981_v30 }
 0x374   :  { %962 = vmatmul.f32.vlgmr.msrb.gmra.mxu2 %v3981_v30  ;;  %982 = vmatmul.f32.vlgmr.msrb.gmra.mxu3 %v3981_v30 }
 0x375   :  { %1110 = vmatpush.msra.mxu0 %v3695_v58  ;;  %1130 = vmatpush.msra.mxu1 %v3698_v61  ;;  %v5430_v58 = vld [vmem:[#allocation17_spill] sm:$0xff] }
 0x376   :  { %1150 = vmatpush.msrb.mxu2 %v3701_v62  ;;  %1170 = vmatpush.msrb.mxu3 %v3704_v8  ;;  %v5431_v61 = vld [vmem:[#allocation29_spill] sm:$0xff]  ;;  %v5433_v8 = vld [vmem:[#allocation16_spill] sm:$0xff] }
 0x377   :  { %1111 = vmatpush.msra.mxu0 %v3707_v12  ;;  %1131 = vmatpush.msra.mxu1 %v3710_v13  ;;  %v5432_v62 = vld [vmem:[#allocation21_spill] sm:$0xff]  ;;  %v5434_v12 = vld [vmem:[#allocation18_spill] sm:$0xff]  ;;  %v5435_v13 = vld [vmem:[#allocation23_spill] sm:$0xff] }
 0x378   :  { %1151 = vmatpush.msrb.mxu2 %v3713_v14  ;;  %1171 = vmatpush.msrb.mxu3 %v3716_v16  ;;  %v5436_v14 = vld [vmem:[#allocation20_spill] sm:$0xff]  ;;  %v5437_v16 = vld [vmem:[#allocation25_spill] sm:$0xff] }
 0x379   :  { %1112 = vmatpush.msra.mxu0 %v3719_v17  ;;  %1132 = vmatpush.msra.mxu1 %v3722_v22  ;;  %v5438_v17 = vld [vmem:[#allocation26_spill] sm:$0xff]  ;;  %v5439_v22 = vld [vmem:[#allocation28_spill] sm:$0xff] }
 0x37a   :  { %1152 = vmatpush.msrb.mxu2 %v3725_v26  ;;  %1172 = vmatpush.msrb.mxu3 %v3728_v36  ;;  %v5440_v26 = vld [vmem:[#allocation19_spill] sm:$0xff]  ;;  %v5441_v36 = vld [vmem:[#allocation34_spill] sm:$0xff] }
 0x37b   :  { %1113 = vmatpush.msra.mxu0 %v3731_v37  ;;  %1133 = vmatpush.msra.mxu1 %v3734_v39  ;;  %v5442_v37 = vld [vmem:[#allocation27_spill] sm:$0xff]  ;;  %v5443_v39 = vld [vmem:[#allocation30_spill] sm:$0xff] }
 0x37c   :  { %1153 = vmatpush.msrb.mxu2 %v3737_v40  ;;  %1173 = vmatpush.msrb.mxu3 %v3740_v41  ;;  %v5444_v40 = vld [vmem:[#allocation22_spill] sm:$0xff]  ;;  %v5445_v41 = vld [vmem:[#allocation33_spill] sm:$0xff] }
 0x37d   :  { %1114 = vmatpush.msra.mxu0 %v3743_v42  ;;  %1134 = vmatpush.msra.mxu1 %v3746_v43  ;;  %v5446_v42 = vld [vmem:[#allocation36_spill] sm:$0xff]  ;;  %v5447_v43 = vld [vmem:[#allocation31_spill] sm:$0xff] }
 0x37e   :  { %1154 = vmatpush.msrb.mxu2 %v3749_v44  ;;  %1174 = vmatpush.msrb.mxu3 %v3752_v46  ;;  %v5448_v44 = vld [vmem:[#allocation32_spill] sm:$0xff]  ;;  %v5449_v46 = vld [vmem:[#allocation35_spill] sm:$0xff] }
 0x37f   :  { %1115 = vmatpush.msra.mxu0 %v3755_v47  ;;  %1135 = vmatpush.msra.mxu1 %v3758_v48  ;;  %v5450_v47 = vld [vmem:[#allocation37_spill] sm:$0xff] }
 0x380   :  { %1155 = vmatpush.msrb.mxu2 %v3761_v49  ;;  %1175 = vmatpush.msrb.mxu3 %v3764_v50  ;;  %v5451_v48 = vld [vmem:[#allocation45_spill] sm:$0xff]  ;;  %v5452_v49 = vld [vmem:[#allocation63_spill] sm:$0xff] }
 0x381   :  { %1116 = vmatpush.msra.mxu0 %v3767_v51  ;;  %1136 = vmatpush.msra.mxu1 %v3770_v52  ;;  %v5453_v50 = vld [vmem:[#allocation59_spill] sm:$0xff]  ;;  %v5454_v52 = vld [vmem:[#allocation62_spill] sm:$0xff] }
 0x382   :  { %1156 = vmatpush.msrb.mxu2 %v3773_v53  ;;  %1176 = vmatpush.msrb.mxu3 %v3776_v54  ;;  %v265_v51 = vadd.f32 %v5453_v50, %v5452_v49  ;;  %v5455_v53 = vld [vmem:[#allocation58_spill] sm:$0xff]  ;;  %v1249_v50 = vld [vmem:[#allocation5 + $0x128] sm:$0xff] }
 0x383   :  { %1117 = vmatpush.msra.mxu0 %v3779_v56  ;;  %1137 = vmatpush.msra.mxu1 %v3782_v57  ;;  %v306_v54 = vadd.f32 %v5455_v53, %v5454_v52  ;;  %v1251_v53 = vld [vmem:[#allocation5 + $0x138] sm:$0xff] }
 0x384   :  { %1157 = vmatpush.msrb.mxu2 %v3785_v59  ;;  %1177 = vmatpush.msrb.mxu3 %v3788_v10 }
 0x385   :  { %1118 = vmatpush.msra.mxu0 %v3791_v2  ;;  %1138 = vmatpush.msra.mxu1 %v3794_v11 }
 0x386   :  { %1158 = vmatpush.msrb.mxu2 %v3797_v60  ;;  %1178 = vmatpush.msrb.mxu3 %v3800_v63  ;;  %v5456_v60 = vld [vmem:[#allocation60_spill] sm:$0xff] }
 0x387   :  { %1119 = vmatpush.msra.mxu0 %v3803_v7  ;;  %1139 = vmatpush.msra.mxu1 %v3806_v19  ;;  %v347_v63 = vadd.f32 %v5456_v60, %v3516_v55  ;;  %v5457_v7 = vld [vmem:[#allocation61_spill] sm:$0xff]  ;;  %v1243_v60 = vld [vmem:[#allocation5 + $0xf8] sm:$0xff] }
 0x388   :  { %1159 = vmatpush.msrb.mxu2 %v3809_v4  ;;  %1179 = vmatpush.msrb.mxu3 %v5402_v38  ;;  %v388_v19 = vadd.f32 %v5457_v7, %v3518_v3  ;;  %v1237_v7 = vld [vmem:[#allocation5 + $0xc8] sm:$0xff] }
 0x389   :  { %1120 = vmatpush.msra.mxu0 %v3815_v6  ;;  %1140 = vmatpush.msra.mxu1 %v5403_v0 }
 0x38a   :  { %1160 = vmatpush.msrb.mxu2 %v5430_v58  ;;  %1180 = vmatpush.msrb.mxu3 %v5431_v61  ;;  %v1275_v58 = vld [vmem:[#allocation5 + $0x1f8] sm:$0xff]  ;;  %v1268_v61 = vld [vmem:[#allocation5 + $0x1c0] sm:$0xff] }
 0x38b   :  { %1121 = vmatpush.msra.mxu0 %v5432_v62  ;;  %1141 = vmatpush.msra.mxu1 %v5433_v8  ;;  %v1269_v62 = vld [vmem:[#allocation5 + $0x1c8] sm:$0xff]  ;;  %v1270_v8 = vld [vmem:[#allocation5 + $0x1d0] sm:$0xff] }
 0x38c   :  { %1161 = vmatpush.msrb.mxu2 %v5434_v12  ;;  %1181 = vmatpush.msrb.mxu3 %v5435_v13  ;;  %v1271_v12 = vld [vmem:[#allocation5 + $0x1d8] sm:$0xff]  ;;  %v1264_v13 = vld [vmem:[#allocation5 + $0x1a0] sm:$0xff] }
 0x38d   :  { %1122 = vmatpush.msra.mxu0 %v5436_v14  ;;  %1142 = vmatpush.msra.mxu1 %v5437_v16  ;;  %v1265_v14 = vld [vmem:[#allocation5 + $0x1a8] sm:$0xff]  ;;  %v1266_v16 = vld [vmem:[#allocation5 + $0x1b0] sm:$0xff] }
 0x38e   :  { %1162 = vmatpush.msrb.mxu2 %v5438_v17  ;;  %1182 = vmatpush.msrb.mxu3 %v5439_v22  ;;  %v1267_v17 = vld [vmem:[#allocation5 + $0x1b8] sm:$0xff]  ;;  %v1260_v22 = vld [vmem:[#allocation5 + $0x180] sm:$0xff] }
 0x38f   :  { %1123 = vmatpush.msra.mxu0 %v5440_v26  ;;  %1143 = vmatpush.msra.mxu1 %v5441_v36  ;;  %v1261_v26 = vld [vmem:[#allocation5 + $0x188] sm:$0xff]  ;;  %v1262_v36 = vld [vmem:[#allocation5 + $0x190] sm:$0xff] }
 0x390   :  { %1163 = vmatpush.msrb.mxu2 %v5442_v37  ;;  %1183 = vmatpush.msrb.mxu3 %v5443_v39  ;;  %v1263_v37 = vld [vmem:[#allocation5 + $0x198] sm:$0xff]  ;;  %v1256_v39 = vld [vmem:[#allocation5 + $0x160] sm:$0xff] }
 0x391   :  { %1124 = vmatpush.msra.mxu0 %v5444_v40  ;;  %1144 = vmatpush.msra.mxu1 %v5445_v41  ;;  %v1257_v40 = vld [vmem:[#allocation5 + $0x168] sm:$0xff]  ;;  %v1258_v41 = vld [vmem:[#allocation5 + $0x170] sm:$0xff] }
 0x392   :  { %1164 = vmatpush.msrb.mxu2 %v5446_v42  ;;  %1184 = vmatpush.msrb.mxu3 %v5447_v43  ;;  %v1259_v42 = vld [vmem:[#allocation5 + $0x178] sm:$0xff]  ;;  %v1252_v43 = vld [vmem:[#allocation5 + $0x140] sm:$0xff] }
 0x393   :  { %1125 = vmatpush.msra.mxu0 %v5448_v44  ;;  %1145 = vmatpush.msra.mxu1 %v5449_v46  ;;  %v1253_v44 = vld [vmem:[#allocation5 + $0x148] sm:$0xff]  ;;  %v1254_v46 = vld [vmem:[#allocation5 + $0x150] sm:$0xff] }
 0x394   :  { %1165 = vmatpush.msrb.mxu2 %v5450_v47  ;;  %1185 = vmatpush.msrb.mxu3 %v5451_v48  ;;  %v1255_v47 = vld [vmem:[#allocation5 + $0x158] sm:$0xff]  ;;  %v1248_v48 = vld [vmem:[#allocation5 + $0x120] sm:$0xff] }
 0x3f0   :  { %v923_v56 = vpop.f32.mrf.mxu0  ;;  %v943_v57 = vpop.f32.mrf.mxu1 }
 0x3f1   :  { %v986_v59 = vadd.f32 %v923_v56, %v265_v51  ;;  %v987_v10 = vadd.f32 %v943_v57, %v306_v54  ;;  %v1250_v51 = vld [vmem:[#allocation5 + $0x130] sm:$0xff]  ;;  %v1244_v54 = vld [vmem:[#allocation5 + $0x100] sm:$0xff]  ;;  %v1245_v56 = vld [vmem:[#allocation5 + $0x108] sm:$0xff] }
 0x3f2   :  { %v1246_v57 = vld [vmem:[#allocation5 + $0x110] sm:$0xff] }
 0x3f3   :  { %v990_v2 = vmul.f32 0.5, %v986_v59  ;;  %v994_v11 = vmul.f32 0.5, %v987_v10  ;;  %v1247_v59 = vld [vmem:[#allocation5 + $0x118] sm:$0xff]  ;;  %v1240_v10 = vld [vmem:[#allocation5 + $0xe0] sm:$0xff] }
 0x3f5   :  { %2529 = vtanh.f32 %v990_v2  ;;  %v1241_v2 = vld [vmem:[#allocation5 + $0xe8] sm:$0xff] }
 0x3f6   :  { %2531 = vtanh.f32 %v994_v11  ;;  %v1242_v11 = vld [vmem:[#allocation5 + $0xf0] sm:$0xff] }
 0x3f7   :  { %v963_v4 = vpop.f32.mrf.mxu2  ;;  %v983_v6 = vpop.f32.mrf.mxu3 }
 0x3f8   :  { %v988_v33 = vadd.f32 %v963_v4, %v347_v63  ;;  %v989_v38 = vadd.f32 %v983_v6, %v388_v19  ;;  %v1236_v63 = vld [vmem:[#allocation5 + $0xc0] sm:$0xff]  ;;  %v1238_v19 = vld [vmem:[#allocation5 + $0xd0] sm:$0xff]  ;;  %v1239_v4 = vld [vmem:[#allocation5 + $0xd8] sm:$0xff] }
 0x3f9   :  { %v1232_v6 = vld [vmem:[#allocation5 + $0xa0] sm:$0xff] }
 0x3fa   :  { %2533 = vtanh.f32 %v988_v33  ;;  %v999_v0 = vmul.f32 0.5, %v989_v38  ;;  %v1233_v33 = vld [vmem:[#allocation5 + $0xa8] sm:$0xff]  ;;  %v1234_v38 = vld [vmem:[#allocation5 + $0xb0] sm:$0xff] }
 0x3fb   :  { %v2530_v1 = vpop.eup %2529 }
 0x3fc   :  { %v2532_v29 = vpop.eup %2531  ;;  %v992_v18 = vmul.f32 0.5, %v2530_v1  ;;  %2535 = vtanh.f32 %v999_v0  ;;  %v1235_v0 = vld [vmem:[#allocation5 + $0xb8] sm:$0xff]  ;;  %v1228_v1 = vld [vmem:[#allocation5 + $0x80] sm:$0xff] }
 0x3fd   :  { %v996_v5 = vmul.f32 0.5, %v2532_v29  ;;  %v1229_v29 = vld [vmem:[#allocation5 + $0x88] sm:$0xff] }
 0x3fe   :  { %v993_v28 = vadd.f32 0.5, %v992_v18  ;;  %v1230_v18 = vld [vmem:[#allocation5 + $0x90] sm:$0xff] }
 0x3ff   :  { %v997_v9 = vadd.f32 0.5, %v996_v5  ;;  %v1231_v5 = vld [vmem:[#allocation5 + $0x98] sm:$0xff] }
 0x400   :  { %v2534_v24 = vpop.eup %2533 }
 0x401   :  { %v1003_v35 = vmul.f32 %v997_v9, %v3978_v32  ;;  %v1004_v23 = vmul.f32 %v2534_v24, %v993_v28  ;;  %v1272_v32 = vld [vmem:[#allocation5 + $0x1e0] sm:$0xff]  ;;  %v5458_v28 = vld [vmem:[#allocation38_spill] sm:$0xff] }
 0x402   :  { %v2536_v20 = vpop.eup %2535  ;;  %v268_v9 = vadd.f32 %v5458_v28, %v5452_v49  ;;  %v5459_v24 = vld [vmem:[#allocation39_spill] sm:$0xff]  ;;  %v4111_v28 = vld [vmem:[#allocation7 + $0x1d0] sm:$0xff] }
 0x403   :  { %v4060_v21 = vadd.f32 %v1004_v23, %v1003_v35  ;;  %v1001_v34 = vmul.f32 0.5, %v2536_v20  ;;  %v309_v35 = vadd.f32 %v5459_v24, %v5454_v52  ;;  %v1224_v23 = vld [vmem:[#allocation5 + $0x60] sm:$0xff]  ;;  %v1225_v20 = vld [vmem:[#allocation5 + $0x68] sm:$0xff] }
 0x404   :  { %v4116_v24 = vld [vmem:[#allocation7 + $0x1a0] sm:$0xff] }
 0x405   :  { %2537 = vtanh.f32 %v4060_v21  ;;  %v1002_v15 = vadd.f32 0.5, %v1001_v34  ;;  %v1226_v34 = vld [vmem:[#allocation5 + $0x70] sm:$0xff] }
 0x40b   :  { %v2538_v25 = vpop.eup %2537 }
 0x40c   :  { %v4063_v27 = vmul.f32 %v2538_v25, %v1002_v15 }
 0x40e   :  { %1024 = vmatmul.f32.vlgmr.msrb.gmra.mxu0 %v4063_v27  ;;  %1044 = vmatmul.f32.vlgmr.msrb.gmra.mxu1 %v4063_v27 }
 0x40f   :  { %1064 = vmatmul.f32.vlgmr.msra.gmra.mxu2 %v4063_v27  ;;  %1084 = vmatmul.f32.vlgmr.msra.gmra.mxu3 %v4063_v27 }
 0x410   :  { %1350 = vmatpush.msrb.mxu0 %v1272_v32  ;;  %1391 = vmatpush.msrb.mxu1 %v1273_v45  ;;  %v1227_v32 = vld [vmem:[#allocation5 + $0x78] sm:$0xff]  ;;  %v1220_v45 = vld [vmem:[#allocation5 + $0x40] sm:$0xff] }
 0x411   :  { %1432 = vmatpush.msra.mxu2 %v1274_v31  ;;  %1473 = vmatpush.msra.mxu3 %v1275_v58  ;;  %v1221_v31 = vld [vmem:[#allocation5 + $0x48] sm:$0xff] }
 0x412   :  { %1351 = vmatpush.msrb.mxu0 %v1268_v61  ;;  %1392 = vmatpush.msrb.mxu1 %v1269_v62  ;;  %v1222_v62 = vld [vmem:[#allocation5 + $0x50] sm:$0xff] }
 0x413   :  { %1433 = vmatpush.msra.mxu2 %v1270_v8  ;;  %1474 = vmatpush.msra.mxu3 %v1271_v12  ;;  %v1223_v8 = vld [vmem:[#allocation5 + $0x58] sm:$0xff]  ;;  %v1216_v12 = vld [vmem:[#allocation5 + $0x20] sm:$0xff] }
 0x414   :  { %1352 = vmatpush.msrb.mxu0 %v1264_v13  ;;  %1393 = vmatpush.msrb.mxu1 %v1265_v14  ;;  %v1217_v13 = vld [vmem:[#allocation5 + $0x28] sm:$0xff]  ;;  %v1218_v14 = vld [vmem:[#allocation5 + $0x30] sm:$0xff] }
 0x415   :  { %1434 = vmatpush.msra.mxu2 %v1266_v16  ;;  %1475 = vmatpush.msra.mxu3 %v1267_v17  ;;  %v1219_v16 = vld [vmem:[#allocation5 + $0x38] sm:$0xff] }
 0x416   :  { %1353 = vmatpush.msrb.mxu0 %v1260_v22  ;;  %1394 = vmatpush.msrb.mxu1 %v1261_v26  ;;  %v1212_v26 = vld [vmem:[#allocation5] sm:$0xff] }
 0x417   :  { %1435 = vmatpush.msra.mxu2 %v1262_v36  ;;  %1476 = vmatpush.msra.mxu3 %v1263_v37  ;;  %v1213_v36 = vld [vmem:[#allocation5 + $0x8] sm:$0xff]  ;;  %v1214_v37 = vld [vmem:[#allocation5 + $0x10] sm:$0xff] }
 0x418   :  { %1354 = vmatpush.msrb.mxu0 %v1256_v39  ;;  %1395 = vmatpush.msrb.mxu1 %v1257_v40  ;;  %v1215_v39 = vld [vmem:[#allocation5 + $0x18] sm:$0xff]  ;;  %v5460_v40 = vld [vmem:[#allocation64_spill] sm:$0xff] }
 0x419   :  { %1436 = vmatpush.msra.mxu2 %v1258_v41  ;;  %1477 = vmatpush.msra.mxu3 %v1259_v42  ;;  %v350_v41 = vadd.f32 %v5460_v40, %v3516_v55  ;;  %v5461_v42 = vld [vmem:[#allocation65_spill] sm:$0xff]  ;;  %v4208_v40 = vld [vmem:[#allocation7 + $0xe8] sm:$0xff] }
 0x41a   :  { %1355 = vmatpush.msrb.mxu0 %v1252_v43  ;;  %1396 = vmatpush.msrb.mxu1 %v1253_v44  ;;  %v391_v43 = vadd.f32 %v5461_v42, %v3518_v3  ;;  %v4216_v42 = vld [vmem:[#allocation7 + $0x118] sm:$0xff] }
 0x41b   :  { %1437 = vmatpush.msra.mxu2 %v1254_v46  ;;  %1478 = vmatpush.msra.mxu3 %v1255_v47 }
 0x41c   :  { %1356 = vmatpush.msrb.mxu0 %v1248_v48  ;;  %1397 = vmatpush.msrb.mxu1 %v1249_v50 }
 0x41d   :  { %1438 = vmatpush.msra.mxu2 %v1250_v51  ;;  %1479 = vmatpush.msra.mxu3 %v1251_v53 }
 0x41e   :  { %1357 = vmatpush.msrb.mxu0 %v1244_v54  ;;  %1398 = vmatpush.msrb.mxu1 %v1245_v56 }
 0x41f   :  { %1439 = vmatpush.msra.mxu2 %v1246_v57  ;;  %1480 = vmatpush.msra.mxu3 %v1247_v59 }
 0x420   :  { %1358 = vmatpush.msrb.mxu0 %v1240_v10  ;;  %1399 = vmatpush.msrb.mxu1 %v1241_v2 }
 0x421   :  { %1440 = vmatpush.msra.mxu2 %v1242_v11  ;;  %1481 = vmatpush.msra.mxu3 %v1243_v60 }
 0x422   :  { %1359 = vmatpush.msrb.mxu0 %v1236_v63  ;;  %1400 = vmatpush.msrb.mxu1 %v1237_v7 }
 0x423   :  { %1441 = vmatpush.msra.mxu2 %v1238_v19  ;;  %1482 = vmatpush.msra.mxu3 %v1239_v4 }
 0x424   :  { %1360 = vmatpush.msrb.mxu0 %v1232_v6  ;;  %1401 = vmatpush.msrb.mxu1 %v1233_v33  ;;  %v5463_v33 = vld [vmem:[#allocation43_spill] sm:$0xff] }
 0x425   :  { %1442 = vmatpush.msra.mxu2 %v1234_v38  ;;  %1483 = vmatpush.msra.mxu3 %v1235_v0  ;;  %v5464_v38 = vld [vmem:[#allocation42_spill] sm:$0xff]  ;;  %v4099_v0 = vld [vmem:[#allocation7 + $0x1e0] sm:$0xff] }
 0x426   :  { %1361 = vmatpush.msrb.mxu0 %v1228_v1  ;;  %1402 = vmatpush.msrb.mxu1 %v1229_v29  ;;  %v4101_v1 = vld [vmem:[#allocation7 + $0x1e8] sm:$0xff]  ;;  %v4103_v29 = vld [vmem:[#allocation7 + $0x1f0] sm:$0xff] }
 0x427   :  { %1443 = vmatpush.msra.mxu2 %v1230_v18  ;;  %1484 = vmatpush.msra.mxu3 %v1231_v5  ;;  %v4107_v18 = vld [vmem:[#allocation7 + $0x1c0] sm:$0xff]  ;;  %v4109_v5 = vld [vmem:[#allocation7 + $0x1c8] sm:$0xff] }
 0x428   :  { %1362 = vmatpush.msrb.mxu0 %v1224_v23  ;;  %1403 = vmatpush.msrb.mxu1 %v1225_v20  ;;  %v4122_v23 = vld [vmem:[#allocation7 + $0x1b0] sm:$0xff]  ;;  %v4124_v20 = vld [vmem:[#allocation7 + $0x1d8] sm:$0xff] }
 0x429   :  { %1444 = vmatpush.msra.mxu2 %v1226_v34  ;;  %1485 = vmatpush.msra.mxu3 %v1227_v32  ;;  %v4132_v34 = vld [vmem:[#allocation7 + $0x180] sm:$0xff]  ;;  %v4138_v32 = vld [vmem:[#allocation7 + $0x190] sm:$0xff] }
 0x42a   :  { %1363 = vmatpush.msrb.mxu0 %v1220_v45  ;;  %1404 = vmatpush.msrb.mxu1 %v1221_v31  ;;  %v4140_v45 = vld [vmem:[#allocation7 + $0x1b8] sm:$0xff]  ;;  %v4144_v31 = vld [vmem:[#allocation7 + $0x160] sm:$0xff] }
 0x42b   :  { %1445 = vmatpush.msra.mxu2 %v1222_v62  ;;  %1486 = vmatpush.msra.mxu3 %v1223_v8  ;;  %v4152_v62 = vld [vmem:[#allocation7 + $0x198] sm:$0xff]  ;;  %v4156_v8 = vld [vmem:[#allocation7 + $0x140] sm:$0xff] }
 0x42c   :  { %1364 = vmatpush.msrb.mxu0 %v1216_v12  ;;  %1405 = vmatpush.msrb.mxu1 %v1217_v13  ;;  %v4158_v12 = vld [vmem:[#allocation7 + $0x148] sm:$0xff]  ;;  %v4162_v13 = vld [vmem:[#allocation7 + $0x150] sm:$0xff] }
 0x42d   :  { %1446 = vmatpush.msra.mxu2 %v1218_v14  ;;  %1487 = vmatpush.msra.mxu3 %v1219_v16  ;;  %v4164_v14 = vld [vmem:[#allocation7 + $0x178] sm:$0xff]  ;;  %v4172_v16 = vld [vmem:[#allocation7 + $0x120] sm:$0xff] }
 0x42e   :  { %1365 = vmatpush.msrb.mxu0 %v1212_v26  ;;  %1406 = vmatpush.msrb.mxu1 %v1213_v36  ;;  %v4180_v26 = vld [vmem:[#allocation7 + $0x158] sm:$0xff]  ;;  %v4198_v36 = vld [vmem:[#allocation7 + $0x108] sm:$0xff] }
 0x42f   :  { %1447 = vmatpush.msra.mxu2 %v1214_v37  ;;  %1488 = vmatpush.msra.mxu3 %v1215_v39  ;;  %v4200_v37 = vld [vmem:[#allocation7 + $0x110] sm:$0xff]  ;;  %v4204_v39 = vld [vmem:[#allocation7 + $0x138] sm:$0xff] }
 0x48b   :  { %v1025_v15 = vpop.f32.mrf.mxu0  ;;  %v1045_v25 = vpop.f32.mrf.mxu1 }
 0x48c   :  { %v1088_v58 = vadd.f32 %v1025_v15, %v268_v9  ;;  %v1089_v61 = vadd.f32 %v1045_v25, %v309_v35  ;;  %v4114_v9 = vld [vmem:[#allocation7 + $0x1f8] sm:$0xff]  ;;  %v4118_v35 = vld [vmem:[#allocation7 + $0x1a8] sm:$0xff] }
 0x48d   :  { %v4134_v15 = vld [vmem:[#allocation7 + $0x188] sm:$0xff] }
 0x48e   :  { %v1092_v17 = vmul.f32 0.5, %v1088_v58  ;;  %v1096_v22 = vmul.f32 0.5, %v1089_v61  ;;  %v5465_v25 = vld [vmem:[#allocation24_spill] sm:$0xff]  ;;  %v4150_v61 = vld [vmem:[#allocation7 + $0x170] sm:$0xff] }
 0x48f   :  { %v4146_v58 = vld [vmem:[#allocation7 + $0x168] sm:$0xff] }
 0x490   :  { %2539 = vtanh.f32 %v1092_v17  ;;  %v4174_v17 = vld [vmem:[#allocation7 + $0x128] sm:$0xff] }
 0x491   :  { %2541 = vtanh.f32 %v1096_v22  ;;  %v4178_v22 = vld [vmem:[#allocation7 + $0x130] sm:$0xff] }
 0x492   :  { %v1065_v44 = vpop.f32.mrf.mxu2  ;;  %v1085_v46 = vpop.f32.mrf.mxu3 }
 0x493   :  { %v1090_v47 = vadd.f32 %v1065_v44, %v350_v41  ;;  %v1091_v48 = vadd.f32 %v1085_v46, %v391_v43  ;;  %v4212_v41 = vld [vmem:[#allocation7 + $0xf0] sm:$0xff]  ;;  %v4220_v43 = vld [vmem:[#allocation7 + $0xf8] sm:$0xff]  ;;  %v4223_v44 = vld [vmem:[#allocation7 + $0xc0] sm:$0xff] }
 0x494   :  { %v4225_v46 = vld [vmem:[#allocation7 + $0xc8] sm:$0xff] }
 0x495   :  { %2543 = vtanh.f32 %v1090_v47  ;;  %v1101_v50 = vmul.f32 0.5, %v1091_v48  ;;  %v4227_v47 = vld [vmem:[#allocation7 + $0xd0] sm:$0xff]  ;;  %v4231_v48 = vld [vmem:[#allocation7 + $0xd8] sm:$0xff] }
 0x496   :  { %v2540_v51 = vpop.eup %2539 }
 0x497   :  { %v2542_v53 = vpop.eup %2541  ;;  %v1094_v54 = vmul.f32 0.5, %v2540_v51  ;;  %2545 = vtanh.f32 %v1101_v50  ;;  %v4234_v50 = vld [vmem:[#allocation7 + $0xa0] sm:$0xff]  ;;  %v4236_v51 = vld [vmem:[#allocation7 + $0xa8] sm:$0xff] }
 0x498   :  { %v1098_v56 = vmul.f32 0.5, %v2542_v53  ;;  %v4238_v53 = vld [vmem:[#allocation7 + $0xb0] sm:$0xff] }
 0x499   :  { %v1095_v57 = vadd.f32 0.5, %v1094_v54  ;;  %5466 = vst [vmem:[#allocation44_spill] sm:$0xff] %v4238_v53  ;;  %v4243_v54 = vld [vmem:[#allocation7 + $0xb8] sm:$0xff] }
 0x49a   :  { %v1099_v59 = vadd.f32 0.5, %v1098_v56  ;;  %5467 = vst [vmem:[#allocation49_spill] sm:$0xff] %v4243_v54  ;;  %v4246_v56 = vld [vmem:[#allocation7 + $0x80] sm:$0xff] }
 0x49b   :  { %v2544_v10 = vpop.eup %2543  ;;  %5468 = vst [vmem:[#allocation50_spill] sm:$0xff] %v4246_v56 }
 0x49c   :  { %v1105_v2 = vmul.f32 %v1099_v59, %v4060_v21  ;;  %v1106_v11 = vmul.f32 %v2544_v10, %v1095_v57  ;;  %v5462_v21 = vld [vmem:[#allocation68_spill] sm:$0xff]  ;;  %v4250_v59 = vld [vmem:[#allocation7 + $0x90] sm:$0xff]  ;;  %v4255_v10 = vld [vmem:[#allocation7 + $0x60] sm:$0xff] }
 0x49d   :  { %v2546_v60 = vpop.eup %2545  ;;  %v4248_v57 = vld [vmem:[#allocation7 + $0x88] sm:$0xff]  ;;  %5470 = vst [vmem:[#allocation48_spill] sm:$0xff] %v4250_v59 }
 0x49e   :  { %v4078_v63 = vadd.f32 %v1106_v11, %v1105_v2  ;;  %v1103_v7 = vmul.f32 0.5, %v2546_v60  ;;  %5469 = vst [vmem:[#allocation51_spill] sm:$0xff] %v4248_v57  ;;  %v4257_v2 = vld [vmem:[#allocation7 + $0x68] sm:$0xff]  ;;  %v4259_v11 = vld [vmem:[#allocation7 + $0x70] sm:$0xff]  ;;  %v4262_v60 = vld [vmem:[#allocation7 + $0x98] sm:$0xff] }
 0x49f   :  { %5471 = vst [vmem:[#allocation52_spill] sm:$0xff] %v4255_v10 }
 0x4a0   :  { %2547 = vtanh.f32 %v4078_v63  ;;  %v1104_v19 = vadd.f32 0.5, %v1103_v7  ;;  %5472 = vst [vmem:[#allocation53_spill] sm:$0xff] %v4257_v2  ;;  %v4264_v7 = vld [vmem:[#allocation7 + $0x40] sm:$0xff] }
 0x4a1   :  { %5473 = vst [vmem:[#allocation46_spill] sm:$0xff] %v4259_v11 }
 0x4a2   :  { %5474 = vst [vmem:[#allocation47_spill] sm:$0xff] %v4262_v60 }
 0x4a3   :  { %5475 = vst [vmem:[#allocation55_spill] sm:$0xff] %v4264_v7 }
 0x4a6   :  { %v2548_v4 = vpop.eup %2547 }
 0x4a7   :  { %v4081_v6 = vmul.f32 %v2548_v4, %v1104_v19  ;;  %v4266_v19 = vld [vmem:[#allocation7 + $0x48] sm:$0xff] }
 0x4a8   :  { %5476 = vst [vmem:[#allocation54_spill] sm:$0xff] %v4266_v19  ;;  %v5477_v4 = vld [vmem:[#allocation40_spill] sm:$0xff] }
 0x4a9   :  { %1126 = vmatmul.f32.vlgmr.msra.gmra.mxu0 %v4081_v6  ;;  %1146 = vmatmul.f32.vlgmr.msra.gmra.mxu1 %v4081_v6 }
 0x4aa   :  { %1166 = vmatmul.f32.vlgmr.msrb.gmra.mxu2 %v4081_v6  ;;  %1186 = vmatmul.f32.vlgmr.msrb.gmra.mxu3 %v4081_v6 }
 0x4ab   :  { %1514 = vmatpush.msra.mxu0 %v4099_v0  ;;  %1534 = vmatpush.msra.mxu1 %v4101_v1 }
 0x4ac   :  { %1554 = vmatpush.msrb.mxu2 %v4103_v29  ;;  %1574 = vmatpush.msrb.mxu3 %v4114_v9 }
 0x4ad   :  { %1515 = vmatpush.msra.mxu0 %v4107_v18  ;;  %1535 = vmatpush.msra.mxu1 %v4109_v5 }
 0x4ae   :  { %1555 = vmatpush.msrb.mxu2 %v4111_v28  ;;  %1575 = vmatpush.msrb.mxu3 %v4124_v20 }
 0x4af   :  { %1516 = vmatpush.msra.mxu0 %v4116_v24  ;;  %1536 = vmatpush.msra.mxu1 %v4118_v35 }
 0x4b0   :  { %1556 = vmatpush.msrb.mxu2 %v4122_v23  ;;  %1576 = vmatpush.msrb.mxu3 %v4140_v45 }
 0x4b1   :  { %1366 = vmatmul.f32.vlgmr.msrb.gmra.mxu0 %v5462_v21  ;;  %1407 = vmatmul.f32.vlgmr.msrb.gmra.mxu1 %v5462_v21 }
 0x4b2   :  { %1448 = vmatmul.f32.vlgmr.msra.gmra.mxu2 %v5462_v21  ;;  %1489 = vmatmul.f32.vlgmr.msra.gmra.mxu3 %v5462_v21  ;;  %v5478_v21 = vld [vmem:[#allocation41_spill] sm:$0xff] }
 0x4b3   :  { %1517 = vmatpush.msra.mxu0 %v4132_v34  ;;  %1537 = vmatpush.msra.mxu1 %v4134_v15 }
 0x4b4   :  { %1557 = vmatpush.msrb.mxu2 %v4138_v32  ;;  %1577 = vmatpush.msrb.mxu3 %v4152_v62 }
 0x4b5   :  { %1518 = vmatpush.msra.mxu0 %v4144_v31  ;;  %1538 = vmatpush.msra.mxu1 %v4146_v58 }
 0x4b6   :  { %1558 = vmatpush.msrb.mxu2 %v4150_v61  ;;  %1578 = vmatpush.msrb.mxu3 %v4164_v14 }
 0x4b7   :  { %1519 = vmatpush.msra.mxu0 %v4156_v8  ;;  %1539 = vmatpush.msra.mxu1 %v4158_v12 }
 0x4b8   :  { %1559 = vmatpush.msrb.mxu2 %v4162_v13  ;;  %1579 = vmatpush.msrb.mxu3 %v4180_v26 }
 0x4b9   :  { %1369 = vmatmul.f32.gmra.mxu0 %v5463_v33  ;;  %1410 = vmatmul.f32.gmra.mxu1 %v5463_v33 }
 0x4ba   :  { %1451 = vmatmul.f32.gmra.mxu2 %v5463_v33  ;;  %1492 = vmatmul.f32.gmra.mxu3 %v5463_v33  ;;  %v312_v33 = vadd.f32 %v5478_v21, %v5454_v52  ;;  %v4286_v21 = vld [vmem:[#allocation7 + $0x30] sm:$0xff] }
 0x4bb   :  { %1520 = vmatpush.msra.mxu0 %v4172_v16  ;;  %1540 = vmatpush.msra.mxu1 %v4174_v17  ;;  %5483 = vst [vmem:[#allocation21_spill] sm:$0xff] %v4286_v21 }
 0x4bc   :  { %1560 = vmatpush.msrb.mxu2 %v4178_v22  ;;  %1580 = vmatpush.msrb.mxu3 %v4204_v39 }
 0x4bd   :  { %1541 = vmatpush.msra.mxu1 %v4198_v36 }
 0x4be   :  { %1561 = vmatpush.msrb.mxu2 %v4200_v37  ;;  %1581 = vmatpush.msrb.mxu3 %v4216_v42 }
 0x4bf   :  { %1542 = vmatpush.msra.mxu1 %v4208_v40 }
 0x4c0   :  { %1562 = vmatpush.msrb.mxu2 %v4212_v41  ;;  %1582 = vmatpush.msrb.mxu3 %v4220_v43 }
 0x4c1   :  { %1372 = vmatmul.f32.gmra.mxu0 %v5464_v38  ;;  %1413 = vmatmul.f32.gmra.mxu1 %v5464_v38 }
 0x4c2   :  { %1454 = vmatmul.f32.gmra.mxu2 %v5464_v38  ;;  %1495 = vmatmul.f32.gmra.mxu3 %v5464_v38  ;;  %v4274_v38 = vld [vmem:[#allocation7 + $0x50] sm:$0xff] }
 0x4c3   :  { %1543 = vmatpush.msra.mxu1 %v4225_v46  ;;  %1563 = vmatpush.msrb.mxu2 %v4227_v47  ;;  %5479 = vst [vmem:[#allocation56_spill] sm:$0xff] %v4274_v38 }
 0x4c4   :  { %1583 = vmatpush.msrb.mxu3 %v4231_v48 }
 0x4c5   :  { %1544 = vmatpush.msra.mxu1 %v4236_v51  ;;  %1564 = vmatpush.msrb.mxu2 %v4238_v53 }
 0x4c6   :  { %1584 = vmatpush.msrb.mxu3 %v4243_v54 }
 0x4c7   :  { %1545 = vmatpush.msra.mxu1 %v4248_v57  ;;  %1565 = vmatpush.msrb.mxu2 %v4250_v59 }
 0x4c8   :  { %1585 = vmatpush.msrb.mxu3 %v4262_v60 }
 0x4c9   :  { %1375 = vmatmul.f32.gmra.mxu0 %v5465_v25  ;;  %1416 = vmatmul.f32.gmra.mxu1 %v5465_v25 }
 0x4ca   :  { %1457 = vmatmul.f32.gmra.mxu2 %v5465_v25  ;;  %1498 = vmatmul.f32.gmra.mxu3 %v5465_v25  ;;  %v4276_v25 = vld [vmem:[#allocation7 + $0x78] sm:$0xff] }
 0x4cb   :  { %1546 = vmatpush.msra.mxu1 %v4257_v2  ;;  %5480 = vst [vmem:[#allocation57_spill] sm:$0xff] %v4276_v25  ;;  %1566 = vmatpush.msrb.mxu2 %v4259_v11  ;;  %v4288_v2 = vld [vmem:[#allocation7 + $0x58] sm:$0xff]  ;;  %v4292_v11 = vld [vmem:[#allocation7] sm:$0xff] }
 0x4cc   :  { %5484 = vst [vmem:[#allocation16_spill] sm:$0xff] %v4288_v2  ;;  %1586 = vmatpush.msrb.mxu3 %v4276_v25 }
 0x4cd   :  { %1547 = vmatpush.msra.mxu1 %v4266_v19  ;;  %1567 = vmatpush.msrb.mxu2 %v4274_v38  ;;  %5485 = vst [vmem:[#allocation18_spill] sm:$0xff] %v4292_v11 }
 0x4ce   :  { %1587 = vmatpush.msrb.mxu3 %v4288_v2 }
 0x4cf   :  { %1568 = vmatpush.msrb.mxu2 %v4286_v21 }
 0x4d1   :  { %1378 = vmatmul.f32.gmra.mxu0 %v3981_v30  ;;  %1419 = vmatmul.f32.gmra.mxu1 %v3981_v30 }
 0x4d2   :  { %1460 = vmatmul.f32.gmra.mxu2 %v3981_v30  ;;  %1501 = vmatmul.f32.gmra.mxu3 %v3981_v30  ;;  %v4196_v30 = vld [vmem:[#allocation7 + $0x100] sm:$0xff] }
 0x4d3   :  { %1521 = vmatpush.msra.mxu0 %v4196_v30 }
 0x4d9   :  { %1381 = vmatmul.f32.gmra.mxu0 %v4063_v27  ;;  %1422 = vmatmul.f32.gmra.mxu1 %v4063_v27 }
 0x4da   :  { %1463 = vmatmul.f32.gmra.mxu2 %v4063_v27  ;;  %1504 = vmatmul.f32.gmra.mxu3 %v4063_v27  ;;  %v4206_v27 = vld [vmem:[#allocation7 + $0xe0] sm:$0xff] }
 0x4db   :  { %1522 = vmatpush.msra.mxu0 %v4206_v27 }
 0x4dd   :  { %1523 = vmatpush.msra.mxu0 %v4223_v44 }
 0x4df   :  { %1524 = vmatpush.msra.mxu0 %v4234_v50 }
 0x4e1   :  { %1384 = vmatmul.f32.gmra.mxu0 %v4081_v6  ;;  %1425 = vmatmul.f32.gmra.mxu1 %v4081_v6 }
 0x4e2   :  { %1466 = vmatmul.f32.gmra.mxu2 %v4081_v6  ;;  %1507 = vmatmul.f32.gmra.mxu3 %v4081_v6  ;;  %v271_v6 = vadd.f32 %v5477_v4, %v5452_v49  ;;  %v4282_v49 = vld [vmem:[#allocation7 + $0x28] sm:$0xff] }
 0x4e3   :  { %1525 = vmatpush.msra.mxu0 %v4246_v56  ;;  %v4280_v56 = vld [vmem:[#allocation7 + $0x20] sm:$0xff]  ;;  %5482 = vst [vmem:[#allocation29_spill] sm:$0xff] %v4282_v49  ;;  %1548 = vmatpush.msra.mxu1 %v4282_v49 }
 0x4e4   :  { %5481 = vst [vmem:[#allocation17_spill] sm:$0xff] %v4280_v56 }
 0x4e5   :  { %1526 = vmatpush.msra.mxu0 %v4255_v10  ;;  %v4294_v10 = vld [vmem:[#allocation7 + $0x8] sm:$0xff] }
 0x4e6   :  { %5486 = vst [vmem:[#allocation23_spill] sm:$0xff] %v4294_v10  ;;  %1549 = vmatpush.msra.mxu1 %v4294_v10 }
 0x4e7   :  { %1527 = vmatpush.msra.mxu0 %v4264_v7 }
 0x4e8   :  { %1636 = vmatpush.msrb.mxu1 %v4101_v1 }
 0x4e9   :  { %1528 = vmatpush.msra.mxu0 %v4280_v56 }
 0x4ea   :  { %1637 = vmatpush.msrb.mxu1 %v4109_v5 }
 0x4eb   :  { %1529 = vmatpush.msra.mxu0 %v4292_v11 }
 0x4ec   :  { %1638 = vmatpush.msrb.mxu1 %v4118_v35 }
 0x4ed   :  { %1616 = vmatpush.msrb.mxu0 %v4099_v0 }
 0x4ee   :  { %1639 = vmatpush.msrb.mxu1 %v4134_v15 }
 0x4ef   :  { %1617 = vmatpush.msrb.mxu0 %v4107_v18 }
 0x4f0   :  { %1640 = vmatpush.msrb.mxu1 %v4146_v58 }
 0x4f1   :  { %1618 = vmatpush.msrb.mxu0 %v4116_v24 }
 0x4f2   :  { %1641 = vmatpush.msrb.mxu1 %v4158_v12 }
 0x4f3   :  { %1619 = vmatpush.msrb.mxu0 %v4132_v34 }
 0x4f4   :  { %1642 = vmatpush.msrb.mxu1 %v4174_v17 }
 0x4f5   :  { %1620 = vmatpush.msrb.mxu0 %v4144_v31 }
 0x4f6   :  { %1643 = vmatpush.msrb.mxu1 %v4198_v36 }
 0x4f7   :  { %1621 = vmatpush.msrb.mxu0 %v4156_v8 }
 0x4f8   :  { %1644 = vmatpush.msrb.mxu1 %v4208_v40 }
 0x4f9   :  { %1622 = vmatpush.msrb.mxu0 %v4172_v16 }
 0x4fa   :  { %1645 = vmatpush.msrb.mxu1 %v4225_v46 }
 0x4fb   :  { %1623 = vmatpush.msrb.mxu0 %v4196_v30 }
 0x4fc   :  { %1646 = vmatpush.msrb.mxu1 %v4236_v51 }
 0x4fd   :  { %1624 = vmatpush.msrb.mxu0 %v4206_v27 }
 0x4ff   :  { %1625 = vmatpush.msrb.mxu0 %v4223_v44 }
 0x501   :  { %1626 = vmatpush.msrb.mxu0 %v4234_v50 }
 0x526   :  { %v1127_v59 = vpop.f32.mrf.mxu0  ;;  %v1147_v57 = vpop.f32.mrf.mxu1 }
 0x527   :  { %v1190_v4 = vadd.f32 %v1127_v59, %v271_v6  ;;  %v1191_v52 = vadd.f32 %v1147_v57, %v312_v33  ;;  %v4298_v57 = vld [vmem:[#allocation7 + $0x10] sm:$0xff]  ;;  %v4300_v59 = vld [vmem:[#allocation7 + $0x38] sm:$0xff] }
 0x528   :  { %5487 = vst [vmem:[#allocation20_spill] sm:$0xff] %v4298_v57  ;;  %v4306_v6 = vld [vmem:[#allocation7 + $0x18] sm:$0xff]  ;;  %1569 = vmatpush.msrb.mxu2 %v4298_v57  ;;  %1588 = vmatpush.msrb.mxu3 %v4300_v59 }
 0x529   :  { %v1194_v60 = vmul.f32 0.5, %v1190_v4  ;;  %v1198_v54 = vmul.f32 0.5, %v1191_v52  ;;  %5488 = vst [vmem:[#allocation25_spill] sm:$0xff] %v4300_v59  ;;  %v5490_v33 = vld [vmem:[#allocation66_spill] sm:$0xff]  ;;  %v5491_v52 = vld [vmem:[#allocation67_spill] sm:$0xff] }
 0x52a   :  { %5489 = vst [vmem:[#allocation26_spill] sm:$0xff] %v4306_v6  ;;  %v353_v4 = vadd.f32 %v5490_v33, %v3516_v55  ;;  %v394_v49 = vadd.f32 %v5491_v52, %v3518_v3  ;;  %1589 = vmatpush.msrb.mxu3 %v4306_v6  ;;  %1656 = vmatpush.msra.mxu2 %v4103_v29 }
 0x52b   :  { %2549 = vtanh.f32 %v1194_v60 }
 0x52c   :  { %2551 = vtanh.f32 %v1198_v54  ;;  %1676 = vmatpush.msra.mxu3 %v4114_v9  ;;  %1657 = vmatpush.msra.mxu2 %v4111_v28 }
 0x52d   :  { %v1167_v21 = vpop.f32.mrf.mxu2  ;;  %v1187_v56 = vpop.f32.mrf.mxu3 }
 0x52e   :  { %v1192_v60 = vadd.f32 %v1167_v21, %v353_v4  ;;  %v1193_v10 = vadd.f32 %v1187_v56, %v394_v49  ;;  %1677 = vmatpush.msra.mxu3 %v4124_v20  ;;  %1658 = vmatpush.msra.mxu2 %v4122_v23 }
 0x530   :  { %2553 = vtanh.f32 %v1192_v60  ;;  %v1203_v55 = vmul.f32 0.5, %v1193_v10  ;;  %1678 = vmatpush.msra.mxu3 %v4140_v45  ;;  %1659 = vmatpush.msra.mxu2 %v4138_v32 }
 0x531   :  { %v2550_v3 = vpop.eup %2549 }
 0x532   :  { %v2552_v54 = vpop.eup %2551  ;;  %v1196_v56 = vmul.f32 0.5, %v2550_v3  ;;  %2555 = vtanh.f32 %v1203_v55  ;;  %1679 = vmatpush.msra.mxu3 %v4152_v62  ;;  %1660 = vmatpush.msra.mxu2 %v4150_v61 }
 0x533   :  { %v1200_v49 = vmul.f32 0.5, %v2552_v54 }
 0x534   :  { %v1197_v10 = vadd.f32 0.5, %v1196_v56  ;;  %1680 = vmatpush.msra.mxu3 %v4164_v14  ;;  %1661 = vmatpush.msra.mxu2 %v4162_v13 }
 0x535   :  { %v1201_v21 = vadd.f32 0.5, %v1200_v49  ;;  %v5492_v49 = vld [vmem:[#allocation49_spill] sm:$0xff] }
 0x536   :  { %v2554_v33 = vpop.eup %2553  ;;  %1681 = vmatpush.msra.mxu3 %v4180_v26  ;;  %1662 = vmatpush.msra.mxu2 %v4178_v22 }
 0x537   :  { %v1207_v4 = vmul.f32 %v1201_v21, %v4078_v63  ;;  %v1208_v52 = vmul.f32 %v2554_v33, %v1197_v10  ;;  %v5493_v10 = vld [vmem:[#allocation50_spill] sm:$0xff]  ;;  %v5494_v21 = vld [vmem:[#allocation51_spill] sm:$0xff]  ;;  %v5495_v33 = vld [vmem:[#allocation48_spill] sm:$0xff] }
 0x538   :  { %v2556_v60 = vpop.eup %2555  ;;  %1682 = vmatpush.msra.mxu3 %v4204_v39  ;;  %1663 = vmatpush.msra.mxu2 %v4200_v37 }
 0x539   :  { %v1209_v55 = vadd.f32 %v1208_v52, %v1207_v4  ;;  %v1205_v63 = vmul.f32 0.5, %v2556_v60  ;;  %1627 = vmatpush.msrb.mxu0 %v5493_v10  ;;  %1647 = vmatpush.msrb.mxu1 %v5494_v21  ;;  %v5496_v4 = vld [vmem:[#allocation47_spill] sm:$0xff]  ;;  %v5497_v52 = vld [vmem:[#allocation52_spill] sm:$0xff]  ;;  %v5498_v60 = vld [vmem:[#allocation53_spill] sm:$0xff] }
 0x53a   :  { %1683 = vmatpush.msra.mxu3 %v4216_v42  ;;  %1664 = vmatpush.msra.mxu2 %v4212_v41 }
 0x53b   :  { %2557 = vtanh.f32 %v1209_v55  ;;  %v1206_v3 = vadd.f32 0.5, %v1205_v63  ;;  %1628 = vmatpush.msrb.mxu0 %v5497_v52  ;;  %1648 = vmatpush.msrb.mxu1 %v5498_v60  ;;  %v5499_v55 = vld [vmem:[#allocation46_spill] sm:$0xff]  ;;  %v5500_v63 = vmov 0.0  }
 0x53c   :  { %1684 = vmatpush.msra.mxu3 %v4220_v43  ;;  %1665 = vmatpush.msra.mxu2 %v4227_v47 }
 0x53d   :  { %1629 = vmatpush.msrb.mxu0 %v4264_v7  ;;  %1649 = vmatpush.msrb.mxu1 %v4266_v19 }
 0x53e   :  { %1685 = vmatpush.msra.mxu3 %v4231_v48  ;;  %1666 = vmatpush.msra.mxu2 %v4238_v53 }
 0x540   :  { %1686 = vmatpush.msra.mxu3 %v5492_v49  ;;  %1667 = vmatpush.msra.mxu2 %v5495_v33 }
 0x541   :  { %v2558_v54 = vpop.eup %2557 }
 0x542   :  { %v1211_v56 = vmul.f32 %v2558_v54, %v1206_v3  ;;  %1687 = vmatpush.msra.mxu3 %v5496_v4  ;;  %1668 = vmatpush.msra.mxu2 %v5499_v55  ;;  %v5501_v3 = vld [vmem:[#allocation17_spill] sm:$0xff] }
 0x543   :  { %1630 = vmatpush.msrb.mxu0 %v5501_v3  ;;  %v5502_v54 = vld [vmem:[#allocation29_spill] sm:$0xff] }
 0x544   :  { %1387 = vmatmul.f32.gmra.mxu0 %v1211_v56  ;;  %1428 = vmatmul.f32.gmra.mxu1 %v1211_v56 }
 0x545   :  { %1469 = vmatmul.f32.gmra.mxu2 %v1211_v56  ;;  %1510 = vmatmul.f32.gmra.mxu3 %v1211_v56  ;;  %v5503_v56 = vld [vmem:[#allocation21_spill] sm:$0xff] }
 0x546   :  { %1688 = vmatpush.msra.mxu3 %v4276_v25  ;;  %1669 = vmatpush.msra.mxu2 %v4274_v38  ;;  %v5504_v38 = vld [vmem:[#allocation23_spill] sm:$0xff] }
 0x547   :  { %1650 = vmatpush.msrb.mxu1 %v5502_v54  ;;  %1631 = vmatpush.msrb.mxu0 %v4292_v11 }
 0x548   :  { %1689 = vmatpush.msra.mxu3 %v4288_v2  ;;  %1670 = vmatpush.msra.mxu2 %v5503_v56 }
 0x549   :  { %1651 = vmatpush.msrb.mxu1 %v5504_v38 }
 0x54a   :  { %1690 = vmatpush.msra.mxu3 %v4300_v59  ;;  %1671 = vmatpush.msra.mxu2 %v4298_v57 }
 0x54c   :  { %1530 = vmatmul.f32.vlgmr.msra.gmra.mxu0 %v5500_v63  ;;  %1550 = vmatmul.f32.vlgmr.msra.gmra.mxu1 %v5500_v63 }
 0x54d   :  { %1570 = vmatmul.f32.vlgmr.msrb.gmra.mxu2 %v5500_v63  ;;  %1590 = vmatmul.f32.vlgmr.msrb.gmra.mxu3 %v5500_v63  ;;  %v5505_v63 = vld [vmem:[#allocation56_spill] sm:$0xff] }
 0x54e   :  { %1691 = vmatpush.msra.mxu3 %v4306_v6  ;;  %1718 = vmatpush.msra.mxu0 %v4099_v0 }
 0x54f   :  { %1738 = vmatpush.msra.mxu1 %v4101_v1  ;;  %1758 = vmatpush.msrb.mxu2 %v4103_v29 }
 0x550   :  { %1778 = vmatpush.msrb.mxu3 %v4114_v9  ;;  %1719 = vmatpush.msra.mxu0 %v4107_v18 }
 0x551   :  { %1739 = vmatpush.msra.mxu1 %v4109_v5  ;;  %1759 = vmatpush.msrb.mxu2 %v4111_v28 }
 0x552   :  { %1779 = vmatpush.msrb.mxu3 %v4124_v20  ;;  %1720 = vmatpush.msra.mxu0 %v4116_v24 }
 0x553   :  { %1740 = vmatpush.msra.mxu1 %v4118_v35  ;;  %1760 = vmatpush.msrb.mxu2 %v4122_v23 }
 0x554   :  { %1780 = vmatpush.msrb.mxu3 %v4140_v45  ;;  %1721 = vmatpush.msra.mxu0 %v4132_v34 }
 0x555   :  { %1741 = vmatpush.msra.mxu1 %v4134_v15  ;;  %1761 = vmatpush.msrb.mxu2 %v4138_v32 }
 0x556   :  { %1781 = vmatpush.msrb.mxu3 %v4152_v62  ;;  %1722 = vmatpush.msra.mxu0 %v4144_v31 }
 0x557   :  { %1742 = vmatpush.msra.mxu1 %v4146_v58  ;;  %1762 = vmatpush.msrb.mxu2 %v4150_v61 }
 0x558   :  { %1782 = vmatpush.msrb.mxu3 %v4164_v14  ;;  %1723 = vmatpush.msra.mxu0 %v4156_v8 }
 0x559   :  { %1743 = vmatpush.msra.mxu1 %v4158_v12  ;;  %1763 = vmatpush.msrb.mxu2 %v4162_v13 }
 0x55a   :  { %1783 = vmatpush.msrb.mxu3 %v4180_v26  ;;  %1724 = vmatpush.msra.mxu0 %v4172_v16 }
 0x55b   :  { %1744 = vmatpush.msra.mxu1 %v4174_v17  ;;  %1764 = vmatpush.msrb.mxu2 %v4178_v22 }
 0x55c   :  { %1784 = vmatpush.msrb.mxu3 %v4204_v39  ;;  %1725 = vmatpush.msra.mxu0 %v4196_v30 }
 0x55d   :  { %1745 = vmatpush.msra.mxu1 %v4198_v36  ;;  %1765 = vmatpush.msrb.mxu2 %v4200_v37 }
 0x55e   :  { %1785 = vmatpush.msrb.mxu3 %v4216_v42  ;;  %1726 = vmatpush.msra.mxu0 %v4206_v27 }
 0x55f   :  { %1746 = vmatpush.msra.mxu1 %v4208_v40  ;;  %1766 = vmatpush.msrb.mxu2 %v4212_v41 }
 0x560   :  { %1786 = vmatpush.msrb.mxu3 %v4220_v43  ;;  %1727 = vmatpush.msra.mxu0 %v4223_v44 }
 0x561   :  { %1747 = vmatpush.msra.mxu1 %v4225_v46  ;;  %1767 = vmatpush.msrb.mxu2 %v4227_v47 }
 0x562   :  { %1787 = vmatpush.msrb.mxu3 %v4231_v48  ;;  %1728 = vmatpush.msra.mxu0 %v4234_v50 }
 0x563   :  { %1748 = vmatpush.msra.mxu1 %v4236_v51  ;;  %1768 = vmatpush.msrb.mxu2 %v4238_v53 }
 0x564   :  { %1788 = vmatpush.msrb.mxu3 %v5492_v49  ;;  %1729 = vmatpush.msra.mxu0 %v5493_v10 }
 0x565   :  { %1749 = vmatpush.msra.mxu1 %v5494_v21  ;;  %1769 = vmatpush.msrb.mxu2 %v5495_v33 }
 0x566   :  { %1789 = vmatpush.msrb.mxu3 %v5496_v4  ;;  %1730 = vmatpush.msra.mxu0 %v5497_v52 }
 0x567   :  { %1750 = vmatpush.msra.mxu1 %v5498_v60  ;;  %1770 = vmatpush.msrb.mxu2 %v5499_v55 }
 0x568   :  { %1790 = vmatpush.msrb.mxu3 %v4276_v25  ;;  %1731 = vmatpush.msra.mxu0 %v4264_v7  ;;  %v1449_v7 = vpop.f32.mrf.mxu2 }
 0x569   :  { %1751 = vmatpush.msra.mxu1 %v4266_v19  ;;  %1771 = vmatpush.msrb.mxu2 %v5505_v63  ;;  %v1367_v19 = vpop.f32.mrf.mxu0  ;;  %v1408_v63 = vpop.f32.mrf.mxu1 }
 0x56a   :  { %1791 = vmatpush.msrb.mxu3 %v4288_v2  ;;  %1732 = vmatpush.msra.mxu0 %v5501_v3  ;;  %v1490_v2 = vpop.f32.mrf.mxu3 }
 0x56b   :  { %1752 = vmatpush.msra.mxu1 %v5502_v54  ;;  %1772 = vmatpush.msrb.mxu2 %v5503_v56 }
 0x56c   :  { %1792 = vmatpush.msrb.mxu3 %v4300_v59  ;;  %1733 = vmatpush.msra.mxu0 %v4292_v11 }
 0x56d   :  { %1753 = vmatpush.msra.mxu1 %v5504_v38  ;;  %1773 = vmatpush.msrb.mxu2 %v4298_v57 }
 0x56e   :  { %1793 = vmatpush.msrb.mxu3 %v4306_v6 }
 0x570   :  { %v4452_v54 = vpop.f32.mrf.mxu2 }
 0x571   :  { %v4448_v25 = vpop.f32.mrf.mxu0  ;;  %v4450_v3 = vpop.f32.mrf.mxu1  ;;  %5508 = vst [vmem:[#allocation34_spill] sm:$0xff] %v4452_v54 }
 0x572   :  { %5506 = vst [vmem:[#allocation28_spill] sm:$0xff] %v4448_v25  ;;  %v4454_v56 = vpop.f32.mrf.mxu3 }
 0x573   :  { %5507 = vst [vmem:[#allocation19_spill] sm:$0xff] %v4450_v3 }
 0x574   :  { %5509 = vst [vmem:[#allocation27_spill] sm:$0xff] %v4454_v56 }
 0x578   :  { %v4460_v38 = vpop.f32.mrf.mxu2 }
 0x579   :  { %v4456_v59 = vpop.f32.mrf.mxu0  ;;  %v4458_v11 = vpop.f32.mrf.mxu1  ;;  %5512 = vst [vmem:[#allocation33_spill] sm:$0xff] %v4460_v38 }
 0x57a   :  { %5510 = vst [vmem:[#allocation30_spill] sm:$0xff] %v4456_v59  ;;  %v4462_v57 = vpop.f32.mrf.mxu3 }
 0x57b   :  { %5511 = vst [vmem:[#allocation22_spill] sm:$0xff] %v4458_v11 }
 0x57c   :  { %5513 = vst [vmem:[#allocation36_spill] sm:$0xff] %v4462_v57 }
 0x580   :  { %v4468_v60 = vpop.f32.mrf.mxu2 }
 0x581   :  { %v4464_v6 = vpop.f32.mrf.mxu0  ;;  %v4466_v55 = vpop.f32.mrf.mxu1  ;;  %5516 = vst [vmem:[#allocation35_spill] sm:$0xff] %v4468_v60 }
 0x582   :  { %5514 = vst [vmem:[#allocation31_spill] sm:$0xff] %v4464_v6  ;;  %v4470_v25 = vpop.f32.mrf.mxu3 }
 0x583   :  { %5515 = vst [vmem:[#allocation32_spill] sm:$0xff] %v4466_v55 }
 0x584   :  { %5517 = vst [vmem:[#allocation37_spill] sm:$0xff] %v4470_v25 }
 0x588   :  { %v4476_v56 = vpop.f32.mrf.mxu2 }
 0x589   :  { %v4472_v3 = vpop.f32.mrf.mxu0  ;;  %v4474_v54 = vpop.f32.mrf.mxu1  ;;  %5520 = vst [vmem:[#allocation59_spill] sm:$0xff] %v4476_v56 }
 0x58a   :  { %5518 = vst [vmem:[#allocation45_spill] sm:$0xff] %v4472_v3  ;;  %v4478_v59 = vpop.f32.mrf.mxu3 }
 0x58b   :  { %5519 = vst [vmem:[#allocation63_spill] sm:$0xff] %v4474_v54 }
 0x58c   :  { %5521 = vst [vmem:[#allocation62_spill] sm:$0xff] %v4478_v59  ;;  %v1340_v59 = vld [vmem:[%s5062_s6] sm:$0xf] }
 0x58d   :  { %v4513_v33 = vperm.slane %v1340_v59, 2 }
 0x58f   :  { %5536 = vst [vmem:[#allocation67_spill] sm:$0xff] %v4513_v33  ;;  %v1450_v10 = vadd.f32 %v1449_v7, %v4513_v33 }
 0x590   :  { %v4484_v57 = vpop.f32.mrf.mxu2 }
 0x591   :  { %v4480_v11 = vpop.f32.mrf.mxu0  ;;  %v4482_v38 = vpop.f32.mrf.mxu1  ;;  %5524 = vst [vmem:[#allocation61_spill] sm:$0xff] %v4484_v57  ;;  %v4505_v57 = vperm.slane %v1340_v59, 1 }
 0x592   :  { %5522 = vst [vmem:[#allocation58_spill] sm:$0xff] %v4480_v11  ;;  %v4486_v6 = vpop.f32.mrf.mxu3 }
 0x593   :  { %5523 = vst [vmem:[#allocation60_spill] sm:$0xff] %v4482_v38  ;;  %v4503_v38 = vperm.slane %v1340_v59, 0 }
 0x594   :  { %5525 = vst [vmem:[#allocation38_spill] sm:$0xff] %v4486_v6 }
 0x595   :  { %5532 = vst [vmem:[#allocation24_spill] sm:$0xff] %v4503_v38 }
 0x596   :  { %5533 = vst [vmem:[#allocation40_spill] sm:$0xff] %v4505_v57 }
 0x598   :  { %v4492_v25 = vpop.f32.mrf.mxu2 }
 0x599   :  { %v4488_v55 = vpop.f32.mrf.mxu0  ;;  %v4490_v60 = vpop.f32.mrf.mxu1  ;;  %5528 = vst [vmem:[#allocation65_spill] sm:$0xff] %v4492_v25 }
 0x59a   :  { %5526 = vst [vmem:[#allocation39_spill] sm:$0xff] %v4488_v55  ;;  %v4494_v3 = vpop.f32.mrf.mxu3  ;;  %v1368_v55 = vadd.f32 %v1367_v19, %v4503_v38 }
 0x59b   :  { %5527 = vst [vmem:[#allocation64_spill] sm:$0xff] %v4490_v60  ;;  %v1409_v60 = vadd.f32 %v1408_v63, %v4505_v57 }
 0x59c   :  { %5529 = vst [vmem:[#allocation68_spill] sm:$0xff] %v4494_v3 }
 0x5c1   :  { %v4499_v56 = vpop.f32.mrf.mxu0  ;;  %v4501_v11 = vpop.f32.mrf.mxu1 }
 0x5c2   :  { %5530 = vst [vmem:[#allocation43_spill] sm:$0xff] %v4499_v56  ;;  %v4515_v56 = vperm.slane %v1340_v59, 3 }
 0x5c3   :  { %5531 = vst [vmem:[#allocation42_spill] sm:$0xff] %v4501_v11 }
 0x5c4   :  { %v1491_v19 = vadd.f32 %v1490_v2, %v4515_v56 }
 0x5c8   :  { %v4509_v6 = vpop.f32.mrf.mxu2  ;;  %v4511_v25 = vpop.f32.mrf.mxu3 }
 0x5c9   :  { %5534 = vst [vmem:[#allocation41_spill] sm:$0xff] %v4509_v6  ;;  %v1531_v3 = vpop.f32.mrf.mxu0  ;;  %v1551_v54 = vpop.f32.mrf.mxu1 }
 0x5ca   :  { %5535 = vst [vmem:[#allocation66_spill] sm:$0xff] %v4511_v25  ;;  %v1594_v52 = vadd.f32 %v1531_v3, %v1368_v55  ;;  %v1595_v4 = vadd.f32 %v1551_v54, %v1409_v60 }
 0x5cc   :  { %v1598_v11 = vmul.f32 0.5, %v1594_v52  ;;  %v1602_v21 = vmul.f32 0.5, %v1595_v4 }
 0x5ce   :  { %2559 = vtanh.f32 %v1598_v11 }
 0x5cf   :  { %2561 = vtanh.f32 %v1602_v21  ;;  %v5540_v21 = vld [vmem:[#allocation48_spill] sm:$0xff] }
 0x5d0   :  { %v1571_v63 = vpop.f32.mrf.mxu2  ;;  %v1591_v6 = vpop.f32.mrf.mxu3 }
 0x5d1   :  { %v1596_v57 = vadd.f32 %v1571_v63, %v1450_v10  ;;  %v1597_v25 = vadd.f32 %v1591_v6, %v1491_v19  ;;  %v5541_v19 = vld [vmem:[#allocation47_spill] sm:$0xff]  ;;  %v5542_v63 = vld [vmem:[#allocation52_spill] sm:$0xff] }
 0x5d3   :  { %2563 = vtanh.f32 %v1596_v57  ;;  %v1607_v38 = vmul.f32 0.5, %v1597_v25  ;;  %v5538_v25 = vld [vmem:[#allocation50_spill] sm:$0xff] }
 0x5d4   :  { %v2560_v55 = vpop.eup %2559 }
 0x5d5   :  { %v2562_v60 = vpop.eup %2561  ;;  %v1600_v3 = vmul.f32 0.5, %v2560_v55  ;;  %2565 = vtanh.f32 %v1607_v38  ;;  %v5537_v38 = vld [vmem:[#allocation49_spill] sm:$0xff] }
 0x5d6   :  { %v1604_v54 = vmul.f32 0.5, %v2562_v60  ;;  %v5543_v55 = vld [vmem:[#allocation53_spill] sm:$0xff]  ;;  %v5544_v60 = vld [vmem:[#allocation46_spill] sm:$0xff] }
 0x5d7   :  { %v1601_v59 = vadd.f32 0.5, %v1600_v3  ;;  %v5545_v3 = vld [vmem:[#allocation57_spill] sm:$0xff] }
 0x5d8   :  { %v1605_v52 = vadd.f32 0.5, %v1604_v54  ;;  %v5546_v54 = vld [vmem:[#allocation55_spill] sm:$0xff] }
 0x5d9   :  { %v2564_v4 = vpop.eup %2563 }
 0x5da   :  { %v1611_v11 = vmul.f32 0.0, %v1605_v52  ;;  %v1612_v49 = vmul.f32 %v2564_v4, %v1601_v59  ;;  %v5547_v59 = vld [vmem:[#allocation54_spill] sm:$0xff]  ;;  %v5548_v52 = vld [vmem:[#allocation56_spill] sm:$0xff] }
 0x5db   :  { %v2566_v7 = vpop.eup %2565  ;;  %v5549_v4 = vld [vmem:[#allocation16_spill] sm:$0xff] }
 0x5dc   :  { %v4519_v33 = vadd.f32 %v1612_v49, %v1611_v11  ;;  %v1609_v2 = vmul.f32 0.5, %v2566_v7  ;;  %v5539_v49 = vld [vmem:[#allocation51_spill] sm:$0xff]  ;;  %v5550_v11 = vld [vmem:[#allocation17_spill] sm:$0xff] }
 0x5dd   :  { %v5551_v7 = vld [vmem:[#allocation29_spill] sm:$0xff] }
 0x5de   :  { %2567 = vtanh.f32 %v4519_v33  ;;  %v1610_v10 = vadd.f32 0.5, %v1609_v2  ;;  %v5552_v2 = vld [vmem:[#allocation21_spill] sm:$0xff] }
 0x5e4   :  { %v2568_v6 = vpop.eup %2567 }
 0x5e5   :  { %v1615_v57 = vmul.f32 %v2568_v6, %v1610_v10  ;;  %v5553_v10 = vld [vmem:[#allocation25_spill] sm:$0xff]  ;;  %v5554_v6 = vld [vmem:[#allocation18_spill] sm:$0xff] }
 0x5e7   :  { %1632 = vmatmul.f32.vlgmr.msrb.gmra.mxu0 %v1615_v57  ;;  %1652 = vmatmul.f32.vlgmr.msrb.gmra.mxu1 %v1615_v57 }
 0x5e8   :  { %1672 = vmatmul.f32.vlgmr.msra.gmra.mxu2 %v1615_v57  ;;  %1692 = vmatmul.f32.vlgmr.msra.gmra.mxu3 %v1615_v57  ;;  %v5555_v57 = vld [vmem:[#allocation23_spill] sm:$0xff] }
 0x5e9   :  { %1820 = vmatpush.msrb.mxu0 %v4099_v0  ;;  %1840 = vmatpush.msrb.mxu1 %v4101_v1 }
 0x5ea   :  { %1860 = vmatpush.msra.mxu2 %v4103_v29  ;;  %1880 = vmatpush.msra.mxu3 %v4114_v9 }
 0x5eb   :  { %1821 = vmatpush.msrb.mxu0 %v4107_v18  ;;  %1841 = vmatpush.msrb.mxu1 %v4109_v5 }
 0x5ec   :  { %1861 = vmatpush.msra.mxu2 %v4111_v28  ;;  %1881 = vmatpush.msra.mxu3 %v4124_v20 }
 0x5ed   :  { %1822 = vmatpush.msrb.mxu0 %v4116_v24  ;;  %1842 = vmatpush.msrb.mxu1 %v4118_v35 }
 0x5ee   :  { %1862 = vmatpush.msra.mxu2 %v4122_v23  ;;  %1882 = vmatpush.msra.mxu3 %v4140_v45 }
 0x5ef   :  { %1823 = vmatpush.msrb.mxu0 %v4132_v34  ;;  %1843 = vmatpush.msrb.mxu1 %v4134_v15 }
 0x5f0   :  { %1863 = vmatpush.msra.mxu2 %v4138_v32  ;;  %1883 = vmatpush.msra.mxu3 %v4152_v62 }
 0x5f1   :  { %1824 = vmatpush.msrb.mxu0 %v4144_v31  ;;  %1844 = vmatpush.msrb.mxu1 %v4146_v58 }
 0x5f2   :  { %1864 = vmatpush.msra.mxu2 %v4150_v61  ;;  %1884 = vmatpush.msra.mxu3 %v4164_v14 }
 0x5f3   :  { %1825 = vmatpush.msrb.mxu0 %v4156_v8  ;;  %1845 = vmatpush.msrb.mxu1 %v4158_v12 }
 0x5f4   :  { %1865 = vmatpush.msra.mxu2 %v4162_v13  ;;  %1885 = vmatpush.msra.mxu3 %v4180_v26 }
 0x5f5   :  { %1826 = vmatpush.msrb.mxu0 %v4172_v16  ;;  %1846 = vmatpush.msrb.mxu1 %v4174_v17 }
 0x5f6   :  { %1866 = vmatpush.msra.mxu2 %v4178_v22  ;;  %1886 = vmatpush.msra.mxu3 %v4204_v39 }
 0x5f7   :  { %1827 = vmatpush.msrb.mxu0 %v4196_v30  ;;  %1847 = vmatpush.msrb.mxu1 %v4198_v36 }
 0x5f8   :  { %1867 = vmatpush.msra.mxu2 %v4200_v37  ;;  %1887 = vmatpush.msra.mxu3 %v4216_v42 }
 0x5f9   :  { %1828 = vmatpush.msrb.mxu0 %v4206_v27  ;;  %1848 = vmatpush.msrb.mxu1 %v4208_v40 }
 0x5fa   :  { %1868 = vmatpush.msra.mxu2 %v4212_v41  ;;  %1888 = vmatpush.msra.mxu3 %v4220_v43 }
 0x5fb   :  { %1829 = vmatpush.msrb.mxu0 %v4223_v44  ;;  %1849 = vmatpush.msrb.mxu1 %v4225_v46 }
 0x5fc   :  { %1869 = vmatpush.msra.mxu2 %v4227_v47  ;;  %1889 = vmatpush.msra.mxu3 %v4231_v48 }
 0x5fd   :  { %1830 = vmatpush.msrb.mxu0 %v4234_v50  ;;  %1850 = vmatpush.msrb.mxu1 %v4236_v51 }
 0x5fe   :  { %1870 = vmatpush.msra.mxu2 %v4238_v53  ;;  %1890 = vmatpush.msra.mxu3 %v5537_v38 }
 0x5ff   :  { %1831 = vmatpush.msrb.mxu0 %v5538_v25  ;;  %1851 = vmatpush.msrb.mxu1 %v5539_v49  ;;  %v5563_v49 = vld [vmem:[#allocation34_spill] sm:$0xff] }
 0x600   :  { %1871 = vmatpush.msra.mxu2 %v5540_v21  ;;  %1891 = vmatpush.msra.mxu3 %v5541_v19 }
 0x601   :  { %1832 = vmatpush.msrb.mxu0 %v5542_v63  ;;  %1852 = vmatpush.msrb.mxu1 %v5543_v55  ;;  %v5561_v55 = vld [vmem:[#allocation19_spill] sm:$0xff] }
 0x602   :  { %1872 = vmatpush.msra.mxu2 %v5544_v60  ;;  %1892 = vmatpush.msra.mxu3 %v5545_v3  ;;  %v5556_v3 = vld [vmem:[#allocation20_spill] sm:$0xff] }
 0x603   :  { %1833 = vmatpush.msrb.mxu0 %v5546_v54  ;;  %1853 = vmatpush.msrb.mxu1 %v5547_v59  ;;  %v5557_v54 = vld [vmem:[#allocation26_spill] sm:$0xff]  ;;  %v5558_v59 = vld [vmem:[#allocation24_spill] sm:$0xff] }
 0x604   :  { %1873 = vmatpush.msra.mxu2 %v5548_v52  ;;  %1893 = vmatpush.msra.mxu3 %v5549_v4  ;;  %v5559_v52 = vld [vmem:[#allocation28_spill] sm:$0xff] }
 0x605   :  { %1834 = vmatpush.msrb.mxu0 %v5550_v11  ;;  %1854 = vmatpush.msrb.mxu1 %v5551_v7  ;;  %v1371_v60 = vadd.f32 %v5559_v52, %v5558_v59  ;;  %v5560_v4 = vld [vmem:[#allocation40_spill] sm:$0xff] }
 0x606   :  { %1874 = vmatpush.msra.mxu2 %v5552_v2  ;;  %1894 = vmatpush.msra.mxu3 %v5553_v10  ;;  %v1412_v11 = vadd.f32 %v5561_v55, %v5560_v4 }
 0x607   :  { %1835 = vmatpush.msrb.mxu0 %v5554_v6  ;;  %1855 = vmatpush.msrb.mxu1 %v5555_v57  ;;  %v5562_v6 = vld [vmem:[#allocation67_spill] sm:$0xff] }
 0x608   :  { %1875 = vmatpush.msra.mxu2 %v5556_v3  ;;  %1895 = vmatpush.msra.mxu3 %v5557_v54  ;;  %v1453_v57 = vadd.f32 %v5563_v49, %v5562_v6  ;;  %v5564_v3 = vld [vmem:[#allocation27_spill] sm:$0xff] }
 0x609   :  { %v1494_v25 = vadd.f32 %v5564_v3, %v4515_v56 }
 0x664   :  { %v1633_v63 = vpop.f32.mrf.mxu0  ;;  %v1653_v7 = vpop.f32.mrf.mxu1 }
 0x665   :  { %v1696_v19 = vadd.f32 %v1633_v63, %v1371_v60  ;;  %v1697_v2 = vadd.f32 %v1653_v7, %v1412_v11 }
 0x667   :  { %v1700_v21 = vmul.f32 0.5, %v1696_v19  ;;  %v1704_v10 = vmul.f32 0.5, %v1697_v2 }
 0x669   :  { %2569 = vtanh.f32 %v1700_v21 }
 0x66a   :  { %2571 = vtanh.f32 %v1704_v10 }
 0x66b   :  { %v1673_v54 = vpop.f32.mrf.mxu2  ;;  %v1693_v38 = vpop.f32.mrf.mxu3 }
 0x66c   :  { %v1698_v52 = vadd.f32 %v1673_v54, %v1453_v57  ;;  %v1699_v59 = vadd.f32 %v1693_v38, %v1494_v25 }
 0x66e   :  { %2573 = vtanh.f32 %v1698_v52  ;;  %v1709_v55 = vmul.f32 0.5, %v1699_v59 }
 0x66f   :  { %v2570_v4 = vpop.eup %2569 }
 0x670   :  { %v2572_v53 = vpop.eup %2571  ;;  %v1702_v63 = vmul.f32 0.5, %v2570_v4  ;;  %2575 = vtanh.f32 %v1709_v55 }
 0x671   :  { %v1706_v60 = vmul.f32 0.5, %v2572_v53 }
 0x672   :  { %v1703_v19 = vadd.f32 0.5, %v1702_v63 }
 0x673   :  { %v1707_v21 = vadd.f32 0.5, %v1706_v60 }
 0x674   :  { %v2574_v11 = vpop.eup %2573 }
 0x675   :  { %v1713_v49 = vmul.f32 %v1707_v21, %v4519_v33  ;;  %v1714_v7 = vmul.f32 %v2574_v11, %v1703_v19 }
 0x676   :  { %v2576_v2 = vpop.eup %2575 }
 0x677   :  { %v4595_v3 = vadd.f32 %v1714_v7, %v1713_v49  ;;  %v1711_v54 = vmul.f32 0.5, %v2576_v2 }
 0x679   :  { %2577 = vtanh.f32 %v4595_v3  ;;  %v1712_v38 = vadd.f32 0.5, %v1711_v54 }
 0x67f   :  { %v2578_v25 = vpop.eup %2577 }
 0x680   :  { %v1717_v59 = vmul.f32 %v2578_v25, %v1712_v38  ;;  %v4674_v38 = vld [vmem:[#allocation7 + $0x1e0] sm:$0xff]  ;;  %v4677_v25 = vld [vmem:[#allocation7 + $0x1e8] sm:$0xff] }
 0x682   :  { %1734 = vmatmul.f32.vlgmr.msra.gmra.mxu0 %v1717_v59  ;;  %1754 = vmatmul.f32.vlgmr.msra.gmra.mxu1 %v1717_v59 }
 0x683   :  { %1774 = vmatmul.f32.vlgmr.msrb.gmra.mxu2 %v1717_v59  ;;  %1794 = vmatmul.f32.vlgmr.msrb.gmra.mxu3 %v1717_v59  ;;  %v4683_v59 = vld [vmem:[#allocation7 + $0x1f8] sm:$0xff] }
 0x684   :  { %1922 = vmatpush.msra.mxu0 %v4099_v0  ;;  %1942 = vmatpush.msra.mxu1 %v4101_v1  ;;  %v5565_v0 = vld [vmem:[#allocation44_spill] sm:$0xff]  ;;  %v5566_v1 = vld [vmem:[#allocation49_spill] sm:$0xff] }
 0x685   :  { %1962 = vmatpush.msrb.mxu2 %v4103_v29  ;;  %1982 = vmatpush.msrb.mxu3 %v4114_v9  ;;  %v5567_v29 = vld [vmem:[#allocation50_spill] sm:$0xff]  ;;  %v5571_v9 = vld [vmem:[#allocation52_spill] sm:$0xff] }
 0x686   :  { %1923 = vmatpush.msra.mxu0 %v4107_v18  ;;  %1943 = vmatpush.msra.mxu1 %v4109_v5  ;;  %v5568_v18 = vld [vmem:[#allocation51_spill] sm:$0xff]  ;;  %v5569_v5 = vld [vmem:[#allocation48_spill] sm:$0xff] }
 0x687   :  { %1963 = vmatpush.msrb.mxu2 %v4111_v28  ;;  %1983 = vmatpush.msrb.mxu3 %v4124_v20  ;;  %v5570_v28 = vld [vmem:[#allocation47_spill] sm:$0xff] }
 0x688   :  { %1924 = vmatpush.msra.mxu0 %v4116_v24  ;;  %1944 = vmatpush.msra.mxu1 %v4118_v35  ;;  %v5572_v24 = vld [vmem:[#allocation53_spill] sm:$0xff]  ;;  %v5573_v35 = vld [vmem:[#allocation46_spill] sm:$0xff]  ;;  %v5575_v20 = vld [vmem:[#allocation55_spill] sm:$0xff] }
 0x689   :  { %1964 = vmatpush.msrb.mxu2 %v4122_v23  ;;  %1984 = vmatpush.msrb.mxu3 %v4140_v45  ;;  %v5574_v23 = vld [vmem:[#allocation57_spill] sm:$0xff] }
 0x68a   :  { %1925 = vmatpush.msra.mxu0 %v4132_v34  ;;  %1945 = vmatpush.msra.mxu1 %v4134_v15  ;;  %v5576_v34 = vld [vmem:[#allocation54_spill] sm:$0xff]  ;;  %v5577_v15 = vld [vmem:[#allocation56_spill] sm:$0xff]  ;;  %v5579_v45 = vld [vmem:[#allocation17_spill] sm:$0xff] }
 0x68b   :  { %1965 = vmatpush.msrb.mxu2 %v4138_v32  ;;  %1985 = vmatpush.msrb.mxu3 %v4152_v62  ;;  %v5578_v32 = vld [vmem:[#allocation16_spill] sm:$0xff]  ;;  %v5583_v62 = vld [vmem:[#allocation18_spill] sm:$0xff] }
 0x68c   :  { %1926 = vmatpush.msra.mxu0 %v4144_v31  ;;  %1946 = vmatpush.msra.mxu1 %v4146_v58  ;;  %v5580_v31 = vld [vmem:[#allocation29_spill] sm:$0xff] }
 0x68d   :  { %1966 = vmatpush.msrb.mxu2 %v4150_v61  ;;  %1986 = vmatpush.msrb.mxu3 %v4164_v14  ;;  %v5581_v58 = vld [vmem:[#allocation21_spill] sm:$0xff]  ;;  %v5587_v14 = vld [vmem:[#allocation24_spill] sm:$0xff] }
 0x68e   :  { %1927 = vmatpush.msra.mxu0 %v4156_v8  ;;  %1947 = vmatpush.msra.mxu1 %v4158_v12  ;;  %v5582_v61 = vld [vmem:[#allocation25_spill] sm:$0xff]  ;;  %v5584_v8 = vld [vmem:[#allocation23_spill] sm:$0xff]  ;;  %v5585_v12 = vld [vmem:[#allocation20_spill] sm:$0xff] }
 0x68f   :  { %1967 = vmatpush.msrb.mxu2 %v4162_v13  ;;  %1987 = vmatpush.msrb.mxu3 %v4180_v26  ;;  %v5586_v13 = vld [vmem:[#allocation26_spill] sm:$0xff] }
 0x690   :  { %1928 = vmatpush.msra.mxu0 %v4172_v16  ;;  %1948 = vmatpush.msra.mxu1 %v4174_v17  ;;  %v5588_v16 = vld [vmem:[#allocation30_spill] sm:$0xff] }
 0x691   :  { %1968 = vmatpush.msrb.mxu2 %v4178_v22  ;;  %1988 = vmatpush.msrb.mxu3 %v4204_v39  ;;  %v1374_v17 = vadd.f32 %v5588_v16, %v5587_v14  ;;  %v5589_v22 = vld [vmem:[#allocation40_spill] sm:$0xff]  ;;  %v5590_v26 = vld [vmem:[#allocation22_spill] sm:$0xff] }
 0x692   :  { %1929 = vmatpush.msra.mxu0 %v4196_v30  ;;  %1949 = vmatpush.msra.mxu1 %v4198_v36  ;;  %v1415_v30 = vadd.f32 %v5590_v26, %v5589_v22  ;;  %v4749_v16 = vld [vmem:[#allocation7 + $0x128] sm:$0xff]  ;;  %v4755_v26 = vld [vmem:[#allocation7 + $0x138] sm:$0xff] }
 0x693   :  { %1969 = vmatpush.msrb.mxu2 %v4200_v37  ;;  %1989 = vmatpush.msrb.mxu3 %v4216_v42  ;;  %v5591_v42 = vld [vmem:[#allocation33_spill] sm:$0xff] }
 0x694   :  { %1930 = vmatpush.msra.mxu0 %v4206_v27  ;;  %1950 = vmatpush.msra.mxu1 %v4208_v40 }
 0x695   :  { %1970 = vmatpush.msrb.mxu2 %v4212_v41  ;;  %1990 = vmatpush.msrb.mxu3 %v4220_v43  ;;  %v1456_v43 = vadd.f32 %v5591_v42, %v5562_v6  ;;  %v4779_v42 = vld [vmem:[#allocation7 + $0xf8] sm:$0xff] }
 0x696   :  { %1931 = vmatpush.msra.mxu0 %v4223_v44  ;;  %1951 = vmatpush.msra.mxu1 %v4225_v46  ;;  %v5592_v44 = vld [vmem:[#allocation36_spill] sm:$0xff] }
 0x697   :  { %1971 = vmatpush.msrb.mxu2 %v4227_v47  ;;  %1991 = vmatpush.msrb.mxu3 %v4231_v48  ;;  %v1497_v46 = vadd.f32 %v5592_v44, %v4515_v56  ;;  %v4785_v44 = vld [vmem:[#allocation7 + $0xc8] sm:$0xff] }
 0x698   :  { %1932 = vmatpush.msra.mxu0 %v4234_v50  ;;  %1952 = vmatpush.msra.mxu1 %v4236_v51 }
 0x699   :  { %1972 = vmatpush.msrb.mxu2 %v5565_v0  ;;  %1992 = vmatpush.msrb.mxu3 %v5566_v1  ;;  %v4686_v0 = vld [vmem:[#allocation7 + $0x1c0] sm:$0xff]  ;;  %v4689_v1 = vld [vmem:[#allocation7 + $0x1c8] sm:$0xff] }
 0x69a   :  { %1933 = vmatpush.msra.mxu0 %v5567_v29  ;;  %1953 = vmatpush.msra.mxu1 %v5568_v18  ;;  %v4692_v29 = vld [vmem:[#allocation7 + $0x1d0] sm:$0xff]  ;;  %v4695_v18 = vld [vmem:[#allocation7 + $0x1d8] sm:$0xff] }
 0x69b   :  { %1973 = vmatpush.msrb.mxu2 %v5569_v5  ;;  %1993 = vmatpush.msrb.mxu3 %v5570_v28  ;;  %v4698_v5 = vld [vmem:[#allocation7 + $0x1a0] sm:$0xff]  ;;  %v4701_v28 = vld [vmem:[#allocation7 + $0x1a8] sm:$0xff] }
 0x69c   :  { %1934 = vmatpush.msra.mxu0 %v5571_v9  ;;  %1954 = vmatpush.msra.mxu1 %v5572_v24  ;;  %v4704_v9 = vld [vmem:[#allocation7 + $0x1b0] sm:$0xff]  ;;  %v4707_v24 = vld [vmem:[#allocation7 + $0x1b8] sm:$0xff] }
 0x69d   :  { %1974 = vmatpush.msrb.mxu2 %v5573_v35  ;;  %1994 = vmatpush.msrb.mxu3 %v5574_v23  ;;  %v4710_v35 = vld [vmem:[#allocation7 + $0x180] sm:$0xff]  ;;  %v4713_v23 = vld [vmem:[#allocation7 + $0x188] sm:$0xff] }
 0x69e   :  { %1935 = vmatpush.msra.mxu0 %v5575_v20  ;;  %1955 = vmatpush.msra.mxu1 %v5576_v34  ;;  %v4716_v20 = vld [vmem:[#allocation7 + $0x190] sm:$0xff]  ;;  %v4719_v34 = vld [vmem:[#allocation7 + $0x198] sm:$0xff] }
 0x69f   :  { %1975 = vmatpush.msrb.mxu2 %v5577_v15  ;;  %1995 = vmatpush.msrb.mxu3 %v5578_v32  ;;  %v4722_v15 = vld [vmem:[#allocation7 + $0x160] sm:$0xff]  ;;  %v4725_v32 = vld [vmem:[#allocation7 + $0x168] sm:$0xff] }
 0x6a0   :  { %1936 = vmatpush.msra.mxu0 %v5579_v45  ;;  %1956 = vmatpush.msra.mxu1 %v5580_v31  ;;  %v4728_v45 = vld [vmem:[#allocation7 + $0x170] sm:$0xff]  ;;  %v4731_v31 = vld [vmem:[#allocation7 + $0x178] sm:$0xff] }
 0x6a1   :  { %1976 = vmatpush.msrb.mxu2 %v5581_v58  ;;  %1996 = vmatpush.msrb.mxu3 %v5582_v61  ;;  %v4734_v58 = vld [vmem:[#allocation7 + $0x140] sm:$0xff]  ;;  %v4737_v61 = vld [vmem:[#allocation7 + $0x148] sm:$0xff] }
 0x6a2   :  { %1937 = vmatpush.msra.mxu0 %v5583_v62  ;;  %1957 = vmatpush.msra.mxu1 %v5584_v8  ;;  %v4740_v62 = vld [vmem:[#allocation7 + $0x150] sm:$0xff]  ;;  %v4743_v8 = vld [vmem:[#allocation7 + $0x158] sm:$0xff] }
 0x6a3   :  { %1977 = vmatpush.msrb.mxu2 %v5585_v12  ;;  %1997 = vmatpush.msrb.mxu3 %v5586_v13  ;;  %v4746_v12 = vld [vmem:[#allocation7 + $0x120] sm:$0xff] }
 0x6ff   :  { %v1735_v36 = vpop.f32.mrf.mxu0  ;;  %v1755_v37 = vpop.f32.mrf.mxu1 }
 0x700   :  { %v1798_v39 = vadd.f32 %v1735_v36, %v1374_v17  ;;  %v1799_v27 = vadd.f32 %v1755_v37, %v1415_v30  ;;  %v4752_v17 = vld [vmem:[#allocation7 + $0x130] sm:$0xff]  ;;  %v4758_v30 = vld [vmem:[#allocation7 + $0x100] sm:$0xff]  ;;  %v4761_v36 = vld [vmem:[#allocation7 + $0x108] sm:$0xff] }
 0x701   :  { %v4764_v37 = vld [vmem:[#allocation7 + $0x110] sm:$0xff] }
 0x702   :  { %v1802_v40 = vmul.f32 0.5, %v1798_v39  ;;  %v1806_v41 = vmul.f32 0.5, %v1799_v27  ;;  %v4767_v39 = vld [vmem:[#allocation7 + $0x118] sm:$0xff]  ;;  %v4770_v27 = vld [vmem:[#allocation7 + $0xe0] sm:$0xff] }
 0x704   :  { %2579 = vtanh.f32 %v1802_v40  ;;  %v4773_v40 = vld [vmem:[#allocation7 + $0xe8] sm:$0xff] }
 0x705   :  { %2581 = vtanh.f32 %v1806_v41  ;;  %v4776_v41 = vld [vmem:[#allocation7 + $0xf0] sm:$0xff] }
 0x706   :  { %v1775_v47 = vpop.f32.mrf.mxu2  ;;  %v1795_v48 = vpop.f32.mrf.mxu3 }
 0x707   :  { %v1800_v50 = vadd.f32 %v1775_v47, %v1456_v43  ;;  %v1801_v51 = vadd.f32 %v1795_v48, %v1497_v46  ;;  %v4782_v43 = vld [vmem:[#allocation7 + $0xc0] sm:$0xff]  ;;  %v4788_v46 = vld [vmem:[#allocation7 + $0xd0] sm:$0xff]  ;;  %v4791_v47 = vld [vmem:[#allocation7 + $0xd8] sm:$0xff] }
 0x708   :  { %v4794_v48 = vld [vmem:[#allocation7 + $0xa0] sm:$0xff] }
 0x709   :  { %2583 = vtanh.f32 %v1800_v50  ;;  %v1811_v53 = vmul.f32 0.5, %v1801_v51  ;;  %v4797_v50 = vld [vmem:[#allocation7 + $0xa8] sm:$0xff]  ;;  %v4800_v51 = vld [vmem:[#allocation7 + $0xb0] sm:$0xff] }
 0x70a   :  { %v2580_v33 = vpop.eup %2579  ;;  %5593 = vst [vmem:[#allocation28_spill] sm:$0xff] %v4800_v51 }
 0x70b   :  { %v2582_v4 = vpop.eup %2581  ;;  %v1804_v10 = vmul.f32 0.5, %v2580_v33  ;;  %2585 = vtanh.f32 %v1811_v53  ;;  %v4803_v53 = vld [vmem:[#allocation7 + $0xb8] sm:$0xff]  ;;  %v4806_v33 = vld [vmem:[#allocation7 + $0x80] sm:$0xff] }
 0x70c   :  { %v1808_v57 = vmul.f32 0.5, %v2582_v4  ;;  %5594 = vst [vmem:[#allocation19_spill] sm:$0xff] %v4803_v53  ;;  %v4809_v4 = vld [vmem:[#allocation7 + $0x88] sm:$0xff] }
 0x70d   :  { %v1805_v52 = vadd.f32 0.5, %v1804_v10  ;;  %5595 = vst [vmem:[#allocation67_spill] sm:$0xff] %v4806_v33  ;;  %v4812_v10 = vld [vmem:[#allocation7 + $0x90] sm:$0xff] }
 0x70e   :  { %v1809_v55 = vadd.f32 0.5, %v1808_v57  ;;  %5596 = vst [vmem:[#allocation34_spill] sm:$0xff] %v4809_v4  ;;  %v4815_v57 = vld [vmem:[#allocation7 + $0x98] sm:$0xff] }
 0x70f   :  { %v2584_v63 = vpop.eup %2583  ;;  %5597 = vst [vmem:[#allocation27_spill] sm:$0xff] %v4812_v10 }
 0x710   :  { %v1815_v60 = vmul.f32 %v1809_v55, %v4595_v3  ;;  %v1816_v19 = vmul.f32 %v2584_v63, %v1805_v52  ;;  %v4680_v3 = vld [vmem:[#allocation7 + $0x1f0] sm:$0xff]  ;;  %5598 = vst [vmem:[#allocation44_spill] sm:$0xff] %v4815_v57  ;;  %v4818_v52 = vld [vmem:[#allocation7 + $0x60] sm:$0xff]  ;;  %v4821_v55 = vld [vmem:[#allocation7 + $0x68] sm:$0xff] }
 0x711   :  { %v2586_v21 = vpop.eup %2585  ;;  %5599 = vst [vmem:[#allocation49_spill] sm:$0xff] %v4818_v52  ;;  %v4824_v63 = vld [vmem:[#allocation7 + $0x70] sm:$0xff] }
 0x712   :  { %v4671_v11 = vadd.f32 %v1816_v19, %v1815_v60  ;;  %v1813_v49 = vmul.f32 0.5, %v2586_v21  ;;  %5600 = vst [vmem:[#allocation50_spill] sm:$0xff] %v4821_v55  ;;  %v4827_v60 = vld [vmem:[#allocation7 + $0x78] sm:$0xff]  ;;  %v4830_v19 = vld [vmem:[#allocation7 + $0x40] sm:$0xff]  ;;  %v4833_v21 = vld [vmem:[#allocation7 + $0x48] sm:$0xff] }
 0x713   :  { %5601 = vst [vmem:[#allocation51_spill] sm:$0xff] %v4824_v63 }
 0x714   :  { %2587 = vtanh.f32 %v4671_v11  ;;  %v1814_v7 = vadd.f32 0.5, %v1813_v49  ;;  %5602 = vst [vmem:[#allocation48_spill] sm:$0xff] %v4827_v60  ;;  %v4836_v49 = vld [vmem:[#allocation7 + $0x50] sm:$0xff] }
 0x715   :  { %5603 = vst [vmem:[#allocation47_spill] sm:$0xff] %v4830_v19 }
 0x716   :  { %5604 = vst [vmem:[#allocation52_spill] sm:$0xff] %v4833_v21 }
 0x717   :  { %5605 = vst [vmem:[#allocation53_spill] sm:$0xff] %v4836_v49 }
 0x71a   :  { %v2588_v2 = vpop.eup %2587 }
 0x71b   :  { %v1819_v54 = vmul.f32 %v2588_v2, %v1814_v7  ;;  %v4839_v7 = vld [vmem:[#allocation7 + $0x58] sm:$0xff]  ;;  %v4842_v2 = vld [vmem:[#allocation7 + $0x20] sm:$0xff] }
 0x71c   :  { %5606 = vst [vmem:[#allocation46_spill] sm:$0xff] %v4839_v7 }
 0x71d   :  { %1836 = vmatmul.f32.vlgmr.msrb.gmra.mxu0 %v1819_v54  ;;  %1856 = vmatmul.f32.vlgmr.msrb.gmra.mxu1 %v1819_v54  ;;  %5607 = vst [vmem:[#allocation57_spill] sm:$0xff] %v4842_v2 }
 0x71e   :  { %1876 = vmatmul.f32.vlgmr.msra.gmra.mxu2 %v1819_v54  ;;  %1896 = vmatmul.f32.vlgmr.msra.gmra.mxu3 %v1819_v54  ;;  %v4845_v54 = vld [vmem:[#allocation7 + $0x28] sm:$0xff] }
 0x71f   :  { %2024 = vmatpush.msrb.mxu0 %v4674_v38  ;;  %2044 = vmatpush.msrb.mxu1 %v4677_v25  ;;  %5608 = vst [vmem:[#allocation55_spill] sm:$0xff] %v4845_v54 }
 0x720   :  { %2064 = vmatpush.msra.mxu2 %v4680_v3  ;;  %2084 = vmatpush.msra.mxu3 %v4683_v59 }
 0x721   :  { %2025 = vmatpush.msrb.mxu0 %v4686_v0  ;;  %2045 = vmatpush.msrb.mxu1 %v4689_v1 }
 0x722   :  { %2065 = vmatpush.msra.mxu2 %v4692_v29  ;;  %2085 = vmatpush.msra.mxu3 %v4695_v18 }
 0x723   :  { %2026 = vmatpush.msrb.mxu0 %v4698_v5  ;;  %2046 = vmatpush.msrb.mxu1 %v4701_v28 }
 0x724   :  { %2066 = vmatpush.msra.mxu2 %v4704_v9  ;;  %2086 = vmatpush.msra.mxu3 %v4707_v24 }
 0x725   :  { %2027 = vmatpush.msrb.mxu0 %v4710_v35  ;;  %2047 = vmatpush.msrb.mxu1 %v4713_v23 }
 0x726   :  { %2067 = vmatpush.msra.mxu2 %v4716_v20  ;;  %2087 = vmatpush.msra.mxu3 %v4719_v34 }
 0x727   :  { %2028 = vmatpush.msrb.mxu0 %v4722_v15  ;;  %2048 = vmatpush.msrb.mxu1 %v4725_v32 }
 0x728   :  { %2068 = vmatpush.msra.mxu2 %v4728_v45  ;;  %2088 = vmatpush.msra.mxu3 %v4731_v31 }
 0x729   :  { %2029 = vmatpush.msrb.mxu0 %v4734_v58  ;;  %2049 = vmatpush.msrb.mxu1 %v4737_v61 }
 0x72a   :  { %2069 = vmatpush.msra.mxu2 %v4740_v62  ;;  %2089 = vmatpush.msra.mxu3 %v4743_v8 }
 0x72b   :  { %2030 = vmatpush.msrb.mxu0 %v4746_v12  ;;  %2050 = vmatpush.msrb.mxu1 %v4749_v16 }
 0x72c   :  { %2070 = vmatpush.msra.mxu2 %v4752_v17  ;;  %2090 = vmatpush.msra.mxu3 %v4755_v26 }
 0x72d   :  { %2031 = vmatpush.msrb.mxu0 %v4758_v30  ;;  %2051 = vmatpush.msrb.mxu1 %v4761_v36 }
 0x72e   :  { %2071 = vmatpush.msra.mxu2 %v4764_v37  ;;  %2091 = vmatpush.msra.mxu3 %v4767_v39 }
 0x72f   :  { %2032 = vmatpush.msrb.mxu0 %v4770_v27  ;;  %2052 = vmatpush.msrb.mxu1 %v4773_v40 }
 0x730   :  { %2072 = vmatpush.msra.mxu2 %v4776_v41  ;;  %2092 = vmatpush.msra.mxu3 %v4779_v42 }
 0x731   :  { %2033 = vmatpush.msrb.mxu0 %v4782_v43  ;;  %2053 = vmatpush.msrb.mxu1 %v4785_v44 }
 0x732   :  { %2073 = vmatpush.msra.mxu2 %v4788_v46  ;;  %2093 = vmatpush.msra.mxu3 %v4791_v47 }
 0x733   :  { %2034 = vmatpush.msrb.mxu0 %v4794_v48  ;;  %2054 = vmatpush.msrb.mxu1 %v4797_v50 }
 0x734   :  { %2074 = vmatpush.msra.mxu2 %v4800_v51  ;;  %2094 = vmatpush.msra.mxu3 %v4803_v53 }
 0x735   :  { %2035 = vmatpush.msrb.mxu0 %v4806_v33  ;;  %2055 = vmatpush.msrb.mxu1 %v4809_v4 }
 0x736   :  { %2075 = vmatpush.msra.mxu2 %v4812_v10  ;;  %2095 = vmatpush.msra.mxu3 %v4815_v57 }
 0x737   :  { %2036 = vmatpush.msrb.mxu0 %v4818_v52  ;;  %2056 = vmatpush.msrb.mxu1 %v4821_v55 }
 0x738   :  { %2076 = vmatpush.msra.mxu2 %v4824_v63  ;;  %2096 = vmatpush.msra.mxu3 %v4827_v60  ;;  %v5615_v60 = vld [vmem:[#allocation32_spill] sm:$0xff] }
 0x739   :  { %2037 = vmatpush.msrb.mxu0 %v4830_v19  ;;  %2057 = vmatpush.msrb.mxu1 %v4833_v21  ;;  %v4848_v19 = vld [vmem:[#allocation7 + $0x30] sm:$0xff]  ;;  %v4851_v21 = vld [vmem:[#allocation7 + $0x38] sm:$0xff] }
 0x73a   :  { %2077 = vmatpush.msra.mxu2 %v4836_v49  ;;  %2097 = vmatpush.msra.mxu3 %v4839_v7  ;;  %5609 = vst [vmem:[#allocation54_spill] sm:$0xff] %v4848_v19  ;;  %v4854_v49 = vld [vmem:[#allocation7] sm:$0xff]  ;;  %v4857_v7 = vld [vmem:[#allocation7 + $0x8] sm:$0xff] }
 0x73b   :  { %2038 = vmatpush.msrb.mxu0 %v4842_v2  ;;  %2058 = vmatpush.msrb.mxu1 %v4845_v54  ;;  %5610 = vst [vmem:[#allocation56_spill] sm:$0xff] %v4851_v21  ;;  %v4860_v2 = vld [vmem:[#allocation7 + $0x10] sm:$0xff] }
 0x73c   :  { %2078 = vmatpush.msra.mxu2 %v4848_v19  ;;  %2098 = vmatpush.msra.mxu3 %v4851_v21  ;;  %5611 = vst [vmem:[#allocation16_spill] sm:$0xff] %v4854_v49  ;;  %v5614_v19 = vld [vmem:[#allocation31_spill] sm:$0xff]  ;;  %v1418_v21 = vadd.f32 %v5615_v60, %v5589_v22 }
 0x73d   :  { %2039 = vmatpush.msrb.mxu0 %v4854_v49  ;;  %5612 = vst [vmem:[#allocation17_spill] sm:$0xff] %v4857_v7  ;;  %2059 = vmatpush.msrb.mxu1 %v4857_v7  ;;  %v1377_v54 = vadd.f32 %v5614_v19, %v5587_v14  ;;  %v5616_v7 = vld [vmem:[#allocation35_spill] sm:$0xff] }
 0x73e   :  { %5613 = vst [vmem:[#allocation29_spill] sm:$0xff] %v4860_v2  ;;  %2079 = vmatpush.msra.mxu2 %v4860_v2  ;;  %2099 = vmatpush.msra.mxu3 %v5586_v13  ;;  %v1459_v4 = vadd.f32 %v5616_v7, %v5562_v6  ;;  %v5617_v2 = vld [vmem:[#allocation37_spill] sm:$0xff] }
 0x73f   :  { %v1500_v33 = vadd.f32 %v5617_v2, %v4515_v56 }
 0x79a   :  { %v1837_v63 = vpop.f32.mrf.mxu0  ;;  %v1857_v55 = vpop.f32.mrf.mxu1 }
 0x79b   :  { %v1900_v52 = vadd.f32 %v1837_v63, %v1377_v54  ;;  %v1901_v49 = vadd.f32 %v1857_v55, %v1418_v21 }
 0x79d   :  { %v1904_v57 = vmul.f32 0.5, %v1900_v52  ;;  %v1908_v10 = vmul.f32 0.5, %v1901_v49 }
 0x79f   :  { %2589 = vtanh.f32 %v1904_v57 }
 0x7a0   :  { %2591 = vtanh.f32 %v1908_v10  ;;  %v5621_v10 = vld [vmem:[#allocation34_spill] sm:$0xff] }
 0x7a1   :  { %v1877_v13 = vpop.f32.mrf.mxu2  ;;  %v1897_v53 = vpop.f32.mrf.mxu3 }
 0x7a2   :  { %v1902_v19 = vadd.f32 %v1877_v13, %v1459_v4  ;;  %v1903_v14 = vadd.f32 %v1897_v53, %v1500_v33  ;;  %v5622_v13 = vld [vmem:[#allocation27_spill] sm:$0xff] }
 0x7a4   :  { %2593 = vtanh.f32 %v1902_v19  ;;  %v1913_v60 = vmul.f32 0.5, %v1903_v14  ;;  %v5623_v19 = vld [vmem:[#allocation44_spill] sm:$0xff] }
 0x7a5   :  { %v2590_v22 = vpop.eup %2589 }
 0x7a6   :  { %v2592_v51 = vpop.eup %2591  ;;  %v1906_v63 = vmul.f32 0.5, %v2590_v22  ;;  %2595 = vtanh.f32 %v1913_v60  ;;  %v5618_v22 = vld [vmem:[#allocation28_spill] sm:$0xff]  ;;  %v5624_v60 = vld [vmem:[#allocation49_spill] sm:$0xff] }
 0x7a7   :  { %v1910_v55 = vmul.f32 0.5, %v2592_v51  ;;  %v5620_v51 = vld [vmem:[#allocation67_spill] sm:$0xff] }
 0x7a8   :  { %v1907_v52 = vadd.f32 0.5, %v1906_v63  ;;  %v5625_v63 = vld [vmem:[#allocation50_spill] sm:$0xff] }
 0x7a9   :  { %v1911_v57 = vadd.f32 0.5, %v1910_v55  ;;  %v5626_v55 = vld [vmem:[#allocation51_spill] sm:$0xff] }
 0x7aa   :  { %v2594_v21 = vpop.eup %2593 }
 0x7ab   :  { %v1917_v49 = vmul.f32 %v1911_v57, %v4671_v11  ;;  %v1918_v7 = vmul.f32 %v2594_v21, %v1907_v52  ;;  %v5619_v11 = vld [vmem:[#allocation19_spill] sm:$0xff]  ;;  %v5627_v52 = vld [vmem:[#allocation48_spill] sm:$0xff] }
 0x7ac   :  { %v2596_v54 = vpop.eup %2595  ;;  %v5628_v57 = vld [vmem:[#allocation47_spill] sm:$0xff]  ;;  %v5629_v21 = vld [vmem:[#allocation52_spill] sm:$0xff] }
 0x7ad   :  { %v4873_v2 = vadd.f32 %v1918_v7, %v1917_v49  ;;  %v1915_v4 = vmul.f32 0.5, %v2596_v54  ;;  %v5630_v49 = vld [vmem:[#allocation53_spill] sm:$0xff]  ;;  %v5631_v7 = vld [vmem:[#allocation46_spill] sm:$0xff] }
 0x7ae   :  { %v5632_v54 = vld [vmem:[#allocation57_spill] sm:$0xff] }
 0x7af   :  { %2597 = vtanh.f32 %v4873_v2  ;;  %v1916_v53 = vadd.f32 0.5, %v1915_v4  ;;  %v5633_v4 = vld [vmem:[#allocation55_spill] sm:$0xff] }
 0x7b5   :  { %v2598_v33 = vpop.eup %2597 }
 0x7b6   :  { %v1921_v14 = vmul.f32 %v2598_v33, %v1916_v53  ;;  %v5634_v53 = vld [vmem:[#allocation54_spill] sm:$0xff]  ;;  %v5635_v33 = vld [vmem:[#allocation56_spill] sm:$0xff] }
 0x7b8   :  { %1938 = vmatmul.f32.vlgmr.msra.gmra.mxu0 %v1921_v14  ;;  %1958 = vmatmul.f32.vlgmr.msra.gmra.mxu1 %v1921_v14 }
 0x7b9   :  { %1978 = vmatmul.f32.vlgmr.msrb.gmra.mxu2 %v1921_v14  ;;  %1998 = vmatmul.f32.vlgmr.msrb.gmra.mxu3 %v1921_v14  ;;  %v5636_v14 = vld [vmem:[#allocation16_spill] sm:$0xff] }
 0x7ba   :  { %2126 = vmatpush.msra.mxu0 %v4674_v38  ;;  %2146 = vmatpush.msra.mxu1 %v4677_v25 }
 0x7bb   :  { %2166 = vmatpush.msrb.mxu2 %v4680_v3  ;;  %2186 = vmatpush.msrb.mxu3 %v4683_v59 }
 0x7bc   :  { %2127 = vmatpush.msra.mxu0 %v4686_v0  ;;  %2147 = vmatpush.msra.mxu1 %v4689_v1 }
 0x7bd   :  { %2167 = vmatpush.msrb.mxu2 %v4692_v29  ;;  %2187 = vmatpush.msrb.mxu3 %v4695_v18 }
 0x7be   :  { %2128 = vmatpush.msra.mxu0 %v4698_v5  ;;  %2148 = vmatpush.msra.mxu1 %v4701_v28 }
 0x7bf   :  { %2168 = vmatpush.msrb.mxu2 %v4704_v9  ;;  %2188 = vmatpush.msrb.mxu3 %v4707_v24 }
 0x7c0   :  { %2129 = vmatpush.msra.mxu0 %v4710_v35  ;;  %2149 = vmatpush.msra.mxu1 %v4713_v23 }
 0x7c1   :  { %2169 = vmatpush.msrb.mxu2 %v4716_v20  ;;  %2189 = vmatpush.msrb.mxu3 %v4719_v34 }
 0x7c2   :  { %2130 = vmatpush.msra.mxu0 %v4722_v15  ;;  %2150 = vmatpush.msra.mxu1 %v4725_v32 }
 0x7c3   :  { %2170 = vmatpush.msrb.mxu2 %v4728_v45  ;;  %2190 = vmatpush.msrb.mxu3 %v4731_v31 }
 0x7c4   :  { %2131 = vmatpush.msra.mxu0 %v4734_v58  ;;  %2151 = vmatpush.msra.mxu1 %v4737_v61 }
 0x7c5   :  { %2171 = vmatpush.msrb.mxu2 %v4740_v62  ;;  %2191 = vmatpush.msrb.mxu3 %v4743_v8 }
 0x7c6   :  { %2132 = vmatpush.msra.mxu0 %v4746_v12  ;;  %2152 = vmatpush.msra.mxu1 %v4749_v16 }
 0x7c7   :  { %2172 = vmatpush.msrb.mxu2 %v4752_v17  ;;  %2192 = vmatpush.msrb.mxu3 %v4755_v26 }
 0x7c8   :  { %2133 = vmatpush.msra.mxu0 %v4758_v30  ;;  %2153 = vmatpush.msra.mxu1 %v4761_v36 }
 0x7c9   :  { %2173 = vmatpush.msrb.mxu2 %v4764_v37  ;;  %2193 = vmatpush.msrb.mxu3 %v4767_v39 }
 0x7ca   :  { %2134 = vmatpush.msra.mxu0 %v4770_v27  ;;  %2154 = vmatpush.msra.mxu1 %v4773_v40 }
 0x7cb   :  { %2174 = vmatpush.msrb.mxu2 %v4776_v41  ;;  %2194 = vmatpush.msrb.mxu3 %v4779_v42 }
 0x7cc   :  { %2135 = vmatpush.msra.mxu0 %v4782_v43  ;;  %2155 = vmatpush.msra.mxu1 %v4785_v44 }
 0x7cd   :  { %2175 = vmatpush.msrb.mxu2 %v4788_v46  ;;  %2195 = vmatpush.msrb.mxu3 %v4791_v47 }
 0x7ce   :  { %2136 = vmatpush.msra.mxu0 %v4794_v48  ;;  %2156 = vmatpush.msra.mxu1 %v4797_v50 }
 0x7cf   :  { %2176 = vmatpush.msrb.mxu2 %v5618_v22  ;;  %2196 = vmatpush.msrb.mxu3 %v5619_v11 }
 0x7d0   :  { %2137 = vmatpush.msra.mxu0 %v5620_v51  ;;  %2157 = vmatpush.msra.mxu1 %v5621_v10  ;;  %v5645_v10 = vld [vmem:[#allocation62_spill] sm:$0xff] }
 0x7d1   :  { %2177 = vmatpush.msrb.mxu2 %v5622_v13  ;;  %2197 = vmatpush.msrb.mxu3 %v5623_v19  ;;  %v1503_v51 = vadd.f32 %v5645_v10, %v4515_v56 }
 0x7d2   :  { %2138 = vmatpush.msra.mxu0 %v5624_v60  ;;  %2158 = vmatpush.msra.mxu1 %v5625_v63  ;;  %v5643_v63 = vld [vmem:[#allocation63_spill] sm:$0xff] }
 0x7d3   :  { %2178 = vmatpush.msrb.mxu2 %v5626_v55  ;;  %2198 = vmatpush.msrb.mxu3 %v5627_v52  ;;  %v5637_v55 = vld [vmem:[#allocation17_spill] sm:$0xff] }
 0x7d4   :  { %2139 = vmatpush.msra.mxu0 %v5628_v57  ;;  %2159 = vmatpush.msra.mxu1 %v5629_v21  ;;  %v5638_v52 = vld [vmem:[#allocation29_spill] sm:$0xff]  ;;  %v4939_v57 = vld [vmem:[#allocation7 + $0x18] sm:$0xff] }
 0x7d5   :  { %2179 = vmatpush.msrb.mxu2 %v5630_v49  ;;  %2199 = vmatpush.msrb.mxu3 %v5631_v7  ;;  %5639 = vst [vmem:[#allocation21_spill] sm:$0xff] %v4939_v57  ;;  %v5640_v49 = vld [vmem:[#allocation24_spill] sm:$0xff]  ;;  %v5641_v7 = vld [vmem:[#allocation45_spill] sm:$0xff] }
 0x7d6   :  { %2140 = vmatpush.msra.mxu0 %v5632_v54  ;;  %2160 = vmatpush.msra.mxu1 %v5633_v4  ;;  %v1380_v21 = vadd.f32 %v5641_v7, %v5640_v49  ;;  %v5642_v54 = vld [vmem:[#allocation40_spill] sm:$0xff] }
 0x7d7   :  { %2180 = vmatpush.msrb.mxu2 %v5634_v53  ;;  %2200 = vmatpush.msrb.mxu3 %v5635_v33  ;;  %v1421_v4 = vadd.f32 %v5643_v63, %v5642_v54 }
 0x7d8   :  { %2141 = vmatpush.msra.mxu0 %v5636_v14  ;;  %2161 = vmatpush.msra.mxu1 %v5637_v55  ;;  %v5644_v55 = vld [vmem:[#allocation59_spill] sm:$0xff] }
 0x7d9   :  { %2181 = vmatpush.msrb.mxu2 %v5638_v52  ;;  %2201 = vmatpush.msrb.mxu3 %v4939_v57  ;;  %v1462_v52 = vadd.f32 %v5644_v55, %v5562_v6 }
 0x835   :  { %v1939_v60 = vpop.f32.mrf.mxu0  ;;  %v1959_v53 = vpop.f32.mrf.mxu1 }
 0x836   :  { %v2002_v19 = vadd.f32 %v1939_v60, %v1380_v21  ;;  %v2003_v33 = vadd.f32 %v1959_v53, %v1421_v4 }
 0x838   :  { %v2006_v13 = vmul.f32 0.5, %v2002_v19  ;;  %v2010_v14 = vmul.f32 0.5, %v2003_v33 }
 0x83a   :  { %2599 = vtanh.f32 %v2006_v13 }
 0x83b   :  { %2601 = vtanh.f32 %v2010_v14 }
 0x83c   :  { %v1979_v57 = vpop.f32.mrf.mxu2  ;;  %v1999_v11 = vpop.f32.mrf.mxu3 }
 0x83d   :  { %v2004_v7 = vadd.f32 %v1979_v57, %v1462_v52  ;;  %v2005_v49 = vadd.f32 %v1999_v11, %v1503_v51 }
 0x83f   :  { %2603 = vtanh.f32 %v2004_v7  ;;  %v2015_v63 = vmul.f32 0.5, %v2005_v49 }
 0x840   :  { %v2600_v54 = vpop.eup %2599 }
 0x841   :  { %v2602_v22 = vpop.eup %2601  ;;  %v2008_v60 = vmul.f32 0.5, %v2600_v54  ;;  %2605 = vtanh.f32 %v2015_v63 }
 0x842   :  { %v2012_v21 = vmul.f32 0.5, %v2602_v22 }
 0x843   :  { %v2009_v19 = vadd.f32 0.5, %v2008_v60 }
 0x844   :  { %v2013_v13 = vadd.f32 0.5, %v2012_v21 }
 0x845   :  { %v2604_v4 = vpop.eup %2603 }
 0x846   :  { %v2019_v55 = vmul.f32 %v2013_v13, %v4873_v2  ;;  %v2020_v53 = vmul.f32 %v2604_v4, %v2009_v19 }
 0x847   :  { %v2606_v33 = vpop.eup %2605 }
 0x848   :  { %v4951_v10 = vadd.f32 %v2020_v53, %v2019_v55  ;;  %v2017_v52 = vmul.f32 0.5, %v2606_v33 }
 0x84a   :  { %2607 = vtanh.f32 %v4951_v10  ;;  %v2018_v11 = vadd.f32 0.5, %v2017_v52 }
 0x850   :  { %v2608_v51 = vpop.eup %2607 }
 0x851   :  { %v2023_v57 = vmul.f32 %v2608_v51, %v2018_v11  ;;  %v5674_v11 = vld [vmem:[#allocation39_spill] sm:$0xff] }
 0x853   :  { %2040 = vmatmul.f32.vlgmr.msrb.gmra.mxu0 %v2023_v57  ;;  %2060 = vmatmul.f32.vlgmr.msrb.gmra.mxu1 %v2023_v57 }
 0x854   :  { %2080 = vmatmul.f32.vlgmr.msra.gmra.mxu2 %v2023_v57  ;;  %2100 = vmatmul.f32.vlgmr.msra.gmra.mxu3 %v2023_v57  ;;  %v5675_v57 = vld [vmem:[#allocation64_spill] sm:$0xff] }
 0x855   :  { %2228 = vmatpush.msrb.mxu0 %v4674_v38  ;;  %2248 = vmatpush.msrb.mxu1 %v4677_v25  ;;  %v5646_v38 = vld [vmem:[#allocation28_spill] sm:$0xff]  ;;  %v5647_v25 = vld [vmem:[#allocation19_spill] sm:$0xff] }
 0x856   :  { %2268 = vmatpush.msra.mxu2 %v4680_v3  ;;  %2288 = vmatpush.msra.mxu3 %v4683_v59  ;;  %v5648_v3 = vld [vmem:[#allocation67_spill] sm:$0xff]  ;;  %v5649_v59 = vld [vmem:[#allocation34_spill] sm:$0xff] }
 0x857   :  { %2229 = vmatpush.msrb.mxu0 %v4686_v0  ;;  %2249 = vmatpush.msrb.mxu1 %v4689_v1  ;;  %v5650_v0 = vld [vmem:[#allocation27_spill] sm:$0xff]  ;;  %v5651_v1 = vld [vmem:[#allocation44_spill] sm:$0xff] }
 0x858   :  { %2269 = vmatpush.msra.mxu2 %v4692_v29  ;;  %2289 = vmatpush.msra.mxu3 %v4695_v18  ;;  %v5652_v29 = vld [vmem:[#allocation49_spill] sm:$0xff]  ;;  %v5653_v18 = vld [vmem:[#allocation50_spill] sm:$0xff] }
 0x859   :  { %2230 = vmatpush.msrb.mxu0 %v4698_v5  ;;  %2250 = vmatpush.msrb.mxu1 %v4701_v28  ;;  %v5654_v5 = vld [vmem:[#allocation51_spill] sm:$0xff]  ;;  %v5655_v28 = vld [vmem:[#allocation48_spill] sm:$0xff] }
 0x85a   :  { %2270 = vmatpush.msra.mxu2 %v4704_v9  ;;  %2290 = vmatpush.msra.mxu3 %v4707_v24  ;;  %v5656_v9 = vld [vmem:[#allocation47_spill] sm:$0xff]  ;;  %v5657_v24 = vld [vmem:[#allocation52_spill] sm:$0xff] }
 0x85b   :  { %2231 = vmatpush.msrb.mxu0 %v4710_v35  ;;  %2251 = vmatpush.msrb.mxu1 %v4713_v23  ;;  %v5658_v35 = vld [vmem:[#allocation53_spill] sm:$0xff]  ;;  %v5659_v23 = vld [vmem:[#allocation46_spill] sm:$0xff] }
 0x85c   :  { %2271 = vmatpush.msra.mxu2 %v4716_v20  ;;  %2291 = vmatpush.msra.mxu3 %v4719_v34  ;;  %v5660_v20 = vld [vmem:[#allocation57_spill] sm:$0xff]  ;;  %v5661_v34 = vld [vmem:[#allocation55_spill] sm:$0xff] }
 0x85d   :  { %2232 = vmatpush.msrb.mxu0 %v4722_v15  ;;  %2252 = vmatpush.msrb.mxu1 %v4725_v32  ;;  %v5662_v15 = vld [vmem:[#allocation54_spill] sm:$0xff]  ;;  %v5663_v32 = vld [vmem:[#allocation56_spill] sm:$0xff] }
 0x85e   :  { %2272 = vmatpush.msra.mxu2 %v4728_v45  ;;  %2292 = vmatpush.msra.mxu3 %v4731_v31  ;;  %v5664_v45 = vld [vmem:[#allocation16_spill] sm:$0xff]  ;;  %v5665_v31 = vld [vmem:[#allocation17_spill] sm:$0xff] }
 0x85f   :  { %2233 = vmatpush.msrb.mxu0 %v4734_v58  ;;  %2253 = vmatpush.msrb.mxu1 %v4737_v61  ;;  %v5666_v58 = vld [vmem:[#allocation29_spill] sm:$0xff] }
 0x860   :  { %2273 = vmatpush.msra.mxu2 %v4740_v62  ;;  %2293 = vmatpush.msra.mxu3 %v4743_v8  ;;  %v5667_v61 = vld [vmem:[#allocation21_spill] sm:$0xff]  ;;  %v5668_v62 = vld [vmem:[#allocation24_spill] sm:$0xff]  ;;  %v5669_v8 = vld [vmem:[#allocation58_spill] sm:$0xff] }
 0x861   :  { %2234 = vmatpush.msrb.mxu0 %v4746_v12  ;;  %2254 = vmatpush.msrb.mxu1 %v4749_v16  ;;  %v1383_v12 = vadd.f32 %v5669_v8, %v5668_v62  ;;  %v5670_v16 = vld [vmem:[#allocation40_spill] sm:$0xff]  ;;  %v1386_v51 = vadd.f32 %v5674_v11, %v5668_v62 }
 0x862   :  { %2274 = vmatpush.msra.mxu2 %v4752_v17  ;;  %2294 = vmatpush.msra.mxu3 %v4755_v26  ;;  %v5671_v17 = vld [vmem:[#allocation60_spill] sm:$0xff] }
 0x863   :  { %2235 = vmatpush.msrb.mxu0 %v4758_v30  ;;  %2255 = vmatpush.msrb.mxu1 %v4761_v36  ;;  %v1424_v26 = vadd.f32 %v5671_v17, %v5670_v16 }
 0x864   :  { %2275 = vmatpush.msra.mxu2 %v4764_v37  ;;  %2295 = vmatpush.msra.mxu3 %v4767_v39 }
 0x865   :  { %2236 = vmatpush.msrb.mxu0 %v4770_v27  ;;  %2256 = vmatpush.msrb.mxu1 %v4773_v40 }
 0x866   :  { %2276 = vmatpush.msra.mxu2 %v4776_v41  ;;  %2296 = vmatpush.msra.mxu3 %v4779_v42  ;;  %v5672_v41 = vld [vmem:[#allocation61_spill] sm:$0xff] }
 0x867   :  { %2237 = vmatpush.msrb.mxu0 %v4782_v43  ;;  %2257 = vmatpush.msrb.mxu1 %v4785_v44  ;;  %v1465_v42 = vadd.f32 %v5672_v41, %v5562_v6  ;;  %v5673_v43 = vld [vmem:[#allocation38_spill] sm:$0xff]  ;;  %v2343_v41 = vld [vmem:[#allocation8 + $0x68] sm:$0xff] }
 0x868   :  { %2277 = vmatpush.msra.mxu2 %v4788_v46  ;;  %2297 = vmatpush.msra.mxu3 %v4791_v47  ;;  %v1506_v44 = vadd.f32 %v5673_v43, %v4515_v56  ;;  %v2341_v43 = vld [vmem:[#allocation8 + $0x58] sm:$0xff] }
 0x869   :  { %2238 = vmatpush.msrb.mxu0 %v4794_v48  ;;  %2258 = vmatpush.msrb.mxu1 %v4797_v50 }
 0x86a   :  { %2278 = vmatpush.msra.mxu2 %v5646_v38  ;;  %2298 = vmatpush.msra.mxu3 %v5647_v25  ;;  %v1427_v38 = vadd.f32 %v5675_v57, %v5670_v16  ;;  %v2345_v25 = vld [vmem:[#allocation8 + $0x78] sm:$0xff] }
 0x86b   :  { %2239 = vmatpush.msrb.mxu0 %v5648_v3  ;;  %2259 = vmatpush.msrb.mxu1 %v5649_v59 }
 0x86c   :  { %2279 = vmatpush.msra.mxu2 %v5650_v0  ;;  %2299 = vmatpush.msra.mxu3 %v5651_v1 }
 0x86d   :  { %2240 = vmatpush.msrb.mxu0 %v5652_v29  ;;  %2260 = vmatpush.msrb.mxu1 %v5653_v18  ;;  %v5676_v18 = vld [vmem:[#allocation65_spill] sm:$0xff] }
 0x86e   :  { %2280 = vmatpush.msra.mxu2 %v5654_v5  ;;  %2300 = vmatpush.msra.mxu3 %v5655_v28  ;;  %v1468_v5 = vadd.f32 %v5676_v18, %v5562_v6  ;;  %v5677_v28 = vld [vmem:[#allocation68_spill] sm:$0xff] }
 0x86f   :  { %2241 = vmatpush.msrb.mxu0 %v5656_v9  ;;  %2261 = vmatpush.msrb.mxu1 %v5657_v24  ;;  %v1509_v9 = vadd.f32 %v5677_v28, %v4515_v56 }
 0x870   :  { %2281 = vmatpush.msra.mxu2 %v5658_v35  ;;  %2301 = vmatpush.msra.mxu3 %v5659_v23 }
 0x871   :  { %2242 = vmatpush.msrb.mxu0 %v5660_v20  ;;  %2262 = vmatpush.msrb.mxu1 %v5661_v34 }
 0x872   :  { %2282 = vmatpush.msra.mxu2 %v5662_v15  ;;  %2302 = vmatpush.msra.mxu3 %v5663_v32 }
 0x873   :  { %2243 = vmatpush.msrb.mxu0 %v5664_v45  ;;  %2263 = vmatpush.msrb.mxu1 %v5665_v31 }
 0x874   :  { %2283 = vmatpush.msra.mxu2 %v5666_v58  ;;  %2303 = vmatpush.msra.mxu3 %v5667_v61 }
 0x8d0   :  { %v2041_v30 = vpop.f32.mrf.mxu0  ;;  %v2061_v36 = vpop.f32.mrf.mxu1 }
 0x8d1   :  { %v2104_v37 = vadd.f32 %v2041_v30, %v1383_v12  ;;  %v2105_v39 = vadd.f32 %v2061_v36, %v1424_v26 }
 0x8d3   :  { %v2108_v27 = vmul.f32 0.5, %v2104_v37  ;;  %v2112_v40 = vmul.f32 0.5, %v2105_v39 }
 0x8d5   :  { %2609 = vtanh.f32 %v2108_v27 }
 0x8d6   :  { %2611 = vtanh.f32 %v2112_v40  ;;  %v2344_v40 = vld [vmem:[#allocation8 + $0x70] sm:$0xff] }
 0x8d7   :  { %v2081_v46 = vpop.f32.mrf.mxu2  ;;  %v2101_v47 = vpop.f32.mrf.mxu3 }
 0x8d8   :  { %v2106_v48 = vadd.f32 %v2081_v46, %v1465_v42  ;;  %v2107_v50 = vadd.f32 %v2101_v47, %v1506_v44  ;;  %v2342_v42 = vld [vmem:[#allocation8 + $0x60] sm:$0xff]  ;;  %v2340_v44 = vld [vmem:[#allocation8 + $0x50] sm:$0xff]  ;;  %v2339_v46 = vld [vmem:[#allocation8 + $0x48] sm:$0xff] }
 0x8d9   :  { %v2338_v47 = vld [vmem:[#allocation8 + $0x40] sm:$0xff] }
 0x8da   :  { %2613 = vtanh.f32 %v2106_v48  ;;  %v2117_v2 = vmul.f32 0.5, %v2107_v50  ;;  %v2337_v48 = vld [vmem:[#allocation8 + $0x38] sm:$0xff]  ;;  %v2336_v50 = vld [vmem:[#allocation8 + $0x30] sm:$0xff] }
 0x8db   :  { %v2610_v22 = vpop.eup %2609 }
 0x8dc   :  { %v2612_v49 = vpop.eup %2611  ;;  %v2110_v54 = vmul.f32 0.5, %v2610_v22  ;;  %2615 = vtanh.f32 %v2117_v2  ;;  %v2335_v2 = vld [vmem:[#allocation8 + $0x28] sm:$0xff]  ;;  %v2334_v22 = vld [vmem:[#allocation8 + $0x20] sm:$0xff] }
 0x8dd   :  { %v2114_v14 = vmul.f32 0.5, %v2612_v49  ;;  %v2333_v49 = vld [vmem:[#allocation8 + $0x18] sm:$0xff] }
 0x8de   :  { %v2111_v7 = vadd.f32 0.5, %v2110_v54  ;;  %v2332_v54 = vld [vmem:[#allocation8 + $0x10] sm:$0xff] }
 0x8df   :  { %v2115_v63 = vadd.f32 0.5, %v2114_v14  ;;  %v2331_v14 = vld [vmem:[#allocation8 + $0x8] sm:$0xff] }
 0x8e0   :  { %v2614_v60 = vpop.eup %2613 }
 0x8e1   :  { %v2121_v21 = vmul.f32 %v2115_v63, %v4951_v10  ;;  %v2122_v19 = vmul.f32 %v2614_v60, %v2111_v7  ;;  %v2330_v7 = vld [vmem:[#allocation8] sm:$0xff]  ;;  %v2362_v63 = vld [vmem:[#allocation10 + $0x78] sm:$0xff]  ;;  %v2361_v60 = vld [vmem:[#allocation10 + $0x70] sm:$0xff] }
 0x8e2   :  { %v2616_v13 = vpop.eup %2615 }
 0x8e3   :  { %v2123_v4 = vadd.f32 %v2122_v19, %v2121_v21  ;;  %v2119_v55 = vmul.f32 0.5, %v2616_v13  ;;  %v5678_v21 = vld [vmem:[#allocation43_spill] sm:$0xff]  ;;  %v5679_v13 = vld [vmem:[#allocation42_spill] sm:$0xff] }
 0x8e4   :  { %v1389_v19 = vadd.f32 %v5678_v21, %v5668_v62 }
 0x8e5   :  { %2617 = vtanh.f32 %v2123_v4  ;;  %v2120_v53 = vadd.f32 0.5, %v2119_v55 }
 0x8eb   :  { %v2618_v33 = vpop.eup %2617 }
 0x8ec   :  { %v2125_v52 = vmul.f32 %v2618_v33, %v2120_v53  ;;  %v2360_v33 = vld [vmem:[#allocation10 + $0x68] sm:$0xff] }
 0x8ee   :  { %2142 = vmatmul.f32.vlgmr.msra.gmra.mxu0 %v2125_v52  ;;  %2162 = vmatmul.f32.vlgmr.msra.gmra.mxu1 %v2125_v52 }
 0x8ef   :  { %2182 = vmatmul.f32.vlgmr.msrb.gmra.mxu2 %v2125_v52  ;;  %2202 = vmatmul.f32.vlgmr.msrb.gmra.mxu3 %v2125_v52 }
 0x8f0   :  { %2367 = vmatpush.msra.mxu0 %v2345_v25  ;;  %2390 = vmatpush.msra.mxu1 %v2362_v63  ;;  %v2358_v25 = vld [vmem:[#allocation10 + $0x58] sm:$0xff] }
 0x8f2   :  { %2368 = vmatpush.msra.mxu0 %v2344_v40  ;;  %2391 = vmatpush.msra.mxu1 %v2361_v60  ;;  %v2348_v40 = vld [vmem:[#allocation10 + $0x8] sm:$0xff] }
 0x8f4   :  { %2369 = vmatpush.msra.mxu0 %v2343_v41  ;;  %2392 = vmatpush.msra.mxu1 %v2360_v33  ;;  %v2477_v41 = vld [vmem:[%s5064_s8] ss:$0 sm:$0xff] }
 0x8f6   :  { %2370 = vmatpush.msra.mxu0 %v2342_v42 }
 0x8f8   :  { %2371 = vmatpush.msra.mxu0 %v2341_v43 }
 0x8fa   :  { %2372 = vmatpush.msra.mxu0 %v2340_v44  ;;  %v2478_v44 = vld [vmem:[%s5066_s10] ss:$0 sm:$0xff] }
 0x8fc   :  { %2373 = vmatpush.msra.mxu0 %v2339_v46 }
 0x8fe   :  { %2374 = vmatpush.msra.mxu0 %v2338_v47 }
 0x900   :  { %2375 = vmatpush.msra.mxu0 %v2337_v48 }
 0x902   :  { %2376 = vmatpush.msra.mxu0 %v2336_v50 }
 0x904   :  { %2377 = vmatpush.msra.mxu0 %v2335_v2 }
 0x906   :  { %2378 = vmatpush.msra.mxu0 %v2334_v22 }
 0x908   :  { %2379 = vmatpush.msra.mxu0 %v2333_v49 }
 0x90a   :  { %2380 = vmatpush.msra.mxu0 %v2332_v54 }
 0x90c   :  { %2381 = vmatpush.msra.mxu0 %v2331_v14 }
 0x90e   :  { %2382 = vmatpush.msra.mxu0 %v2330_v7 }
 0x96b   :  { %v2143_v10 = vpop.f32.mrf.mxu0  ;;  %v2163_v3 = vpop.f32.mrf.mxu1 }
 0x96c   :  { %v2206_v59 = vadd.f32 %v2143_v10, %v1386_v51  ;;  %v2207_v0 = vadd.f32 %v2163_v3, %v1427_v38  ;;  %v2359_v51 = vld [vmem:[#allocation10 + $0x60] sm:$0xff]  ;;  %v5680_v10 = vld [vmem:[#allocation41_spill] sm:$0xff]  ;;  %v5681_v3 = vld [vmem:[#allocation66_spill] sm:$0xff] }
 0x96d   :  { %2393 = vmatpush.msra.mxu1 %v2359_v51  ;;  %v1471_v62 = vadd.f32 %v5680_v10, %v5562_v6  ;;  %v2354_v6 = vld [vmem:[#allocation10 + $0x38] sm:$0xff] }
 0x96e   :  { %v2210_v1 = vmul.f32 0.5, %v2206_v59  ;;  %v2214_v29 = vmul.f32 0.5, %v2207_v0  ;;  %v2357_v59 = vld [vmem:[#allocation10 + $0x50] sm:$0xff] }
 0x96f   :  { %2394 = vmatpush.msra.mxu1 %v2358_v25 }
 0x970   :  { %2619 = vtanh.f32 %v2210_v1 }
 0x971   :  { %2621 = vtanh.f32 %v2214_v29  ;;  %2395 = vmatpush.msra.mxu1 %v2357_v59 }
 0x972   :  { %v2183_v24 = vpop.f32.mrf.mxu2  ;;  %v2203_v35 = vpop.f32.mrf.mxu3 }
 0x973   :  { %v2208_v23 = vadd.f32 %v2183_v24, %v1468_v5  ;;  %v2209_v20 = vadd.f32 %v2203_v35, %v1509_v9  ;;  %v2356_v5 = vld [vmem:[#allocation10 + $0x48] sm:$0xff]  ;;  %v2355_v9 = vld [vmem:[#allocation10 + $0x40] sm:$0xff] }
 0x974   :  { %2396 = vmatpush.msra.mxu1 %v2356_v5 }
 0x975   :  { %2623 = vtanh.f32 %v2208_v23  ;;  %v2219_v34 = vmul.f32 0.5, %v2209_v20 }
 0x976   :  { %v2620_v15 = vpop.eup %2619  ;;  %2397 = vmatpush.msra.mxu1 %v2355_v9 }
 0x977   :  { %v2622_v32 = vpop.eup %2621  ;;  %v2212_v45 = vmul.f32 0.5, %v2620_v15  ;;  %2625 = vtanh.f32 %v2219_v34  ;;  %v2353_v34 = vld [vmem:[#allocation10 + $0x30] sm:$0xff] }
 0x978   :  { %v2216_v31 = vmul.f32 0.5, %v2622_v32  ;;  %2398 = vmatpush.msra.mxu1 %v2354_v6 }
 0x979   :  { %v2213_v58 = vadd.f32 0.5, %v2212_v45  ;;  %v2352_v45 = vld [vmem:[#allocation10 + $0x28] sm:$0xff] }
 0x97a   :  { %v2217_v61 = vadd.f32 0.5, %v2216_v31  ;;  %2399 = vmatpush.msra.mxu1 %v2353_v34 }
 0x97b   :  { %v2624_v8 = vpop.eup %2623 }
 0x97c   :  { %v2223_v12 = vmul.f32 %v2217_v61, %v2123_v4  ;;  %v2224_v17 = vmul.f32 %v2624_v8, %v2213_v58  ;;  %v1430_v4 = vadd.f32 %v5679_v13, %v5670_v16  ;;  %v1512_v16 = vadd.f32 %v5681_v3, %v4515_v56  ;;  %v2351_v61 = vld [vmem:[#allocation10 + $0x20] sm:$0xff]  ;;  %2400 = vmatpush.msra.mxu1 %v2352_v45 }
 0x97d   :  { %v2626_v26 = vpop.eup %2625 }
 0x97e   :  { %v5035_v30 = vadd.f32 %v2224_v17, %v2223_v12  ;;  %v2221_v36 = vmul.f32 0.5, %v2626_v26  ;;  %v2350_v17 = vld [vmem:[#allocation10 + $0x18] sm:$0xff]  ;;  %2401 = vmatpush.msra.mxu1 %v2351_v61 }
 0x980   :  { %2627 = vtanh.f32 %v5035_v30  ;;  %v2222_v37 = vadd.f32 0.5, %v2221_v36  ;;  %v2349_v36 = vld [vmem:[#allocation10 + $0x10] sm:$0xff]  ;;  %2402 = vmatpush.msra.mxu1 %v2350_v17 }
 0x982   :  { %2403 = vmatpush.msra.mxu1 %v2349_v36 }
 0x984   :  { %2404 = vmatpush.msra.mxu1 %v2348_v40 }
 0x986   :  { %v2628_v39 = vpop.eup %2627 }
 0x987   :  { %v2227_v27 = vmul.f32 %v2628_v39, %v2222_v37 }
 0x989   :  { %2244 = vmatmul.f32.vlgmr.msrb.gmra.mxu0 %v2227_v27  ;;  %2264 = vmatmul.f32.vlgmr.msrb.gmra.mxu1 %v2227_v27 }
 0x98a   :  { %2284 = vmatmul.f32.vlgmr.msra.gmra.mxu2 %v2227_v27  ;;  %2304 = vmatmul.f32.vlgmr.msra.gmra.mxu3 %v2227_v27 }
 0xa06   :  { %v2245_v55 = vpop.f32.mrf.mxu0  ;;  %v2265_v53 = vpop.f32.mrf.mxu1 }
 0xa07   :  { %v2308_v52 = vadd.f32 %v2245_v55, %v1389_v19  ;;  %v2309_v11 = vadd.f32 %v2265_v53, %v1430_v4 }
 0xa09   :  { %v2312_v57 = vmul.f32 0.5, %v2308_v52  ;;  %v2316_v38 = vmul.f32 0.5, %v2309_v11 }
 0xa0b   :  { %2629 = vtanh.f32 %v2312_v57 }
 0xa0c   :  { %2631 = vtanh.f32 %v2316_v38 }
 0xa0d   :  { %v2285_v0 = vpop.f32.mrf.mxu2  ;;  %v2305_v1 = vpop.f32.mrf.mxu3 }
 0xa0e   :  { %v2310_v29 = vadd.f32 %v2285_v0, %v1471_v62  ;;  %v2311_v18 = vadd.f32 %v2305_v1, %v1512_v16 }
 0xa10   :  { %2633 = vtanh.f32 %v2310_v29  ;;  %v2321_v28 = vmul.f32 0.5, %v2311_v18 }
 0xa11   :  { %v2630_v24 = vpop.eup %2629 }
 0xa12   :  { %v2632_v35 = vpop.eup %2631  ;;  %v2314_v23 = vmul.f32 0.5, %v2630_v24  ;;  %2635 = vtanh.f32 %v2321_v28 }
 0xa13   :  { %v2318_v20 = vmul.f32 0.5, %v2632_v35 }
 0xa14   :  { %v2315_v56 = vadd.f32 0.5, %v2314_v23 }
 0xa15   :  { %v2319_v15 = vadd.f32 0.5, %v2318_v20 }
 0xa16   :  { %v2634_v32 = vpop.eup %2633 }
 0xa17   :  { %v2325_v31 = vmul.f32 %v2319_v15, %v5035_v30  ;;  %v2326_v58 = vmul.f32 %v2634_v32, %v2315_v56  ;;  %v2347_v30 = vld [vmem:[#allocation10] sm:$0xff] }
 0xa18   :  { %v2636_v8 = vpop.eup %2635  ;;  %2405 = vmatpush.msra.mxu1 %v2347_v30 }
 0xa19   :  { %v2327_v12 = vadd.f32 %v2326_v58, %v2325_v31  ;;  %v2323_v26 = vmul.f32 0.5, %v2636_v8 }
 0xa1b   :  { %2637 = vtanh.f32 %v2327_v12  ;;  %v2324_v37 = vadd.f32 0.5, %v2323_v26 }
 0xa21   :  { %v2638_v39 = vpop.eup %2637 }
 0xa22   :  { %v2329_v27 = vmul.f32 %v2638_v39, %v2324_v37 }
 0xa24   :  { %2383 = vmatmul.f32.vlgmr.msra.gmra.mxu0 %v2329_v27 }
 0xaa1   :  { %v2384_v42 = vpop.f32.mrf.mxu0 }
 0xaa2   :  { %v2385_v43 = vadd.f32 %v2477_v41, %v2384_v42 }
 0xaa4   :  { %2406 = vmatmul.f32.vlgmr.msra.gmra.mxu1 %v2385_v43 }
 0xb21   :  { %v2407_v46 = vpop.f32.mrf.mxu1 }
 0xb22   :  { %v2408_v47 = vadd.f32 %v2478_v44, %v2407_v46 }
 0xb24   :  { %2410 = vst [vmem:[#allocation11] sm:$0xff] %v2408_v47 }
 0xb25   :  { %2421 = dma.vmem_to_hbm [thread:$0]  %s2417_s15, 128, %s2419_s17, [#allocation4]  }
 0xb26   :  { %2917 = dma.done.wait [#allocation4], 128  }
 0xb27   :  { %2918 = vsyncadd [#allocation4], 4294967168 }
 0xb28   :  { %2426 = vsyncpa [#allocation3], 1 }
 0xb29   :  { %2427 = vsyncpa [#allocation6], 1 }
 0xb2a   :  { %2428 = vsyncpa [#allocation9], 1 }
 0xb2b   :  { %2429 = vsyncpa [#allocation4], 1 }

</bundles_post_ra>
